<compile_context>
chip_gen: v7x
topology: tpu7x:2x2x1
jax: 0.10.0
libtpu: 0.0.40
codegen_flags: <defaults>
</compile_context>

<pallas_src>
import functools

import jax
import jax.numpy as jnp
from jax import lax
from jax.experimental import pallas as pl
from jax.experimental.pallas import tpu as pltpu

BN_EPS = 1e-5  # PyTorch BatchNorm2d default


# ----------------------------- stage 1 kernel ------------------------------- #

def _conv1_kernel(bt, stride, cin, cmid, ho, wo, has_proj, cdtype, *refs):
    """conv1 (3x3/stride) fused with the 1x1 projection shortcut + BN sums.

    The input block is the stride-phase (space-to-depth) layout produced in the
    wrapper, so every tap read below is a contiguous ref slice even for
    stride 2.  The projection weights live in the centre-tap rows of the fused
    weight matrix, so conv1 and the shortcut share one big-K MXU matmul.
    """
    if has_proj:
        x_ref, w_ref, a1_ref, st1_ref, s_ref, sts_ref, pat_ref = refs
    else:
        x_ref, w_ref, a1_ref, st1_ref, pat_ref = refs
    m = ho * wo

    # im2col staging: one store per (image, kh) -> 3x wider stores than per-tap.
    for b in range(bt):
        for kh in range(3):
            cols = []
            for kw in range(3):
                g = (kh % stride) * stride + (kw % stride)  # stride phase group
                p = x_ref[b,
                          kh // stride:kh // stride + ho,
                          kw // stride:kw // stride + wo,
                          g * cin:(g + 1) * cin]
                cols.append(p.reshape(m, cin).astype(cdtype))
            pat_ref[b * m:(b + 1) * m,
                    kh * 3 * cin:(kh + 1) * 3 * cin] = jnp.concatenate(cols, axis=-1)

    acc = jnp.dot(pat_ref[...], w_ref[...], preferred_element_type=jnp.float32)

    a1 = acc[:, :cmid]
    a1_ref[...] = a1.reshape(bt, m, cmid).astype(a1_ref.dtype)
    # Per-block partial sums in f32; reduced across blocks in the wrapper so
    # training-mode BatchNorm2d statistics survive the tiling.
    st1_ref[:, 0:1, :] = jnp.sum(a1, axis=0, keepdims=True).reshape(1, 1, cmid)
    st1_ref[:, 1:2, :] = jnp.sum(a1 * a1, axis=0, keepdims=True).reshape(1, 1, cmid)

    if has_proj:
        sh = acc[:, cmid:]
        s_ref[...] = sh.reshape(bt, m, cmid).astype(s_ref.dtype)
        sts_ref[:, 0:1, :] = jnp.sum(sh, axis=0, keepdims=True).reshape(1, 1, cmid)
        sts_ref[:, 1:2, :] = jnp.sum(sh * sh, axis=0, keepdims=True).reshape(1, 1, cmid)


# ----------------------------- stage 2 kernel ------------------------------- #

def _conv2_kernel(bt, cmid, ho, wo, cdtype, a1_ref, sc1_ref, sh1_ref, w2_ref,
                  a2_ref, st2_ref, hpad_ref, pat_ref):
    """bn1 (affine FMA) + relu -> conv2 (3x3/1, big-K matmul) + BN partial sums."""
    m = ho * wo
    z = hpad_ref.dtype

    # Zero only the 1-px halo border of the staging buffer.  Done every grid
    # step (not just step 0): with a "parallel" batch axis a core may never run
    # program_id == 0, so first-step-only init would leave garbage borders.
    hpad_ref[0:1, :, :] = jnp.zeros((1, wo + 2, cmid), z)
    hpad_ref[ho + 1:ho + 2, :, :] = jnp.zeros((1, wo + 2, cmid), z)
    hpad_ref[:, 0:1, :] = jnp.zeros((ho + 2, 1, cmid), z)
    hpad_ref[:, wo + 1:wo + 2, :] = jnp.zeros((ho + 2, 1, cmid), z)

    for b in range(bt):
        # BN1 as a precomputed-affine FMA fused with ReLU (single pass).
        a1 = a1_ref[b].reshape(m, cmid)
        h1 = jnp.maximum(a1 * sc1_ref[...] + sh1_ref[...], 0.0)
        hpad_ref[1:ho + 1, 1:wo + 1, :] = h1.reshape(ho, wo, cmid).astype(z)
        for kh in range(3):
            cols = [hpad_ref[kh:kh + ho, kw:kw + wo, :]
                    .reshape(m, cmid).astype(cdtype) for kw in range(3)]
            pat_ref[b * m:(b + 1) * m,
                    kh * 3 * cmid:(kh + 1) * 3 * cmid] = jnp.concatenate(cols, axis=-1)

    a2 = jnp.dot(pat_ref[...], w2_ref[...], preferred_element_type=jnp.float32)
    a2_ref[...] = a2.reshape(bt, m, cmid).astype(a2_ref.dtype)
    st2_ref[:, 0:1, :] = jnp.sum(a2, axis=0, keepdims=True).reshape(1, 1, cmid)
    st2_ref[:, 1:2, :] = jnp.sum(a2 * a2, axis=0, keepdims=True).reshape(1, 1, cmid)


# -------------------------------- helpers ------------------------------------ #

def _affine_from_stats(stats, gamma, beta, count):
    """Per-channel scale/shift so that bn(x) == x*scale + shift (batch stats)."""
    ssum = jnp.sum(stats[:, 0, :], axis=0)
    ssq = jnp.sum(stats[:, 1, :], axis=0)
    mean = ssum / count
    var = jnp.maximum(ssq / count - mean * mean, 0.0)   # biased variance
    scale = gamma.reshape(-1) * lax.rsqrt(var + BN_EPS)
    shift = beta.reshape(-1) - mean * scale
    return (scale.reshape(1, -1).astype(jnp.float32),
            shift.reshape(1, -1).astype(jnp.float32))


def _resident(shape):
    """Whole-array block whose index_map ignores the grid position: DMA'd into
    VMEM once and resident across grid steps."""
    return pl.BlockSpec(shape, lambda *_: (0,) * len(shape))


def _pick_batch_tile(n, m, k_max, itemsize):
    """Largest divisor of n that lifts the matmul M-dim toward >=256 rows
    without blowing up the im2col scratch (keeps late, small-m blocks from
    row-starving the 256-row MXU)."""
    target = max(1, -(-256 // m))
    cap = 8 * 1024 * 1024
    best = 1
    for d in range(1, n + 1):
        if n % d:
            continue
        if d > target or d * m * k_max * itemsize > cap:
            break
        best = d
    return best


# -------------------------------- wrapper ------------------------------------ #

def basic_block_forward(x_nchw, params, stride=1, compute_dtype=jnp.bfloat16):
    n, cin, h, w = x_nchw.shape
    cmid = params["w1"].shape[-1]
    has_proj = (stride != 1) or (cin != cmid)
    s = stride
    ho = (h - 1) // s + 1
    wo = (w - 1) // s + 1
    m = ho * wo
    f32 = jnp.float32
    act_dtype = compute_dtype          # inter-stage HBM activation storage
    isz = jnp.dtype(compute_dtype).itemsize
    act_isz = jnp.dtype(act_dtype).itemsize

    # ---- glue: NCHW -> NHWC, 1-px halo, stride-phase space-to-depth ---------
    # (pure XLA; fuses with the mandatory layout transpose — identity for s=1)
    x_nhwc = jnp.transpose(x_nchw, (0, 2, 3, 1)).astype(f32)
    h2, w2 = h + 2, w + 2
    hp2 = -(-h2 // s) * s
    wp2 = -(-w2 // s) * s
    x_pad = jnp.pad(x_nhwc, ((0, 0), (1, 1 + hp2 - h2), (1, 1 + wp2 - w2), (0, 0)))
    h_ph, w_ph, csize = hp2 // s, wp2 // s, s * s * cin
    x_ph = (x_pad.reshape(n, h_ph, s, w_ph, s, cin)
            .transpose(0, 1, 3, 2, 4, 5)
            .reshape(n, h_ph, w_ph, csize)).astype(compute_dtype)

    # ---- weights: im2col layout; projection shortcut fused into conv1 -------
    w1r = params["w1"].reshape(9 * cin, cmid)
    if has_proj:
        ws_full = jnp.zeros((9 * cin, cmid), f32)
        ws_full = ws_full.at[4 * cin:5 * cin, :].set(params["ws"])  # centre tap
        wcat = jnp.concatenate([w1r, ws_full], axis=1)              # (9*cin, 2*cmid)
    else:
        wcat = w1r
    ncols = wcat.shape[1]
    wcat = wcat.astype(compute_dtype)
    w2r = params["w2"].reshape(9 * cmid, cmid).astype(compute_dtype)

    bt = _pick_batch_tile(n, m, 9 * max(cin, cmid), isz)
    nblk = n // bt

    # ---- VMEM budget: actual per-step footprint, capped below v7x's 64 MiB --
    nact1 = 2 if has_proj else 1
    s1_bytes = (2 * (bt * h_ph * w_ph * csize * isz
                     + nact1 * (bt * m * cmid * act_isz + 2 * cmid * 4))
                + 2 * 9 * cin * ncols * isz
                + bt * m * 9 * cin * isz)
    s2_bytes = (2 * (2 * bt * m * cmid * act_isz + 2 * cmid * 4)
                + 2 * (9 * cmid * cmid * isz + 2 * 2 * cmid * 4)
                + (ho + 2) * (wo + 2) * cmid * 4
                + bt * m * 9 * cmid * isz)
    vmem_limit = int(min(max(1.5 * max(s1_bytes, s2_bytes) + (4 << 20), 32 << 20),
                         48 << 20))
    cparams = pltpu.CompilerParams(
        dimension_semantics=("parallel",),       # shard batch across TensorCores
        vmem_limit_bytes=vmem_limit)

    def blk(*tail):
        nd = len(tail)
        return pl.BlockSpec((bt,) + tuple(tail), lambda i: (i,) + (0,) * nd)

    stat_spec = pl.BlockSpec((1, 2, cmid), lambda i: (i, 0, 0))

    # ---- stage 1: conv1 (+ fused 1x1 shortcut) + BN partial sums ------------
    out_shape = [jax.ShapeDtypeStruct((n, m, cmid), act_dtype),
                 jax.ShapeDtypeStruct((nblk, 2, cmid), f32)]
    out_specs = [blk(m, cmid), stat_spec]
    if has_proj:
        out_shape += [jax.ShapeDtypeStruct((n, m, cmid), act_dtype),
                      jax.ShapeDtypeStruct((nblk, 2, cmid), f32)]
        out_specs += [blk(m, cmid), stat_spec]

    stage1 = pl.pallas_call(
        functools.partial(_conv1_kernel, bt, s, cin, cmid, ho, wo, has_proj,
                          compute_dtype),
        grid=(nblk,),
        in_specs=[blk(h_ph, w_ph, csize), _resident((9 * cin, ncols))],
        out_shape=tuple(out_shape),
        out_specs=tuple(out_specs),
        scratch_shapes=[pltpu.VMEM((bt * m, 9 * cin), compute_dtype)],
        compiler_params=cparams,
    )(x_ph, wcat)
    if has_proj:
        a1, st1, s_pre, st_s = stage1
    else:
        a1, st1 = stage1

    cnt = jnp.float32(n * m)
    sc1, sh1 = _affine_from_stats(st1, params["g1"], params["b1"], cnt)

    # ---- stage 2: bn1 + relu -> conv2 + BN partial sums ---------------------
    a2, st2 = pl.pallas_call(
        functools.partial(_conv2_kernel, bt, cmid, ho, wo, compute_dtype),
        grid=(nblk,),
        in_specs=[blk(m, cmid), _resident((1, cmid)), _resident((1, cmid)),
                  _resident((9 * cmid, cmid))],
        out_shape=(jax.ShapeDtypeStruct((n, m, cmid), act_dtype),
                   jax.ShapeDtypeStruct((nblk, 2, cmid), f32)),
        out_specs=(blk(m, cmid), stat_spec),
        scratch_shapes=[pltpu.VMEM((ho + 2, wo + 2, cmid), jnp.float32),
                        pltpu.VMEM((bt * m, 9 * cmid), compute_dtype)],
        compiler_params=cparams,
    )(a1, sc1, sh1, w2r)

    # ---- stage 3: bn2 + shortcut-bn + add + relu (plain jnp; XLA fuses it
    #      with the NHWC->NCHW output transpose, saving one HBM round-trip) ----
    sc2, sh2 = _affine_from_stats(st2, params["g2"], params["b2"], cnt)
    if has_proj:
        scs, shs = _affine_from_stats(st_s, params["gs"], params["bs"], cnt)
        shortcut = s_pre.astype(f32)
    else:
        scs = jnp.ones((1, cmid), f32)
        shs = jnp.zeros((1, cmid), f32)
        shortcut = x_nhwc.reshape(n, m, cmid)   # identity shortcut (s==1, cin==cmid)
    out = jnp.maximum(a2.astype(f32) * sc2 + sh2 + shortcut * scs + shs, 0.0)

    return jnp.transpose(out.reshape(n, ho, wo, cmid), (0, 3, 1, 2))


basic_block = jax.jit(basic_block_forward,
                      static_argnames=("stride", "compute_dtype"))


# ------------------------- pure-JAX reference check ------------------------- #

def _bn_train_ref(x_nchw, gamma, beta):
    mean = jnp.mean(x_nchw, axis=(0, 2, 3), keepdims=True)
    var = jnp.mean((x_nchw - mean) ** 2, axis=(0, 2, 3), keepdims=True)
    g = gamma.reshape(1, -1, 1, 1)
    b = beta.reshape(1, -1, 1, 1)
    return (x_nchw - mean) * lax.rsqrt(var + BN_EPS) * g + b


def basic_block_ref(x, params, stride=1):
    def conv(inp, w_hwio, s, k):
        w_oihw = jnp.transpose(w_hwio, (3, 2, 0, 1))
        pad = (k - 1) // 2
        return lax.conv_general_dilated(
            inp, w_oihw, window_strides=(s, s),
            padding=[(pad, pad), (pad, pad)],
            dimension_numbers=("NCHW", "OIHW", "NCHW"))

    cin = x.shape[1]
    cmid = params["w1"].shape[-1]
    out = jax.nn.relu(_bn_train_ref(conv(x, params["w1"], stride, 3),
                                    params["g1"][0], params["b1"][0]))
    out = _bn_train_ref(conv(out, params["w2"], 1, 3),
                        params["g2"][0], params["b2"][0])
    if stride != 1 or cin != cmid:
        ws_hwio = params["ws"].reshape(1, 1, cin, cmid)
        sc = _bn_train_ref(conv(x, ws_hwio, stride, 1),
                           params["gs"][0], params["bs"][0])
    else:
        sc = x
    return jax.nn.relu(out + sc)


# ---------------------------------- main ------------------------------------ #

def _make_params(key, cin, planes):
    ks = jax.random.split(key, 9)
    return {
        "w1": 0.1 * jax.random.normal(ks[0], (3, 3, cin, planes), jnp.float32),
        "g1": 1.0 + 0.1 * jax.random.normal(ks[1], (1, planes), jnp.float32),
        "b1": 0.1 * jax.random.normal(ks[2], (1, planes), jnp.float32),
        "w2": 0.1 * jax.random.normal(ks[3], (3, 3, planes, planes), jnp.float32),
        "g2": 1.0 + 0.1 * jax.random.normal(ks[4], (1, planes), jnp.float32),
        "b2": 0.1 * jax.random.normal(ks[5], (1, planes), jnp.float32),
        "ws": 0.1 * jax.random.normal(ks[6], (cin, planes), jnp.float32),
        "gs": 1.0 + 0.1 * jax.random.normal(ks[7], (1, planes), jnp.float32),
        "bs": 0.1 * jax.random.normal(ks[8], (1, planes), jnp.float32),
    }


if __name__ == "__main__":
    key = jax.random.PRNGKey(0)
    k_p1, k_x1, k_p2, k_x2, k_p3, k_x3 = jax.random.split(key, 6)

    # Config 1: projection shortcut (in_planes != planes), stride 1.
    N, Cin, H, W, planes, stride = 2, 4, 16, 16, 8, 1
    params = _make_params(k_p1, Cin, planes)
    x = jax.random.normal(k_x1, (N, Cin, H, W), jnp.float32)
    ref = jax.block_until_ready(basic_block_ref(x, params, stride))

    # f32 MXU path: numerically faithful to the fp32 PyTorch module.
    out_f32 = jax.block_until_ready(
        basic_block(x, params, stride=stride, compute_dtype=jnp.float32))
    assert out_f32.shape == (N, planes, H, W), out_f32.shape
    assert jnp.allclose(out_f32, ref, atol=2e-3, rtol=2e-3), \
        float(jnp.max(jnp.abs(out_f32 - ref)))

    # bf16 MXU path (default; bf16 inter-stage storage, f32 accumulation).
    out_bf16 = jax.block_until_ready(
        basic_block(x, params, stride=stride, compute_dtype=jnp.bfloat16))
    assert out_bf16.shape == (N, planes, H, W), out_bf16.shape
    assert jnp.allclose(out_bf16, ref, atol=5e-2, rtol=5e-2), \
        float(jnp.max(jnp.abs(out_bf16 - ref)))

    # Config 2: identity shortcut (in_planes == planes), stride 1.
    params2 = _make_params(k_p2, planes, planes)
    x2 = jax.random.normal(k_x2, (N, planes, H, W), jnp.float32)
    ref2 = jax.block_until_ready(basic_block_ref(x2, params2, 1))
    out2 = jax.block_until_ready(
        basic_block(x2, params2, stride=1, compute_dtype=jnp.bfloat16))
    assert out2.shape == (N, planes, H, W), out2.shape
    assert jnp.allclose(out2, ref2, atol=5e-2, rtol=5e-2), \
        float(jnp.max(jnp.abs(out2 - ref2)))

    # Config 3: downsampling block (stride 2, projection shortcut); also
    # exercises the stride-phase im2col path and batch packing (bt = 2).
    params3 = _make_params(k_p3, 8, 16)
    x3 = jax.random.normal(k_x3, (2, 8, 16, 16), jnp.float32)
    ref3 = jax.block_until_ready(basic_block_ref(x3, params3, 2))
    out3 = jax.block_until_ready(
        basic_block(x3, params3, stride=2, compute_dtype=jnp.float32))
    assert out3.shape == (2, 16, 8, 8), out3.shape
    assert jnp.allclose(out3, ref3, atol=2e-3, rtol=2e-3), \
        float(jnp.max(jnp.abs(out3 - ref3)))

    print("KERNEL_OK")
</pallas_src>

<mosaic_0001>
module attributes {stable_mosaic.version = 11 : i64} {
  func.func @_conv1_kernel(%arg0: i32, %arg1: memref<1x18x18x4xf32, #tpu.memory_space<vmem>>, %arg2: memref<36x16xf32, #tpu.memory_space<vmem>>, %arg3: memref<1x256x8xf32, #tpu.memory_space<vmem>>, %arg4: memref<1x2x8xf32, #tpu.memory_space<vmem>>, %arg5: memref<1x256x8xf32, #tpu.memory_space<vmem>>, %arg6: memref<1x2x8xf32, #tpu.memory_space<vmem>>, %arg7: memref<256x36xf32, #tpu.memory_space<vmem>>) attributes {dimension_semantics = [#tpu.dimension_semantics<parallel>], iteration_bounds = array<i64: 2>, scalar_prefetch = 0 : i64, scratch_operands = 1 : i64, tpu.core_type = #tpu.core_type<tc>, window_params = [{transform_indices = @transform_0, window_bounds = array<i64: 1, 18, 18, 4>}, {pipeline_mode = #tpu.pipeline_mode<synchronous>, transform_indices = @transform_1, window_bounds = array<i64: 36, 16>}, {transform_indices = @transform_2, window_bounds = array<i64: 1, 256, 8>}, {transform_indices = @transform_3, window_bounds = array<i64: 1, 2, 8>}, {transform_indices = @transform_4, window_bounds = array<i64: 1, 256, 8>}, {transform_indices = @transform_5, window_bounds = array<i64: 1, 2, 8>}]} {
    %c0 = arith.constant 0 : index
    %c0_0 = arith.constant 0 : index
    %c0_1 = arith.constant 0 : index
    %c0_2 = arith.constant 0 : index
    %0 = vector.load %arg1[%c0, %c0_0, %c0_1, %c0_2] : memref<1x18x18x4xf32, #tpu.memory_space<vmem>>, vector<1x16x16x4xf32>
    %1 = vector.shape_cast %0 : vector<1x16x16x4xf32> to vector<16x16x4xf32>
    %2 = vector.shape_cast %1 : vector<16x16x4xf32> to vector<256x4xf32>
    %c0_3 = arith.constant 0 : index
    %c0_4 = arith.constant 0 : index
    %c1 = arith.constant 1 : index
    %c0_5 = arith.constant 0 : index
    %3 = vector.load %arg1[%c0_3, %c0_4, %c1, %c0_5] : memref<1x18x18x4xf32, #tpu.memory_space<vmem>>, vector<1x16x16x4xf32>
    %4 = vector.shape_cast %3 : vector<1x16x16x4xf32> to vector<16x16x4xf32>
    %5 = vector.shape_cast %4 : vector<16x16x4xf32> to vector<256x4xf32>
    %c0_6 = arith.constant 0 : index
    %c0_7 = arith.constant 0 : index
    %c2 = arith.constant 2 : index
    %c0_8 = arith.constant 0 : index
    %6 = vector.load %arg1[%c0_6, %c0_7, %c2, %c0_8] : memref<1x18x18x4xf32, #tpu.memory_space<vmem>>, vector<1x16x16x4xf32>
    %7 = vector.shape_cast %6 : vector<1x16x16x4xf32> to vector<16x16x4xf32>
    %8 = vector.shape_cast %7 : vector<16x16x4xf32> to vector<256x4xf32>
    %9 = tpu.concatenate %2, %5, %8 in 1 : vector<256x4xf32>, vector<256x4xf32>, vector<256x4xf32> -> vector<256x12xf32>
    %c0_9 = arith.constant 0 : index
    %c0_10 = arith.constant 0 : index
    %10 = vector.load %arg7[%c0_9, %c0_10] : memref<256x36xf32, #tpu.memory_space<vmem>>, vector<256x12xf32>
    tpu.vector_store %arg7[%c0_9, %c0_10], %9 {strides = array<i32>} : memref<256x36xf32, #tpu.memory_space<vmem>>, vector<256x12xf32>,
    %c0_11 = arith.constant 0 : index
    %c1_12 = arith.constant 1 : index
    %c0_13 = arith.constant 0 : index
    %c0_14 = arith.constant 0 : index
    %11 = vector.load %arg1[%c0_11, %c1_12, %c0_13, %c0_14] : memref<1x18x18x4xf32, #tpu.memory_space<vmem>>, vector<1x16x16x4xf32>
    %12 = vector.shape_cast %11 : vector<1x16x16x4xf32> to vector<16x16x4xf32>
    %13 = vector.shape_cast %12 : vector<16x16x4xf32> to vector<256x4xf32>
    %c0_15 = arith.constant 0 : index
    %c1_16 = arith.constant 1 : index
    %c1_17 = arith.constant 1 : index
    %c0_18 = arith.constant 0 : index
    %14 = vector.load %arg1[%c0_15, %c1_16, %c1_17, %c0_18] : memref<1x18x18x4xf32, #tpu.memory_space<vmem>>, vector<1x16x16x4xf32>
    %15 = vector.shape_cast %14 : vector<1x16x16x4xf32> to vector<16x16x4xf32>
    %16 = vector.shape_cast %15 : vector<16x16x4xf32> to vector<256x4xf32>
    %c0_19 = arith.constant 0 : index
    %c1_20 = arith.constant 1 : index
    %c2_21 = arith.constant 2 : index
    %c0_22 = arith.constant 0 : index
    %17 = vector.load %arg1[%c0_19, %c1_20, %c2_21, %c0_22] : memref<1x18x18x4xf32, #tpu.memory_space<vmem>>, vector<1x16x16x4xf32>
    %18 = vector.shape_cast %17 : vector<1x16x16x4xf32> to vector<16x16x4xf32>
    %19 = vector.shape_cast %18 : vector<16x16x4xf32> to vector<256x4xf32>
    %20 = tpu.concatenate %13, %16, %19 in 1 : vector<256x4xf32>, vector<256x4xf32>, vector<256x4xf32> -> vector<256x12xf32>
    %c0_23 = arith.constant 0 : index
    %c12 = arith.constant 12 : index
    %21 = vector.load %arg7[%c0_23, %c12] : memref<256x36xf32, #tpu.memory_space<vmem>>, vector<256x12xf32>
    tpu.vector_store %arg7[%c0_23, %c12], %20 {strides = array<i32>} : memref<256x36xf32, #tpu.memory_space<vmem>>, vector<256x12xf32>,
    %c0_24 = arith.constant 0 : index
    %c2_25 = arith.constant 2 : index
    %c0_26 = arith.constant 0 : index
    %c0_27 = arith.constant 0 : index
    %22 = vector.load %arg1[%c0_24, %c2_25, %c0_26, %c0_27] : memref<1x18x18x4xf32, #tpu.memory_space<vmem>>, vector<1x16x16x4xf32>
    %23 = vector.shape_cast %22 : vector<1x16x16x4xf32> to vector<16x16x4xf32>
    %24 = vector.shape_cast %23 : vector<16x16x4xf32> to vector<256x4xf32>
    %c0_28 = arith.constant 0 : index
    %c2_29 = arith.constant 2 : index
    %c1_30 = arith.constant 1 : index
    %c0_31 = arith.constant 0 : index
    %25 = vector.load %arg1[%c0_28, %c2_29, %c1_30, %c0_31] : memref<1x18x18x4xf32, #tpu.memory_space<vmem>>, vector<1x16x16x4xf32>
    %26 = vector.shape_cast %25 : vector<1x16x16x4xf32> to vector<16x16x4xf32>
    %27 = vector.shape_cast %26 : vector<16x16x4xf32> to vector<256x4xf32>
    %c0_32 = arith.constant 0 : index
    %c2_33 = arith.constant 2 : index
    %c2_34 = arith.constant 2 : index
    %c0_35 = arith.constant 0 : index
    %28 = vector.load %arg1[%c0_32, %c2_33, %c2_34, %c0_35] : memref<1x18x18x4xf32, #tpu.memory_space<vmem>>, vector<1x16x16x4xf32>
    %29 = vector.shape_cast %28 : vector<1x16x16x4xf32> to vector<16x16x4xf32>
    %30 = vector.shape_cast %29 : vector<16x16x4xf32> to vector<256x4xf32>
    %31 = tpu.concatenate %24, %27, %30 in 1 : vector<256x4xf32>, vector<256x4xf32>, vector<256x4xf32> -> vector<256x12xf32>
    %c0_36 = arith.constant 0 : index
    %c24 = arith.constant 24 : index
    %32 = vector.load %arg7[%c0_36, %c24] : memref<256x36xf32, #tpu.memory_space<vmem>>, vector<256x12xf32>
    tpu.vector_store %arg7[%c0_36, %c24], %31 {strides = array<i32>} : memref<256x36xf32, #tpu.memory_space<vmem>>, vector<256x12xf32>,
    %c0_37 = arith.constant 0 : index
    %c0_38 = arith.constant 0 : index
    %33 = vector.load %arg7[%c0_37, %c0_38] : memref<256x36xf32, #tpu.memory_space<vmem>>, vector<256x36xf32>
    %c0_39 = arith.constant 0 : index
    %c0_40 = arith.constant 0 : index
    %34 = vector.load %arg2[%c0_39, %c0_40] : memref<36x16xf32, #tpu.memory_space<vmem>>, vector<36x16xf32>
    %cst = arith.constant dense<0.000000e+00> : vector<256x16xf32>
    %35 = tpu.matmul %33, %34, %cst {dimension_numbers = #tpu.dot_dimension_numbers<[1], [0], [0], [1], [0, 0, 1, 1], [], []>} : vector<256x36xf32>, vector<36x16xf32>, vector<256x16xf32> -> vector<256x16xf32>
    %36 = vector.extract_strided_slice %35 {offsets = [0, 0], sizes = [256, 8], strides = [1, 1]} : vector<256x16xf32> to vector<256x8xf32>
    %37 = vector.shape_cast %36 : vector<256x8xf32> to vector<1x256x8xf32>
    %c0_41 = arith.constant 0 : index
    %c0_42 = arith.constant 0 : index
    %c0_43 = arith.constant 0 : index
    %38 = vector.load %arg3[%c0_41, %c0_42, %c0_43] : memref<1x256x8xf32, #tpu.memory_space<vmem>>, vector<1x256x8xf32>
    tpu.vector_store %arg3[%c0_41, %c0_42, %c0_43], %37 {strides = array<i32>} : memref<1x256x8xf32, #tpu.memory_space<vmem>>, vector<1x256x8xf32>,
    %cst_44 = arith.constant dense<0.000000e+00> : vector<8xf32>
    %39 = vector.multi_reduction <add>, %36, %cst_44 [0] : vector<256x8xf32> to vector<8xf32>
    %40 = vector.shape_cast %39 : vector<8xf32> to vector<1x8xf32>
    %41 = vector.shape_cast %40 : vector<1x8xf32> to vector<1x1x8xf32>
    %c0_45 = arith.constant 0 : index
    %c0_46 = arith.constant 0 : index
    %c0_47 = arith.constant 0 : index
    %42 = vector.load %arg4[%c0_45, %c0_46, %c0_47] : memref<1x2x8xf32, #tpu.memory_space<vmem>>, vector<1x1x8xf32>
    tpu.vector_store %arg4[%c0_45, %c0_46, %c0_47], %41 {strides = array<i32>} : memref<1x2x8xf32, #tpu.memory_space<vmem>>, vector<1x1x8xf32>,
    %43 = arith.mulf %36, %36 : vector<256x8xf32>
    %cst_48 = arith.constant dense<0.000000e+00> : vector<8xf32>
    %44 = vector.multi_reduction <add>, %43, %cst_48 [0] : vector<256x8xf32> to vector<8xf32>
    %45 = vector.shape_cast %44 : vector<8xf32> to vector<1x8xf32>
    %46 = vector.shape_cast %45 : vector<1x8xf32> to vector<1x1x8xf32>
    %c0_49 = arith.constant 0 : index
    %c1_50 = arith.constant 1 : index
    %c0_51 = arith.constant 0 : index
    %47 = vector.load %arg4[%c0_49, %c1_50, %c0_51] : memref<1x2x8xf32, #tpu.memory_space<vmem>>, vector<1x1x8xf32>
    tpu.vector_store %arg4[%c0_49, %c1_50, %c0_51], %46 {strides = array<i32>} : memref<1x2x8xf32, #tpu.memory_space<vmem>>, vector<1x1x8xf32>,
    %48 = vector.extract_strided_slice %35 {offsets = [0, 8], sizes = [256, 8], strides = [1, 1]} : vector<256x16xf32> to vector<256x8xf32>
    %49 = vector.shape_cast %48 : vector<256x8xf32> to vector<1x256x8xf32>
    %c0_52 = arith.constant 0 : index
    %c0_53 = arith.constant 0 : index
    %c0_54 = arith.constant 0 : index
    %50 = vector.load %arg5[%c0_52, %c0_53, %c0_54] : memref<1x256x8xf32, #tpu.memory_space<vmem>>, vector<1x256x8xf32>
    tpu.vector_store %arg5[%c0_52, %c0_53, %c0_54], %49 {strides = array<i32>} : memref<1x256x8xf32, #tpu.memory_space<vmem>>, vector<1x256x8xf32>,
    %cst_55 = arith.constant dense<0.000000e+00> : vector<8xf32>
    %51 = vector.multi_reduction <add>, %48, %cst_55 [0] : vector<256x8xf32> to vector<8xf32>
    %52 = vector.shape_cast %51 : vector<8xf32> to vector<1x8xf32>
    %53 = vector.shape_cast %52 : vector<1x8xf32> to vector<1x1x8xf32>
    %c0_56 = arith.constant 0 : index
    %c0_57 = arith.constant 0 : index
    %c0_58 = arith.constant 0 : index
    %54 = vector.load %arg6[%c0_56, %c0_57, %c0_58] : memref<1x2x8xf32, #tpu.memory_space<vmem>>, vector<1x1x8xf32>
    tpu.vector_store %arg6[%c0_56, %c0_57, %c0_58], %53 {strides = array<i32>} : memref<1x2x8xf32, #tpu.memory_space<vmem>>, vector<1x1x8xf32>,
    %55 = arith.mulf %48, %48 : vector<256x8xf32>
    %cst_59 = arith.constant dense<0.000000e+00> : vector<8xf32>
    %56 = vector.multi_reduction <add>, %55, %cst_59 [0] : vector<256x8xf32> to vector<8xf32>
    %57 = vector.shape_cast %56 : vector<8xf32> to vector<1x8xf32>
    %58 = vector.shape_cast %57 : vector<1x8xf32> to vector<1x1x8xf32>
    %c0_60 = arith.constant 0 : index
    %c1_61 = arith.constant 1 : index
    %c0_62 = arith.constant 0 : index
    %59 = vector.load %arg6[%c0_60, %c1_61, %c0_62] : memref<1x2x8xf32, #tpu.memory_space<vmem>>, vector<1x1x8xf32>
    tpu.vector_store %arg6[%c0_60, %c1_61, %c0_62], %58 {strides = array<i32>} : memref<1x2x8xf32, #tpu.memory_space<vmem>>, vector<1x1x8xf32>,
    return
  }
  func.func @transform_0(%arg0: i32) -> (i32, i32, i32, i32) {
    %c0_i32 = arith.constant 0 : i32
    %c0_i32_0 = arith.constant 0 : i32
    %c0_i32_1 = arith.constant 0 : i32
    %c0_i32_2 = arith.constant 0 : i32
    return %arg0, %c0_i32, %c0_i32_0, %c0_i32_1 : i32, i32, i32, i32
  }
  func.func @transform_1(%arg0: i32) -> (i32, i32) {
    %c0_i32 = arith.constant 0 : i32
    %c0_i32_0 = arith.constant 0 : i32
    %c0_i32_1 = arith.constant 0 : i32
    return %c0_i32, %c0_i32_0 : i32, i32
  }
  func.func @transform_2(%arg0: i32) -> (i32, i32, i32) {
    %c0_i32 = arith.constant 0 : i32
    %c0_i32_0 = arith.constant 0 : i32
    %c0_i32_1 = arith.constant 0 : i32
    return %arg0, %c0_i32, %c0_i32_0 : i32, i32, i32
  }
  func.func @transform_3(%arg0: i32) -> (i32, i32, i32) {
    %c0_i32 = arith.constant 0 : i32
    %c0_i32_0 = arith.constant 0 : i32
    %c0_i32_1 = arith.constant 0 : i32
    return %arg0, %c0_i32, %c0_i32_0 : i32, i32, i32
  }
  func.func @transform_4(%arg0: i32) -> (i32, i32, i32) {
    %c0_i32 = arith.constant 0 : i32
    %c0_i32_0 = arith.constant 0 : i32
    %c0_i32_1 = arith.constant 0 : i32
    return %arg0, %c0_i32, %c0_i32_0 : i32, i32, i32
  }
  func.func @transform_5(%arg0: i32) -> (i32, i32, i32) {
    %c0_i32 = arith.constant 0 : i32
    %c0_i32_0 = arith.constant 0 : i32
    %c0_i32_1 = arith.constant 0 : i32
    return %arg0, %c0_i32, %c0_i32_0 : i32, i32, i32
  }
}

module attributes {stable_mosaic.version = 11 : i64} {
  func.func @_conv2_kernel(%arg0: i32, %arg1: memref<1x256x8xf32, #tpu.memory_space<vmem>>, %arg2: memref<1x8xf32, #tpu.memory_space<vmem>>, %arg3: memref<1x8xf32, #tpu.memory_space<vmem>>, %arg4: memref<72x8xf32, #tpu.memory_space<vmem>>, %arg5: memref<1x256x8xf32, #tpu.memory_space<vmem>>, %arg6: memref<1x2x8xf32, #tpu.memory_space<vmem>>, %arg7: memref<18x18x8xf32, #tpu.memory_space<vmem>>, %arg8: memref<256x72xf32, #tpu.memory_space<vmem>>) attributes {dimension_semantics = [#tpu.dimension_semantics<parallel>], iteration_bounds = array<i64: 2>, scalar_prefetch = 0 : i64, scratch_operands = 2 : i64, tpu.core_type = #tpu.core_type<tc>, window_params = [{transform_indices = @transform_0, window_bounds = array<i64: 1, 256, 8>}, {pipeline_mode = #tpu.pipeline_mode<synchronous>, transform_indices = @transform_1, window_bounds = array<i64: 1, 8>}, {pipeline_mode = #tpu.pipeline_mode<synchronous>, transform_indices = @transform_2, window_bounds = array<i64: 1, 8>}, {pipeline_mode = #tpu.pipeline_mode<synchronous>, transform_indices = @transform_3, window_bounds = array<i64: 72, 8>}, {transform_indices = @transform_4, window_bounds = array<i64: 1, 256, 8>}, {transform_indices = @transform_5, window_bounds = array<i64: 1, 2, 8>}]} {
    %cst = arith.constant 0.000000e+00 : f32
    %0 = vector.broadcast %cst : f32 to vector<1x18x8xf32>
    %c0 = arith.constant 0 : index
    %c0_0 = arith.constant 0 : index
    %c0_1 = arith.constant 0 : index
    %1 = vector.load %arg7[%c0, %c0_0, %c0_1] : memref<18x18x8xf32, #tpu.memory_space<vmem>>, vector<1x18x8xf32>
    tpu.vector_store %arg7[%c0, %c0_0, %c0_1], %0 {strides = array<i32>} : memref<18x18x8xf32, #tpu.memory_space<vmem>>, vector<1x18x8xf32>,
    %cst_2 = arith.constant 0.000000e+00 : f32
    %2 = vector.broadcast %cst_2 : f32 to vector<1x18x8xf32>
    %c17 = arith.constant 17 : index
    %c0_3 = arith.constant 0 : index
    %c0_4 = arith.constant 0 : index
    %3 = vector.load %arg7[%c17, %c0_3, %c0_4] : memref<18x18x8xf32, #tpu.memory_space<vmem>>, vector<1x18x8xf32>
    tpu.vector_store %arg7[%c17, %c0_3, %c0_4], %2 {strides = array<i32>} : memref<18x18x8xf32, #tpu.memory_space<vmem>>, vector<1x18x8xf32>,
    %cst_5 = arith.constant 0.000000e+00 : f32
    %4 = vector.broadcast %cst_5 : f32 to vector<18x1x8xf32>
    %c0_6 = arith.constant 0 : index
    %c0_7 = arith.constant 0 : index
    %c0_8 = arith.constant 0 : index
    %5 = vector.load %arg7[%c0_6, %c0_7, %c0_8] : memref<18x18x8xf32, #tpu.memory_space<vmem>>, vector<18x1x8xf32>
    tpu.vector_store %arg7[%c0_6, %c0_7, %c0_8], %4 {strides = array<i32>} : memref<18x18x8xf32, #tpu.memory_space<vmem>>, vector<18x1x8xf32>,
    %cst_9 = arith.constant 0.000000e+00 : f32
    %6 = vector.broadcast %cst_9 : f32 to vector<18x1x8xf32>
    %c0_10 = arith.constant 0 : index
    %c17_11 = arith.constant 17 : index
    %c0_12 = arith.constant 0 : index
    %7 = vector.load %arg7[%c0_10, %c17_11, %c0_12] : memref<18x18x8xf32, #tpu.memory_space<vmem>>, vector<18x1x8xf32>
    tpu.vector_store %arg7[%c0_10, %c17_11, %c0_12], %6 {strides = array<i32>} : memref<18x18x8xf32, #tpu.memory_space<vmem>>, vector<18x1x8xf32>,
    %c0_13 = arith.constant 0 : index
    %c0_14 = arith.constant 0 : index
    %c0_15 = arith.constant 0 : index
    %8 = vector.load %arg1[%c0_13, %c0_14, %c0_15] : memref<1x256x8xf32, #tpu.memory_space<vmem>>, vector<1x256x8xf32>
    %9 = vector.shape_cast %8 : vector<1x256x8xf32> to vector<256x8xf32>
    %c0_16 = arith.constant 0 : index
    %c0_17 = arith.constant 0 : index
    %10 = vector.load %arg2[%c0_16, %c0_17] : memref<1x8xf32, #tpu.memory_space<vmem>>, vector<1x8xf32>
    %11 = vector.broadcast %10 : vector<1x8xf32> to vector<256x8xf32>
    %12 = arith.mulf %9, %11 : vector<256x8xf32>
    %c0_18 = arith.constant 0 : index
    %c0_19 = arith.constant 0 : index
    %13 = vector.load %arg3[%c0_18, %c0_19] : memref<1x8xf32, #tpu.memory_space<vmem>>, vector<1x8xf32>
    %14 = vector.broadcast %13 : vector<1x8xf32> to vector<256x8xf32>
    %15 = arith.addf %12, %14 : vector<256x8xf32>
    %cst_20 = arith.constant 0.000000e+00 : f32
    %16 = vector.broadcast %cst_20 : f32 to vector<256x8xf32>
    %17 = arith.maximumf %15, %16 : vector<256x8xf32>
    %18 = vector.shape_cast %17 : vector<256x8xf32> to vector<16x16x8xf32>
    %c1 = arith.constant 1 : index
    %c1_21 = arith.constant 1 : index
    %c0_22 = arith.constant 0 : index
    %19 = vector.load %arg7[%c1, %c1_21, %c0_22] : memref<18x18x8xf32, #tpu.memory_space<vmem>>, vector<16x16x8xf32>
    tpu.vector_store %arg7[%c1, %c1_21, %c0_22], %18 {strides = array<i32>} : memref<18x18x8xf32, #tpu.memory_space<vmem>>, vector<16x16x8xf32>,
    %c0_23 = arith.constant 0 : index
    %c0_24 = arith.constant 0 : index
    %c0_25 = arith.constant 0 : index
    %20 = vector.load %arg7[%c0_23, %c0_24, %c0_25] : memref<18x18x8xf32, #tpu.memory_space<vmem>>, vector<16x16x8xf32>
    %21 = vector.shape_cast %20 : vector<16x16x8xf32> to vector<256x8xf32>
    %c0_26 = arith.constant 0 : index
    %c1_27 = arith.constant 1 : index
    %c0_28 = arith.constant 0 : index
    %22 = vector.load %arg7[%c0_26, %c1_27, %c0_28] : memref<18x18x8xf32, #tpu.memory_space<vmem>>, vector<16x16x8xf32>
    %23 = vector.shape_cast %22 : vector<16x16x8xf32> to vector<256x8xf32>
    %c0_29 = arith.constant 0 : index
    %c2 = arith.constant 2 : index
    %c0_30 = arith.constant 0 : index
    %24 = vector.load %arg7[%c0_29, %c2, %c0_30] : memref<18x18x8xf32, #tpu.memory_space<vmem>>, vector<16x16x8xf32>
    %25 = vector.shape_cast %24 : vector<16x16x8xf32> to vector<256x8xf32>
    %26 = tpu.concatenate %21, %23, %25 in 1 : vector<256x8xf32>, vector<256x8xf32>, vector<256x8xf32> -> vector<256x24xf32>
    %c0_31 = arith.constant 0 : index
    %c0_32 = arith.constant 0 : index
    %27 = vector.load %arg8[%c0_31, %c0_32] : memref<256x72xf32, #tpu.memory_space<vmem>>, vector<256x24xf32>
    tpu.vector_store %arg8[%c0_31, %c0_32], %26 {strides = array<i32>} : memref<256x72xf32, #tpu.memory_space<vmem>>, vector<256x24xf32>,
    %c1_33 = arith.constant 1 : index
    %c0_34 = arith.constant 0 : index
    %c0_35 = arith.constant 0 : index
    %28 = vector.load %arg7[%c1_33, %c0_34, %c0_35] : memref<18x18x8xf32, #tpu.memory_space<vmem>>, vector<16x16x8xf32>
    %29 = vector.shape_cast %28 : vector<16x16x8xf32> to vector<256x8xf32>
    %c1_36 = arith.constant 1 : index
    %c1_37 = arith.constant 1 : index
    %c0_38 = arith.constant 0 : index
    %30 = vector.load %arg7[%c1_36, %c1_37, %c0_38] : memref<18x18x8xf32, #tpu.memory_space<vmem>>, vector<16x16x8xf32>
    %31 = vector.shape_cast %30 : vector<16x16x8xf32> to vector<256x8xf32>
    %c1_39 = arith.constant 1 : index
    %c2_40 = arith.constant 2 : index
    %c0_41 = arith.constant 0 : index
    %32 = vector.load %arg7[%c1_39, %c2_40, %c0_41] : memref<18x18x8xf32, #tpu.memory_space<vmem>>, vector<16x16x8xf32>
    %33 = vector.shape_cast %32 : vector<16x16x8xf32> to vector<256x8xf32>
    %34 = tpu.concatenate %29, %31, %33 in 1 : vector<256x8xf32>, vector<256x8xf32>, vector<256x8xf32> -> vector<256x24xf32>
    %c0_42 = arith.constant 0 : index
    %c24 = arith.constant 24 : index
    %35 = vector.load %arg8[%c0_42, %c24] : memref<256x72xf32, #tpu.memory_space<vmem>>, vector<256x24xf32>
    tpu.vector_store %arg8[%c0_42, %c24], %34 {strides = array<i32>} : memref<256x72xf32, #tpu.memory_space<vmem>>, vector<256x24xf32>,
    %c2_43 = arith.constant 2 : index
    %c0_44 = arith.constant 0 : index
    %c0_45 = arith.constant 0 : index
    %36 = vector.load %arg7[%c2_43, %c0_44, %c0_45] : memref<18x18x8xf32, #tpu.memory_space<vmem>>, vector<16x16x8xf32>
    %37 = vector.shape_cast %36 : vector<16x16x8xf32> to vector<256x8xf32>
    %c2_46 = arith.constant 2 : index
    %c1_47 = arith.constant 1 : index
    %c0_48 = arith.constant 0 : index
    %38 = vector.load %arg7[%c2_46, %c1_47, %c0_48] : memref<18x18x8xf32, #tpu.memory_space<vmem>>, vector<16x16x8xf32>
    %39 = vector.shape_cast %38 : vector<16x16x8xf32> to vector<256x8xf32>
    %c2_49 = arith.constant 2 : index
    %c2_50 = arith.constant 2 : index
    %c0_51 = arith.constant 0 : index
    %40 = vector.load %arg7[%c2_49, %c2_50, %c0_51] : memref<18x18x8xf32, #tpu.memory_space<vmem>>, vector<16x16x8xf32>
    %41 = vector.shape_cast %40 : vector<16x16x8xf32> to vector<256x8xf32>
    %42 = tpu.concatenate %37, %39, %41 in 1 : vector<256x8xf32>, vector<256x8xf32>, vector<256x8xf32> -> vector<256x24xf32>
    %c0_52 = arith.constant 0 : index
    %c48 = arith.constant 48 : index
    %43 = vector.load %arg8[%c0_52, %c48] : memref<256x72xf32, #tpu.memory_space<vmem>>, vector<256x24xf32>
    tpu.vector_store %arg8[%c0_52, %c48], %42 {strides = array<i32>} : memref<256x72xf32, #tpu.memory_space<vmem>>, vector<256x24xf32>,
    %c0_53 = arith.constant 0 : index
    %c0_54 = arith.constant 0 : index
    %44 = vector.load %arg8[%c0_53, %c0_54] : memref<256x72xf32, #tpu.memory_space<vmem>>, vector<256x72xf32>
    %c0_55 = arith.constant 0 : index
    %c0_56 = arith.constant 0 : index
    %45 = vector.load %arg4[%c0_55, %c0_56] : memref<72x8xf32, #tpu.memory_space<vmem>>, vector<72x8xf32>
    %cst_57 = arith.constant dense<0.000000e+00> : vector<256x8xf32>
    %46 = tpu.matmul %44, %45, %cst_57 {dimension_numbers = #tpu.dot_dimension_numbers<[1], [0], [0], [1], [0, 0, 1, 1], [], []>} : vector<256x72xf32>, vector<72x8xf32>, vector<256x8xf32> -> vector<256x8xf32>
    %47 = vector.shape_cast %46 : vector<256x8xf32> to vector<1x256x8xf32>
    %c0_58 = arith.constant 0 : index
    %c0_59 = arith.constant 0 : index
    %c0_60 = arith.constant 0 : index
    %48 = vector.load %arg5[%c0_58, %c0_59, %c0_60] : memref<1x256x8xf32, #tpu.memory_space<vmem>>, vector<1x256x8xf32>
    tpu.vector_store %arg5[%c0_58, %c0_59, %c0_60], %47 {strides = array<i32>} : memref<1x256x8xf32, #tpu.memory_space<vmem>>, vector<1x256x8xf32>,
    %cst_61 = arith.constant dense<0.000000e+00> : vector<8xf32>
    %49 = vector.multi_reduction <add>, %46, %cst_61 [0] : vector<256x8xf32> to vector<8xf32>
    %50 = vector.shape_cast %49 : vector<8xf32> to vector<1x8xf32>
    %51 = vector.shape_cast %50 : vector<1x8xf32> to vector<1x1x8xf32>
    %c0_62 = arith.constant 0 : index
    %c0_63 = arith.constant 0 : index
    %c0_64 = arith.constant 0 : index
    %52 = vector.load %arg6[%c0_62, %c0_63, %c0_64] : memref<1x2x8xf32, #tpu.memory_space<vmem>>, vector<1x1x8xf32>
    tpu.vector_store %arg6[%c0_62, %c0_63, %c0_64], %51 {strides = array<i32>} : memref<1x2x8xf32, #tpu.memory_space<vmem>>, vector<1x1x8xf32>,
    %53 = arith.mulf %46, %46 : vector<256x8xf32>
    %cst_65 = arith.constant dense<0.000000e+00> : vector<8xf32>
    %54 = vector.multi_reduction <add>, %53, %cst_65 [0] : vector<256x8xf32> to vector<8xf32>
    %55 = vector.shape_cast %54 : vector<8xf32> to vector<1x8xf32>
    %56 = vector.shape_cast %55 : vector<1x8xf32> to vector<1x1x8xf32>
    %c0_66 = arith.constant 0 : index
    %c1_67 = arith.constant 1 : index
    %c0_68 = arith.constant 0 : index
    %57 = vector.load %arg6[%c0_66, %c1_67, %c0_68] : memref<1x2x8xf32, #tpu.memory_space<vmem>>, vector<1x1x8xf32>
    tpu.vector_store %arg6[%c0_66, %c1_67, %c0_68], %56 {strides = array<i32>} : memref<1x2x8xf32, #tpu.memory_space<vmem>>, vector<1x1x8xf32>,
    return
  }
  func.func @transform_0(%arg0: i32) -> (i32, i32, i32) {
    %c0_i32 = arith.constant 0 : i32
    %c0_i32_0 = arith.constant 0 : i32
    %c0_i32_1 = arith.constant 0 : i32
    return %arg0, %c0_i32, %c0_i32_0 : i32, i32, i32
  }
  func.func @transform_1(%arg0: i32) -> (i32, i32) {
    %c0_i32 = arith.constant 0 : i32
    %c0_i32_0 = arith.constant 0 : i32
    %c0_i32_1 = arith.constant 0 : i32
    return %c0_i32, %c0_i32_0 : i32, i32
  }
  func.func @transform_2(%arg0: i32) -> (i32, i32) {
    %c0_i32 = arith.constant 0 : i32
    %c0_i32_0 = arith.constant 0 : i32
    %c0_i32_1 = arith.constant 0 : i32
    return %c0_i32, %c0_i32_0 : i32, i32
  }
  func.func @transform_3(%arg0: i32) -> (i32, i32) {
    %c0_i32 = arith.constant 0 : i32
    %c0_i32_0 = arith.constant 0 : i32
    %c0_i32_1 = arith.constant 0 : i32
    return %c0_i32, %c0_i32_0 : i32, i32
  }
  func.func @transform_4(%arg0: i32) -> (i32, i32, i32) {
    %c0_i32 = arith.constant 0 : i32
    %c0_i32_0 = arith.constant 0 : i32
    %c0_i32_1 = arith.constant 0 : i32
    return %arg0, %c0_i32, %c0_i32_0 : i32, i32, i32
  }
  func.func @transform_5(%arg0: i32) -> (i32, i32, i32) {
    %c0_i32 = arith.constant 0 : i32
    %c0_i32_0 = arith.constant 0 : i32
    %c0_i32_1 = arith.constant 0 : i32
    return %arg0, %c0_i32, %c0_i32_0 : i32, i32, i32
  }
}

</mosaic_0001>

<bundles_post_ra>
// kernel: basic_block_forward.3
= control target key start
LH: loop header
LB: loop body
LE: loop exit
PB: predicated region body
PF: predicated region fallthrough
CT: control target
= control target key end

     0   :  { %s2952_s18 = smov 0   ;;  %s4744_s0 = inlined_call_operand.vmem [shape: f32[2,256,8], index: 0, kind: input, shape index: {}]   ;;  %s4745_s1 = inlined_call_operand.vmem [shape: f32[1,8], index: 1, kind: input, shape index: {}]   ;;  %s4746_s2 = inlined_call_operand.vmem [shape: f32[1,8], index: 2, kind: input, shape index: {}]   ;;  %s4747_s3 = inlined_call_operand.vmem [shape: f32[72,8], index: 3, kind: input, shape index: {}]   ;;  %s4748_s4 = inlined_call_operand.vmem [shape: f32[2,256,8], index: 4, kind: output, shape index: {0}]   ;;  %s4749_s5 = inlined_call_operand.vmem [shape: f32[2,2,8], index: 5, kind: output, shape index: {1}]  }
   0x1 LB: > { %s2715_s19 = sadd.s32 4294967295, %s2915_s18   ;;  %p2719_p0 = scmp.ge.s32.totalorder %s2915_s18, 1  ;;  %s2915_s18 = sphi %s2952_s18, %s16_s18  }
   0x2   : > { %p190_p1 = scmp.lt.s32.totalorder %s2915_s18, 3 }
   0x4   : > { %p191_p2 = pnand %p2719_p0, %p190_p1 }
   0x6   : > { %194 = sbr.rel (%p191_p2) target bundleno = 907 (0x38b), region = 36 }
   0xd   : > { %vm236_vm0 = vcmask 64512   ;;  %vm239_vm1 = vcmask 58368   ;;  %p2962_p3 = scmp.lt.s32.totalorder %s2715_s19, 1  ;;  %vm245_vm2 = vcmask 57344   ;;  %v2917_v0 = vmov 0.0   ;;  %s2918_s29 = smov 8  }
   0xe   : > { %237 = vst.msk [vmem:[#allocation2] sm:$0xff] %vm236_vm0, %v2917_v0  ;;  %238 = vst.msk [vmem:[#allocation2 + $0x8] sm:$0xff] %vm236_vm0, %v2917_v0  ;;  %v3016_v1 = vld [vmem:[%s4745_s1] ss:$0 sm:$0xff]  ;;  %s2919_s30 = smov 16   ;;  %vm841_vm3 = vcmask 130048  }
   0xf   : > { %242 = vst.msk [vmem:[#allocation2 + $0x198] sm:$0xff] %vm236_vm0, %v2917_v0  ;;  %243 = vst.msk [vmem:[#allocation2 + $0x1a0] sm:$0xff] %vm236_vm0, %v2917_v0  ;;  %s4890_s19 = smov (!%p2962_p3, %s2715_s19), 1  ;;  %v3028_v2 = vld [vmem:[%s4746_s2] ss:$0 sm:$0xff]  ;;  %vm874_vm4 = vcmask 195584  }
  0x10   : > { %240 = vst.msk [vmem:[#allocation2 + $0x10] sm:$0x3] %vm239_vm1, %v2917_v0  ;;  %244 = vst.msk [vmem:[#allocation2 + $0x1a8] sm:$0x3] %vm239_vm1, %v2917_v0  ;;  %s2761_s21 = sshll.u32 %s4890_s19, 8  ;;  %s2920_s25 = smov 24  }
  0x11   : > { %247 = vst.msk [vmem:[#allocation2 + $0x18] sm:$0x1] %vm245_vm2, %v2917_v0  ;;  %248 = vst.msk [vmem:[#allocation2 + $0x30] sm:$0x1] %vm245_vm2, %v2917_v0  ;;  %s3023_s26 = scalar_lea.vmem %s4744_s0, %s2761_s21  ;;  %vm1451_vm5 = vcmask 392384   ;;  %vm2029_vm6 = vcmask 589184   ;;  %s4605_s6 = scalar_lea.vmem %s4748_s4, %s2761_s21 }
  0x12   : > { %249 = vst.msk [vmem:[#allocation2 + $0x48] sm:$0x1] %vm245_vm2, %v2917_v0  ;;  %250 = vst.msk [vmem:[#allocation2 + $0x60] sm:$0x1] %vm245_vm2, %v2917_v0  ;;  %v284_v3 = vld [vmem:[%s3023_s26 + $0x10] sm:$0xff]  ;;  %v282_v4 = vld [vmem:[%s3023_s26] sm:$0xff] }
  0x13   : > { %251 = vst.msk [vmem:[#allocation2 + $0x78] sm:$0x1] %vm245_vm2, %v2917_v0  ;;  %252 = vst.msk [vmem:[#allocation2 + $0x90] sm:$0x1] %vm245_vm2, %v2917_v0  ;;  %v286_v5 = vld [vmem:[%s3023_s26 + $0x20] sm:$0xff]  ;;  %v323_v6 = vmul.f32 %v3016_v1, %v284_v3  ;;  %v321_v7 = vmul.f32 %v3016_v1, %v282_v4  ;;  %v283_v9 = vld [vmem:[%s3023_s26 + $0x8] sm:$0xff] }
  0x14   : > { %253 = vst.msk [vmem:[#allocation2 + $0xa8] sm:$0x1] %vm245_vm2, %v2917_v0  ;;  %254 = vst.msk [vmem:[#allocation2 + $0xc0] sm:$0x1] %vm245_vm2, %v2917_v0  ;;  %v325_v8 = vmul.f32 %v3016_v1, %v286_v5  ;;  %v288_v10 = vld [vmem:[%s3023_s26 + $0x30] sm:$0xff]  ;;  %v285_v11 = vld [vmem:[%s3023_s26 + $0x18] sm:$0xff]  ;;  %v322_v13 = vmul.f32 %v3016_v1, %v283_v9 }
  0x15   : > { %255 = vst.msk [vmem:[#allocation2 + $0xd8] sm:$0x1] %vm245_vm2, %v2917_v0  ;;  %256 = vst.msk [vmem:[#allocation2 + $0xf0] sm:$0x1] %vm245_vm2, %v2917_v0  ;;  %v489_v12 = vld [vmem:[#allocation2 + $0x1] sm:$0xff]  ;;  %v327_v14 = vmul.f32 %v3016_v1, %v288_v10  ;;  %v324_v15 = vmul.f32 %v3016_v1, %v285_v11  ;;  %v362_v18 = vadd.f32 %v3028_v2, %v323_v6  ;;  %v292_v27 = vld [vmem:[%s3023_s26 + $0x50] sm:$0xff] }
  0x16   : > { %257 = vst.msk [vmem:[#allocation2 + $0x108] sm:$0x1] %vm245_vm2, %v2917_v0  ;;  %258 = vst.msk [vmem:[#allocation2 + $0x120] sm:$0x1] %vm245_vm2, %v2917_v0  ;;  %v290_v16 = vld [vmem:[%s3023_s26 + $0x40] sm:$0xff]  ;;  %585 = vrot.lane.b32.xlu0 %v489_v12, %s2918_s29  ;;  %v360_v19 = vadd.f32 %v3028_v2, %v321_v7  ;;  %v364_v20 = vadd.f32 %v3028_v2, %v325_v8  ;;  %v287_v22 = vld [vmem:[%s3023_s26 + $0x28] sm:$0xff]  ;;  %v361_v23 = vadd.f32 %v3028_v2, %v322_v13 }
  0x17   : > { %259 = vst.msk [vmem:[#allocation2 + $0x138] sm:$0x1] %vm245_vm2, %v2917_v0  ;;  %260 = vst.msk [vmem:[#allocation2 + $0x150] sm:$0x1] %vm245_vm2, %v2917_v0  ;;  %v490_v17 = vld [vmem:[#allocation2 + $0x9] sm:$0xff]  ;;  %v329_v21 = vmul.f32 %v3016_v1, %v290_v16  ;;  %v366_v24 = vadd.f32 %v3028_v2, %v327_v14  ;;  %v363_v25 = vadd.f32 %v3028_v2, %v324_v15  ;;  %v289_v28 = vld [vmem:[%s3023_s26 + $0x38] sm:$0xff] }
  0x18   : > { %261 = vst.msk [vmem:[#allocation2 + $0x168] sm:$0x1] %vm245_vm2, %v2917_v0  ;;  %262 = vst.msk [vmem:[#allocation2 + $0x180] sm:$0x1] %vm245_vm2, %v2917_v0  ;;  %v326_v26 = vmul.f32 %v3016_v1, %v287_v22  ;;  %v294_v29 = vld [vmem:[%s3023_s26 + $0x60] sm:$0xff]  ;;  %v394_v30 = vmax.f32 %v362_v18, 0.0  ;;  %v331_v43 = vmul.f32 %v3016_v1, %v292_v27  ;;  %v328_v44 = vmul.f32 %v3016_v1, %v289_v28 }
  0x19   : > { %265 = vst.msk [vmem:[#allocation2 + $0x29] sm:$0x1] %vm245_vm2, %v2917_v0  ;;  %266 = vst.msk [vmem:[#allocation2 + $0x41] sm:$0x1] %vm245_vm2, %v2917_v0  ;;  %v392_v31 = vmax.f32 %v360_v19, 0.0  ;;  %v396_v32 = vmax.f32 %v364_v20, 0.0  ;;  %v368_v33 = vadd.f32 %v3028_v2, %v329_v21  ;;  %v333_v45 = vmul.f32 %v3016_v1, %v294_v29 }
  0x1a   : > { %267 = vst.msk [vmem:[#allocation2 + $0x59] sm:$0x1] %vm245_vm2, %v2917_v0  ;;  %268 = vst.msk [vmem:[#allocation2 + $0x71] sm:$0x1] %vm245_vm2, %v2917_v0  ;;  %v291_v34 = vld [vmem:[%s3023_s26 + $0x48] sm:$0xff]  ;;  %v296_v35 = vld [vmem:[%s3023_s26 + $0x70] sm:$0xff]  ;;  %v365_v40 = vadd.f32 %v3028_v2, %v326_v26  ;;  %587 = vrot.lane.b32.xlu0 %v490_v17, %s2918_s29  ;;  %v370_v51 = vadd.f32 %v3028_v2, %v331_v43  ;;  %v367_v52 = vadd.f32 %v3028_v2, %v328_v44 }
  0x1b   : > { %269 = vst.msk [vmem:[#allocation2 + $0x89] sm:$0x1] %vm245_vm2, %v2917_v0  ;;  %270 = vst.msk [vmem:[#allocation2 + $0xa1] sm:$0x1] %vm245_vm2, %v2917_v0  ;;  %v293_v36 = vld [vmem:[%s3023_s26 + $0x58] sm:$0xff]  ;;  %v393_v37 = vmax.f32 %v361_v23, 0.0  ;;  %v330_v48 = vmul.f32 %v3016_v1, %v291_v34  ;;  %v335_v49 = vmul.f32 %v3016_v1, %v296_v35  ;;  %v372_v53 = vadd.f32 %v3028_v2, %v333_v45 }
  0x1c   : > { %271 = vst.msk [vmem:[#allocation2 + $0xb9] sm:$0x1] %vm245_vm2, %v2917_v0  ;;  %272 = vst.msk [vmem:[#allocation2 + $0xd1] sm:$0x1] %vm245_vm2, %v2917_v0  ;;  %v398_v38 = vmax.f32 %v366_v24, 0.0  ;;  %v395_v39 = vmax.f32 %v363_v25, 0.0  ;;  %v332_v50 = vmul.f32 %v3016_v1, %v293_v36 }
  0x1d   : > { %273 = vst.msk [vmem:[#allocation2 + $0xe9] sm:$0x1] %vm245_vm2, %v2917_v0  ;;  %274 = vst.msk [vmem:[#allocation2 + $0x101] sm:$0x1] %vm245_vm2, %v2917_v0  ;;  %v298_v41 = vld [vmem:[%s3023_s26 + $0x80] sm:$0xff]  ;;  %v400_v42 = vmax.f32 %v368_v33, 0.0  ;;  %v369_v55 = vadd.f32 %v3028_v2, %v330_v48  ;;  %v374_v56 = vadd.f32 %v3028_v2, %v335_v49 }
  0x1e   : > { %275 = vst.msk [vmem:[#allocation2 + $0x119] sm:$0x1] %vm245_vm2, %v2917_v0  ;;  %276 = vst.msk [vmem:[#allocation2 + $0x131] sm:$0x1] %vm245_vm2, %v2917_v0  ;;  %v295_v46 = vld [vmem:[%s3023_s26 + $0x68] sm:$0xff]  ;;  %v397_v47 = vmax.f32 %v365_v40, 0.0  ;;  %v337_v54 = vmul.f32 %v3016_v1, %v298_v41  ;;  %v371_v57 = vadd.f32 %v3028_v2, %v332_v50 }
  0x1f   : > { %277 = vst.msk [vmem:[#allocation2 + $0x149] sm:$0x1] %vm245_vm2, %v2917_v0  ;;  %278 = vst.msk [vmem:[#allocation2 + $0x161] sm:$0x1] %vm245_vm2, %v2917_v0  ;;  %v334_v58 = vmul.f32 %v3016_v1, %v295_v46  ;;  %v300_v59 = vld [vmem:[%s3023_s26 + $0x90] sm:$0xff]  ;;  %v297_v60 = vld [vmem:[%s3023_s26 + $0x78] sm:$0xff] }
  0x20   : > { %279 = vst.msk [vmem:[#allocation2 + $0x179] sm:$0x1] %vm245_vm2, %v2917_v0  ;;  %280 = vst.msk [vmem:[#allocation2 + $0x191] sm:$0x1] %vm245_vm2, %v2917_v0  ;;  %v302_v61 = vld [vmem:[%s3023_s26 + $0xa0] sm:$0xff]  ;;  %v402_v62 = vmax.f32 %v370_v51, 0.0  ;;  %v376_v3 = vadd.f32 %v3028_v2, %v337_v54  ;;  %v339_v12 = vmul.f32 %v3016_v1, %v300_v59  ;;  %v336_v13 = vmul.f32 %v3016_v1, %v297_v60 }
  0x21   : > { %264 = vst.msk [vmem:[#allocation2 + $0x11] sm:$0x1] %vm245_vm2, %v2917_v0  ;;  %246 = vst.msk [vmem:[#allocation2] sm:$0x1] %vm245_vm2, %v2917_v0  ;;  %v399_v63 = vmax.f32 %v367_v52, 0.0  ;;  %v299_v4 = vld [vmem:[%s3023_s26 + $0x88] sm:$0xff]  ;;  %v373_v10 = vadd.f32 %v3028_v2, %v334_v58  ;;  %v341_v14 = vmul.f32 %v3016_v1, %v302_v61 }
  0x22   : > { %263 = vst.msk [vmem:[#allocation2 + $0x198] sm:$0x1] %vm245_vm2, %v2917_v0  ;;  %281 = vst.msk [vmem:[#allocation2 + $0x1a9] sm:$0x1] %vm245_vm2, %v2917_v0  ;;  %v404_v0 = vmax.f32 %v372_v53, 0.0  ;;  %v304_v5 = vld [vmem:[%s3023_s26 + $0xb0] sm:$0xff]  ;;  %v338_v19 = vmul.f32 %v3016_v1, %v299_v4  ;;  %v378_v23 = vadd.f32 %v3028_v2, %v339_v12  ;;  %v375_v24 = vadd.f32 %v3028_v2, %v336_v13 }
  0x23   : > { %427 = vst.msk [vmem:[#allocation2 + $0x31] sm:$0xff] %vm236_vm0, %v394_v30  ;;  %425 = vst.msk [vmem:[#allocation2 + $0x19] sm:$0xff] %vm236_vm0, %v392_v31  ;;  %v301_v6 = vld [vmem:[%s3023_s26 + $0x98] sm:$0xff]  ;;  %v401_v7 = vmax.f32 %v369_v55, 0.0  ;;  %v406_v8 = vmax.f32 %v374_v56, 0.0  ;;  %v403_v9 = vmax.f32 %v371_v57, 0.0  ;;  %v343_v20 = vmul.f32 %v3016_v1, %v304_v5 }
  0x24   : > { %429 = vst.msk [vmem:[#allocation2 + $0x49] sm:$0xff] %vm236_vm0, %v396_v32  ;;  %426 = vst.msk [vmem:[#allocation2 + $0x21] sm:$0xff] %vm236_vm0, %v393_v37  ;;  %v408_v11 = vmax.f32 %v376_v3, 0.0  ;;  %v306_v15 = vld [vmem:[%s3023_s26 + $0xc0] sm:$0xff]  ;;  %v405_v18 = vmax.f32 %v373_v10, 0.0  ;;  %v340_v21 = vmul.f32 %v3016_v1, %v301_v6  ;;  %v303_v22 = vld [vmem:[%s3023_s26 + $0xa8] sm:$0xff]  ;;  %v380_v25 = vadd.f32 %v3028_v2, %v341_v14 }
  0x25   : > { %431 = vst.msk [vmem:[#allocation2 + $0x61] sm:$0xff] %vm236_vm0, %v398_v38  ;;  %428 = vst.msk [vmem:[#allocation2 + $0x39] sm:$0xff] %vm236_vm0, %v395_v39  ;;  %v308_v26 = vld [vmem:[%s3023_s26 + $0xd0] sm:$0xff]  ;;  %v377_v29 = vadd.f32 %v3028_v2, %v338_v19  ;;  %v382_v30 = vadd.f32 %v3028_v2, %v343_v20  ;;  %v345_v32 = vmul.f32 %v3016_v1, %v306_v15  ;;  %v305_v33 = vld [vmem:[%s3023_s26 + $0xb8] sm:$0xff]  ;;  %v410_v34 = vmax.f32 %v378_v23, 0.0  ;;  %s2724_s21 = sshll.u32 %s4890_s19, 1 }
  0x26   : > { %433 = vst.msk [vmem:[#allocation2 + $0x79] sm:$0xff] %vm236_vm0, %v400_v42  ;;  %430 = vst.msk [vmem:[#allocation2 + $0x51] sm:$0xff] %vm236_vm0, %v397_v47  ;;  %v379_v31 = vadd.f32 %v3028_v2, %v340_v21  ;;  %v407_v35 = vmax.f32 %v375_v24, 0.0  ;;  %v412_v36 = vmax.f32 %v380_v25, 0.0  ;;  %v342_v37 = vmul.f32 %v3016_v1, %v303_v22  ;;  %v310_v38 = vld [vmem:[%s3023_s26 + $0xe0] sm:$0xff]  ;;  %v307_v39 = vld [vmem:[%s3023_s26 + $0xc8] sm:$0xff]  ;;  %s235_s9 = scalar_lea.vmem %s4749_s5, %s2724_s21 }
  0x27   : > { %435 = vst.msk [vmem:[#allocation2 + $0x91] sm:$0xff] %vm236_vm0, %v402_v62  ;;  %432 = vst.msk [vmem:[#allocation2 + $0x69] sm:$0xff] %vm236_vm0, %v399_v63  ;;  %v309_v40 = vld [vmem:[%s3023_s26 + $0xd8] sm:$0xff]  ;;  %v409_v41 = vmax.f32 %v377_v29, 0.0  ;;  %v414_v42 = vmax.f32 %v382_v30, 0.0  ;;  %v384_v44 = vadd.f32 %v3028_v2, %v345_v32  ;;  %v311_v45 = vld [vmem:[%s3023_s26 + $0xe8] sm:$0xff]  ;;  %v347_v47 = vmul.f32 %v3016_v1, %v308_v26 }
  0x28   : > { %437 = vst.msk [vmem:[#allocation2 + $0xa9] sm:$0xff] %vm236_vm0, %v404_v0  ;;  %434 = vst.msk [vmem:[#allocation2 + $0x81] sm:$0xff] %vm236_vm0, %v401_v7  ;;  %v411_v43 = vmax.f32 %v379_v31, 0.0  ;;  %v381_v46 = vadd.f32 %v3028_v2, %v342_v37  ;;  %v344_v48 = vmul.f32 %v3016_v1, %v305_v33  ;;  %v349_v52 = vmul.f32 %v3016_v1, %v310_v38  ;;  %v521_v33 = vld [vmem:[#allocation2 + $0x2] sm:$0xff]  ;;  %v522_v38 = vld [vmem:[#allocation2 + $0xa] sm:$0xff] }
  0x29   : > { %439 = vst.msk [vmem:[#allocation2 + $0xc1] sm:$0xff] %vm236_vm0, %v406_v8  ;;  %436 = vst.msk [vmem:[#allocation2 + $0x99] sm:$0xff] %vm236_vm0, %v403_v9  ;;  %v416_v51 = vmax.f32 %v384_v44, 0.0  ;;  %v346_v53 = vmul.f32 %v3016_v1, %v307_v39  ;;  %v348_v54 = vmul.f32 %v3016_v1, %v309_v40  ;;  %v386_v56 = vadd.f32 %v3028_v2, %v347_v47 }
  0x2a   : > { %v3101_v16 = vld [vmem:[#allocation2 + $0x31] sm:$0xff]  ;;  %v3103_v17 = vld [vmem:[#allocation2 + $0x19] sm:$0xff]  ;;  %441 = vst.msk [vmem:[#allocation2 + $0xd9] sm:$0xff] %vm236_vm0, %v408_v11  ;;  %438 = vst.msk [vmem:[#allocation2 + $0xb1] sm:$0xff] %vm236_vm0, %v405_v18  ;;  %v413_v55 = vmax.f32 %v381_v46, 0.0  ;;  %v383_v57 = vadd.f32 %v3028_v2, %v344_v48  ;;  %v350_v58 = vmul.f32 %v3016_v1, %v311_v45  ;;  %v388_v59 = vadd.f32 %v3028_v2, %v349_v52 }
  0x2b   : > { %593 = vrot.lane.b32.xlu0 %v3101_v16, %s2918_s29  ;;  %589 = vrot.lane.b32.xlu1 %v3103_v17, %s2918_s29  ;;  %v3121_v27 = vld [vmem:[#allocation2 + $0x49] sm:$0xff]  ;;  %v3123_v28 = vld [vmem:[#allocation2 + $0x21] sm:$0xff]  ;;  %443 = vst.msk [vmem:[#allocation2 + $0xf1] sm:$0xff] %vm236_vm0, %v410_v34  ;;  %440 = vst.msk [vmem:[#allocation2 + $0xc9] sm:$0xff] %vm236_vm0, %v407_v35  ;;  %v385_v60 = vadd.f32 %v3028_v2, %v346_v53  ;;  %v387_v61 = vadd.f32 %v3028_v2, %v348_v54  ;;  %v418_v62 = vmax.f32 %v386_v56, 0.0  ;;  %vm2103_vm7 = vcmask 588800  }
  0x2c   : > { %445 = vst.msk [vmem:[#allocation2 + $0x109] sm:$0xff] %vm236_vm0, %v412_v36  ;;  %v3147_v49 = vld [vmem:[#allocation2 + $0x61] sm:$0xff]  ;;  %v3149_v50 = vld [vmem:[#allocation2 + $0x39] sm:$0xff]  ;;  %442 = vst.msk [vmem:[#allocation2 + $0xe1] sm:$0xff] %vm236_vm0, %v409_v41  ;;  %v415_v63 = vmax.f32 %v383_v57, 0.0  ;;  %v389_v0 = vadd.f32 %v3028_v2, %v350_v58  ;;  %v420_v5 = vmax.f32 %v388_v59, 0.0 }
  0x2d   : > { %447 = vst.msk [vmem:[#allocation2 + $0x121] sm:$0xff] %vm236_vm0, %v414_v42  ;;  %444 = vst.msk [vmem:[#allocation2 + $0xf9] sm:$0xff] %vm236_vm0, %v411_v43  ;;  %v3170_v3 = vld [vmem:[#allocation2 + $0x79] sm:$0xff]  ;;  %v3172_v4 = vld [vmem:[#allocation2 + $0x51] sm:$0xff]  ;;  %v417_v6 = vmax.f32 %v385_v60, 0.0  ;;  %v419_v7 = vmax.f32 %v387_v61, 0.0 }
  0x2e   : > { %449 = vst.msk [vmem:[#allocation2 + $0x139] sm:$0xff] %vm236_vm0, %v416_v51  ;;  %446 = vst.msk [vmem:[#allocation2 + $0x111] sm:$0xff] %vm236_vm0, %v413_v55  ;;  %v421_v8 = vmax.f32 %v389_v0, 0.0  ;;  %v3184_v9 = vld [vmem:[#allocation2 + $0x91] sm:$0xff]  ;;  %v3186_v10 = vld [vmem:[#allocation2 + $0x69] sm:$0xff] }
  0x2f   : > { %597 = vrot.lane.b32.xlu0 %v3121_v27, %s2918_s29  ;;  %591 = vrot.lane.b32.xlu1 %v3123_v28, %s2918_s29  ;;  %451 = vst.msk [vmem:[#allocation2 + $0x151] sm:$0xff] %vm236_vm0, %v418_v62  ;;  %448 = vst.msk [vmem:[#allocation2 + $0x129] sm:$0xff] %vm236_vm0, %v415_v63  ;;  %v3192_v11 = vld [vmem:[#allocation2 + $0xa9] sm:$0xff]  ;;  %v3194_v12 = vld [vmem:[#allocation2 + $0x81] sm:$0xff] }
  0x30   : > { %453 = vst.msk [vmem:[#allocation2 + $0x169] sm:$0xff] %vm236_vm0, %v420_v5  ;;  %450 = vst.msk [vmem:[#allocation2 + $0x141] sm:$0xff] %vm236_vm0, %v417_v6  ;;  %v3200_v13 = vld [vmem:[#allocation2 + $0xc1] sm:$0xff]  ;;  %v3202_v14 = vld [vmem:[#allocation2 + $0x99] sm:$0xff] }
  0x31   : > { %452 = vst.msk [vmem:[#allocation2 + $0x159] sm:$0xff] %vm236_vm0, %v419_v7  ;;  %454 = vst.msk [vmem:[#allocation2 + $0x171] sm:$0xff] %vm236_vm0, %v421_v8  ;;  %v3208_v15 = vld [vmem:[#allocation2 + $0xd9] sm:$0xff]  ;;  %v3210_v18 = vld [vmem:[#allocation2 + $0xb1] sm:$0xff] }
  0x32   : > { %v3216_v19 = vld [vmem:[#allocation2 + $0xf1] sm:$0xff]  ;;  %v3218_v20 = vld [vmem:[#allocation2 + $0xc9] sm:$0xff]  ;;  %v523_v35 = vld [vmem:[#allocation2 + $0x1a] sm:$0xff] }
  0x33   : > { %601 = vrot.lane.b32.xlu0 %v3147_v49, %s2918_s29  ;;  %595 = vrot.lane.b32.xlu1 %v3149_v50, %s2918_s29  ;;  %v3224_v21 = vld [vmem:[#allocation2 + $0x109] sm:$0xff]  ;;  %v3226_v22 = vld [vmem:[#allocation2 + $0xe1] sm:$0xff]  ;;  %v525_v37 = vld [vmem:[#allocation2 + $0x32] sm:$0xff] }
  0x34   : > { %v3232_v23 = vld [vmem:[#allocation2 + $0x121] sm:$0xff]  ;;  %v3234_v24 = vld [vmem:[#allocation2 + $0xf9] sm:$0xff]  ;;  %v527_v39 = vld [vmem:[#allocation2 + $0x4a] sm:$0xff] }
  0x35   : > { %v515_v25 = vld [vmem:[#allocation2 + $0x139] sm:$0xff]  ;;  %v3240_v26 = vld [vmem:[#allocation2 + $0x111] sm:$0xff]  ;;  %v524_v40 = vld [vmem:[#allocation2 + $0x22] sm:$0xff] }
  0x36   : > { %v517_v29 = vld [vmem:[#allocation2 + $0x151] sm:$0xff]  ;;  %v3245_v30 = vld [vmem:[#allocation2 + $0x129] sm:$0xff]  ;;  %v526_v42 = vld [vmem:[#allocation2 + $0x3a] sm:$0xff] }
  0x37   : > { %605 = vrot.lane.b32.xlu0 %v3170_v3, %s2918_s29  ;;  %599 = vrot.lane.b32.xlu1 %v3172_v4, %s2918_s29  ;;  %v519_v31 = vld [vmem:[#allocation2 + $0x169] sm:$0xff]  ;;  %v3250_v32 = vld [vmem:[#allocation2 + $0x141] sm:$0xff]  ;;  %v528_v44 = vld [vmem:[#allocation2 + $0x52] sm:$0xff] }
  0x38   : > { %v518_v34 = vld [vmem:[#allocation2 + $0x159] sm:$0xff]  ;;  %v520_v36 = vld [vmem:[#allocation2 + $0x171] sm:$0xff]  ;;  %v529_v41 = vld [vmem:[#allocation2 + $0x62] sm:$0xff] }
  0x39   : > { %v3265_v43 = vld [vmem:[#allocation2 + $0x7a] sm:$0xff]  ;;  %v3270_v45 = vld [vmem:[#allocation2 + $0x92] sm:$0xff]  ;;  %v530_v46 = vld [vmem:[#allocation2 + $0x6a] sm:$0xff] }
  0x3a   : > { %v532_v47 = vld [vmem:[#allocation2 + $0x82] sm:$0xff]  ;;  %v3278_v48 = vld [vmem:[#allocation2 + $0x9a] sm:$0xff] }
  0x3b   : > { %609 = vrot.lane.b32.xlu0 %v3184_v9, %s2918_s29  ;;  %603 = vrot.lane.b32.xlu1 %v3186_v10, %s2918_s29 }
  0x3f   : > { %613 = vrot.lane.b32.xlu0 %v3192_v11, %s2918_s29  ;;  %607 = vrot.lane.b32.xlu1 %v3194_v12, %s2918_s29 }
  0x43   : > { %617 = vrot.lane.b32.xlu0 %v3200_v13, %s2918_s29  ;;  %611 = vrot.lane.b32.xlu1 %v3202_v14, %s2918_s29 }
  0x47   : > { %621 = vrot.lane.b32.xlu0 %v3208_v15, %s2918_s29  ;;  %615 = vrot.lane.b32.xlu1 %v3210_v18, %s2918_s29 }
  0x4b   : > { %625 = vrot.lane.b32.xlu0 %v3216_v19, %s2918_s29  ;;  %619 = vrot.lane.b32.xlu1 %v3218_v20, %s2918_s29 }
  0x4f   : > { %629 = vrot.lane.b32.xlu0 %v3224_v21, %s2918_s29  ;;  %623 = vrot.lane.b32.xlu1 %v3226_v22, %s2918_s29 }
  0x53   : > { %633 = vrot.lane.b32.xlu0 %v3232_v23, %s2918_s29  ;;  %627 = vrot.lane.b32.xlu1 %v3234_v24, %s2918_s29 }
  0x57   : > { %637 = vrot.lane.b32.xlu0 %v515_v25, %s2918_s29  ;;  %631 = vrot.lane.b32.xlu1 %v3240_v26, %s2918_s29 }
  0x5b   : > { %641 = vrot.lane.b32.xlu0 %v517_v29, %s2918_s29  ;;  %635 = vrot.lane.b32.xlu1 %v3245_v30, %s2918_s29 }
  0x5f   : > { %645 = vrot.lane.b32.xlu0 %v519_v31, %s2918_s29  ;;  %639 = vrot.lane.b32.xlu1 %v3250_v32, %s2918_s29  ;;  %v457_v31 = vld [vmem:[#allocation2] sm:$0xff] }
  0x63   : > { %713 = vrot.lane.b32.xlu0 %v521_v33, %s2919_s30  ;;  %643 = vrot.lane.b32.xlu1 %v518_v34, %s2918_s29 }
  0x67   : > { %717 = vrot.lane.b32.xlu0 %v523_v35, %s2919_s30  ;;  %647 = vrot.lane.b32.xlu1 %v520_v36, %s2918_s29 }
  0x6b   : > { %721 = vrot.lane.b32.xlu0 %v525_v37, %s2919_s30  ;;  %715 = vrot.lane.b32.xlu1 %v522_v38, %s2919_s30 }
  0x6f   : > { %725 = vrot.lane.b32.xlu0 %v527_v39, %s2919_s30  ;;  %719 = vrot.lane.b32.xlu1 %v524_v40, %s2919_s30 }
  0x73   : > { %729 = vrot.lane.b32.xlu0 %v529_v41, %s2919_s30  ;;  %723 = vrot.lane.b32.xlu1 %v526_v42, %s2919_s30 }
  0x77   : > { %733 = vrot.lane.b32.xlu0 %v3265_v43, %s2919_s30  ;;  %727 = vrot.lane.b32.xlu1 %v528_v44, %s2919_s30 }
  0x7b   : > { %737 = vrot.lane.b32.xlu0 %v3270_v45, %s2919_s30  ;;  %731 = vrot.lane.b32.xlu1 %v530_v46, %s2919_s30 }
  0x7f   : > { %1035 = vrot.lane.b32.xlu0 %v3103_v17, %s2918_s29  ;;  %735 = vrot.lane.b32.xlu1 %v532_v47, %s2919_s30 }
  0x83   : > { %1163 = vrot.lane.b32.xlu0 %v523_v35, %s2919_s30  ;;  %739 = vrot.lane.b32.xlu1 %v3278_v48, %s2919_s30  ;;  %v3412_v35 = vld [vmem:[#allocation2 + $0x18] sm:$0xff] }
  0x87   : > { %1165 = vrot.lane.b32.xlu0 %v524_v40, %s2919_s30  ;;  %1037 = vrot.lane.b32.xlu1 %v3123_v28, %s2918_s29 }
  0x88   : > { %v3293_v17 = vpop.permute.xlu0 %585 }
  0x89   : > { %v809_v33 = vsel %vm236_vm0, %v457_v31, %v3293_v17  ;;  %v3444_v31 = vld [vmem:[#allocation2 + $0x48] sm:$0xff] }
  0x8b   : > { %1741 = vrot.lane.b32.xlu0 %v525_v37, %s2919_s30  ;;  %1613 = vrot.lane.b32.xlu1 %v3101_v16, %s2918_s29 }
  0x8c   : > { %v3300_v28 = vpop.permute.xlu0 %587 }
  0x8f   : > { %1039 = vrot.lane.b32.xlu0 %v3101_v16, %s2918_s29  ;;  %1615 = vrot.lane.b32.xlu1 %v3149_v50, %s2918_s29 }
  0x93   : > { %1167 = vrot.lane.b32.xlu0 %v525_v37, %s2919_s30  ;;  %1743 = vrot.lane.b32.xlu1 %v526_v42, %s2919_s30  ;;  %v3420_v37 = vld [vmem:[#allocation2 + $0xaa] sm:$0xff] }
  0x94   : > { %4788 = vst [vmem:[#allocation21_spill] sm:$0xff] %v3420_v37 }
  0x97   : > { %1169 = vrot.lane.b32.xlu0 %v526_v42, %s2919_s30  ;;  %1041 = vrot.lane.b32.xlu1 %v3149_v50, %s2918_s29  ;;  %v3427_v42 = vld [vmem:[#allocation2 + $0x30] sm:$0xff] }
  0x9b   : > { %1745 = vrot.lane.b32.xlu0 %v527_v39, %s2919_s30  ;;  %1617 = vrot.lane.b32.xlu1 %v3121_v27, %s2918_s29 }
  0x9d   : > { %v3305_v16 = vpop.permute.xlu0 %593  ;;  %v3307_v51 = vpop.permute.xlu1 %589 }
  0x9e   : > { %v811_v38 = vsel %vm236_vm0, %v3412_v35, %v3307_v51 }
  0x9f   : > { %1043 = vrot.lane.b32.xlu0 %v3121_v27, %s2918_s29  ;;  %1619 = vrot.lane.b32.xlu1 %v3172_v4, %s2918_s29 }
  0xa1   : > { %v3313_v52 = vpop.permute.xlu0 %597  ;;  %v3315_v50 = vpop.permute.xlu1 %591 }
  0xa3   : > { %1171 = vrot.lane.b32.xlu0 %v527_v39, %s2919_s30  ;;  %1747 = vrot.lane.b32.xlu1 %v528_v44, %s2919_s30 }
  0xa5   : > { %v3319_v53 = vpop.permute.xlu0 %601  ;;  %v3321_v54 = vpop.permute.xlu1 %595 }
  0xa7   : > { %1173 = vrot.lane.b32.xlu0 %v528_v44, %s2919_s30  ;;  %1045 = vrot.lane.b32.xlu1 %v3172_v4, %s2918_s29  ;;  %v313_v44 = vld [vmem:[%s3023_s26 + $0xf8] sm:$0xff] }
  0xa8   : > { %v352_v51 = vmul.f32 %v3016_v1, %v313_v44  ;;  %v3466_v44 = vld [vmem:[#allocation2 + $0x60] sm:$0xff] }
  0xa9   : > { %v3326_v27 = vpop.permute.xlu0 %605  ;;  %v3328_v55 = vpop.permute.xlu1 %599 }
  0xab   : > { %1749 = vrot.lane.b32.xlu0 %v529_v41, %s2919_s30  ;;  %1621 = vrot.lane.b32.xlu1 %v3147_v49, %s2918_s29 }
  0xad   : > { %v3333_v56 = vpop.permute.xlu0 %609  ;;  %v3335_v57 = vpop.permute.xlu1 %603 }
  0xaf   : > { %1047 = vrot.lane.b32.xlu0 %v3147_v49, %s2918_s29  ;;  %1623 = vrot.lane.b32.xlu1 %v3186_v10, %s2918_s29 }
  0xb1   : > { %v3341_v58 = vpop.permute.xlu0 %613  ;;  %v3343_v59 = vpop.permute.xlu1 %607 }
  0xb2   : > { %4771 = vst [vmem:[#allocation4_spill] sm:$0xff] %v3341_v58 }
  0xb3   : > { %1175 = vrot.lane.b32.xlu0 %v529_v41, %s2919_s30  ;;  %1751 = vrot.lane.b32.xlu1 %v530_v46, %s2919_s30  ;;  %v458_v41 = vld [vmem:[#allocation2 + $0x8] sm:$0xff] }
  0xb5   : > { %v3347_v60 = vpop.permute.xlu0 %617  ;;  %v3349_v61 = vpop.permute.xlu1 %611 }
  0xb6   : > { %4772 = vst [vmem:[#allocation5_spill] sm:$0xff] %v3347_v60  ;;  %v1539_v60 = vld [vmem:[#allocation2 + $0x139] sm:$0xff] }
  0xb7   : > { %1177 = vrot.lane.b32.xlu0 %v530_v46, %s2919_s30  ;;  %1049 = vrot.lane.b32.xlu1 %v3186_v10, %s2918_s29  ;;  %v813_v46 = vsel %vm236_vm0, %v3427_v42, %v3305_v16  ;;  %v3458_v16 = vld [vmem:[#allocation2 + $0xb2] sm:$0xff] }
  0xb8   : > { %4790 = vst [vmem:[#allocation23_spill] sm:$0xff] %v3458_v16 }
  0xb9   : > { %v3354_v49 = vpop.permute.xlu0 %621  ;;  %v3356_v62 = vpop.permute.xlu1 %615 }
  0xba   : > { %4773 = vst [vmem:[#allocation6_spill] sm:$0xff] %v3354_v49  ;;  %4774 = vst [vmem:[#allocation7_spill] sm:$0xff] %v3356_v62 }
  0xbb   : > { %1753 = vrot.lane.b32.xlu0 %v3265_v43, %s2919_s30  ;;  %1625 = vrot.lane.b32.xlu1 %v3170_v3, %s2918_s29 }
  0xbd   : > { %v3362_v63 = vpop.permute.xlu0 %625  ;;  %v3364_v0 = vpop.permute.xlu1 %619 }
  0xbe   : > { %4775 = vst [vmem:[#allocation8_spill] sm:$0xff] %v3362_v63  ;;  %4776 = vst [vmem:[#allocation9_spill] sm:$0xff] %v3364_v0 }
  0xbf   : > { %1051 = vrot.lane.b32.xlu0 %v3170_v3, %s2918_s29  ;;  %1627 = vrot.lane.b32.xlu1 %v3194_v12, %s2918_s29 }
  0xc1   : > { %v3370_v4 = vpop.permute.xlu0 %629  ;;  %v3372_v5 = vpop.permute.xlu1 %623 }
  0xc2   : > { %4777 = vst [vmem:[#allocation10_spill] sm:$0xff] %v3370_v4  ;;  %4778 = vst [vmem:[#allocation11_spill] sm:$0xff] %v3372_v5 }
  0xc3   : > { %1179 = vrot.lane.b32.xlu0 %v3265_v43, %s2919_s30  ;;  %1755 = vrot.lane.b32.xlu1 %v532_v47, %s2919_s30 }
  0xc5   : > { %v3377_v6 = vpop.permute.xlu0 %633  ;;  %v3379_v7 = vpop.permute.xlu1 %627 }
  0xc6   : > { %4779 = vst [vmem:[#allocation12_spill] sm:$0xff] %v3377_v6  ;;  %4780 = vst [vmem:[#allocation13_spill] sm:$0xff] %v3379_v7 }
  0xc7   : > { %1181 = vrot.lane.b32.xlu0 %v532_v47, %s2919_s30  ;;  %1053 = vrot.lane.b32.xlu1 %v3194_v12, %s2918_s29 }
  0xc9   : > { %v3384_v3 = vpop.permute.xlu0 %637  ;;  %v3386_v8 = vpop.permute.xlu1 %631 }
  0xca   : > { %4781 = vst [vmem:[#allocation14_spill] sm:$0xff] %v3384_v3  ;;  %4782 = vst [vmem:[#allocation15_spill] sm:$0xff] %v3386_v8 }
  0xcb   : > { %1757 = vrot.lane.b32.xlu0 %v3270_v45, %s2919_s30  ;;  %1629 = vrot.lane.b32.xlu1 %v3184_v9, %s2918_s29 }
  0xcd   : > { %v3392_v10 = vpop.permute.xlu0 %641  ;;  %v3394_v25 = vpop.permute.xlu1 %635 }
  0xce   : > { %4783 = vst [vmem:[#allocation16_spill] sm:$0xff] %v3392_v10  ;;  %4784 = vst [vmem:[#allocation17_spill] sm:$0xff] %v3394_v25 }
  0xcf   : > { %1055 = vrot.lane.b32.xlu0 %v3184_v9, %s2918_s29  ;;  %1631 = vrot.lane.b32.xlu1 %v3202_v14, %s2918_s29 }
  0xd1   : > { %v3400_v12 = vpop.permute.xlu0 %645  ;;  %v3402_v29 = vpop.permute.xlu1 %639 }
  0xd2   : > { %4785 = vst [vmem:[#allocation18_spill] sm:$0xff] %v3400_v12  ;;  %4786 = vst [vmem:[#allocation19_spill] sm:$0xff] %v3402_v29 }
  0xd3   : > { %1183 = vrot.lane.b32.xlu0 %v3270_v45, %s2919_s30  ;;  %1759 = vrot.lane.b32.xlu1 %v3278_v48, %s2919_s30  ;;  %v810_v45 = vsel %vm236_vm0, %v458_v41, %v3300_v28  ;;  %v391_v28 = vadd.f32 %v3028_v2, %v352_v51  ;;  %v3488_v51 = vld [vmem:[#allocation2 + $0x50] sm:$0xff] }
  0xd5   : > { %v714_v9 = vpop.permute.xlu0 %713  ;;  %v3410_v34 = vpop.permute.xlu1 %643 }
  0xd6   : > { %4787 = vst [vmem:[#allocation20_spill] sm:$0xff] %v3410_v34  ;;  %v842_v36 = vsel %vm841_vm3, %v809_v33, %v714_v9  ;;  %v3446_v33 = vld [vmem:[#allocation2 + $0x20] sm:$0xff] }
  0xd7   : > { %875 = vst.msk [vmem:[#allocation3] sm:$0xff] %vm874_vm4, %v842_v36  ;;  %1185 = vrot.lane.b32.xlu0 %v3278_v48, %s2919_s30  ;;  %1057 = vrot.lane.b32.xlu1 %v3202_v14, %s2918_s29  ;;  %v312_v14 = vld [vmem:[%s3023_s26 + $0xf0] sm:$0xff]  ;;  %s2921_s26 = smov 48  }
  0xd8   : > { %v351_v17 = vmul.f32 %v3016_v1, %v312_v14  ;;  %v423_v14 = vmax.f32 %v391_v28, 0.0 }
  0xd9   : > { %v718_v39 = vpop.permute.xlu0 %717  ;;  %v3425_v40 = vpop.permute.xlu1 %647 }
  0xda   : > { %4789 = vst [vmem:[#allocation22_spill] sm:$0xff] %v3425_v40  ;;  %v844_v43 = vsel %vm841_vm3, %v811_v38, %v718_v39  ;;  %v390_v1 = vadd.f32 %v3028_v2, %v351_v17  ;;  %v815_v38 = vsel %vm236_vm0, %v3444_v31, %v3313_v52  ;;  %v812_v39 = vsel %vm236_vm0, %v3446_v33, %v3315_v50  ;;  %v3486_v17 = vld [vmem:[#allocation2 + $0x78] sm:$0xff] }
  0xdb   : > { %877 = vst.msk [vmem:[#allocation3 + $0x10] sm:$0xff] %vm874_vm4, %v844_v43  ;;  %1761 = vrot.lane.b32.xlu0 %v3420_v37, %s2919_s30  ;;  %1633 = vrot.lane.b32.xlu1 %v3192_v11, %s2918_s29  ;;  %v817_v52 = vsel %vm236_vm0, %v3466_v44, %v3319_v53  ;;  %v3498_v53 = vld [vmem:[#allocation2 + $0xc2] sm:$0xff] }
  0xdc   : > { %456 = vst.msk [vmem:[#allocation2 + $0x189] sm:$0xff] %vm236_vm0, %v423_v14  ;;  %4791 = vst [vmem:[#allocation24_spill] sm:$0xff] %v3498_v53 }
  0xdd   : > { %v722_v47 = vpop.permute.xlu0 %721  ;;  %v716_v48 = vpop.permute.xlu1 %715 }
  0xde   : > { %v846_v9 = vsel %vm841_vm3, %v813_v46, %v722_v47  ;;  %v843_v36 = vsel %vm841_vm3, %v810_v45, %v716_v48  ;;  %v3468_v45 = vld [vmem:[#allocation2 + $0x38] sm:$0xff] }
  0xdf   : > { %879 = vst.msk [vmem:[#allocation3 + $0x20] sm:$0xff] %vm874_vm4, %v846_v9  ;;  %876 = vst.msk [vmem:[#allocation3 + $0x8] sm:$0xff] %vm874_vm4, %v843_v36  ;;  %1059 = vrot.lane.b32.xlu0 %v3192_v11, %s2918_s29  ;;  %1635 = vrot.lane.b32.xlu1 %v3210_v18, %s2918_s29  ;;  %v422_v11 = vmax.f32 %v390_v1, 0.0  ;;  %v814_v50 = vsel %vm236_vm0, %v3468_v45, %v3321_v54  ;;  %v819_v54 = vsel %vm236_vm0, %v3486_v17, %v3326_v27 }
  0xe0   : > { %v816_v1 = vsel %vm236_vm0, %v3488_v51, %v3328_v55 }
  0xe1   : > { %v726_v41 = vpop.permute.xlu0 %725  ;;  %v720_v43 = vpop.permute.xlu1 %719  ;;  %455 = vst.msk [vmem:[#allocation2 + $0x181] sm:$0xff] %vm236_vm0, %v422_v11 }
  0xe2   : > { %v848_v2 = vsel %vm841_vm3, %v815_v38, %v726_v41  ;;  %v845_v46 = vsel %vm841_vm3, %v812_v39, %v720_v43  ;;  %v3506_v39 = vld [vmem:[#allocation2 + $0x90] sm:$0xff]  ;;  %v3508_v41 = vld [vmem:[#allocation2 + $0x68] sm:$0xff] }
  0xe3   : > { %881 = vst.msk [vmem:[#allocation3 + $0x30] sm:$0xff] %vm874_vm4, %v848_v2  ;;  %878 = vst.msk [vmem:[#allocation3 + $0x18] sm:$0xff] %vm874_vm4, %v845_v46  ;;  %1187 = vrot.lane.b32.xlu0 %v3420_v37, %s2919_s30  ;;  %1763 = vrot.lane.b32.xlu1 %v3458_v16, %s2919_s30  ;;  %v821_v27 = vsel %vm236_vm0, %v3506_v39, %v3333_v56  ;;  %v818_v55 = vsel %vm236_vm0, %v3508_v41, %v3335_v57  ;;  %v3524_v2 = vld [vmem:[#allocation2 + $0x80] sm:$0xff]  ;;  %v3534_v56 = vld [vmem:[#allocation2 + $0xca] sm:$0xff] }
  0xe4   : > { %4792 = vst [vmem:[#allocation25_spill] sm:$0xff] %v3534_v56  ;;  %v820_v57 = vsel %vm236_vm0, %v3524_v2, %v3343_v59 }
  0xe5   : > { %v730_v47 = vpop.permute.xlu0 %729  ;;  %v724_v48 = vpop.permute.xlu1 %723 }
  0xe6   : > { %v850_v9 = vsel %vm841_vm3, %v817_v52, %v730_v47  ;;  %v847_v36 = vsel %vm841_vm3, %v814_v50, %v724_v48  ;;  %v3541_v48 = vld [vmem:[#allocation2 + $0x98] sm:$0xff] }
  0xe7   : > { %883 = vst.msk [vmem:[#allocation3 + $0x40] sm:$0xff] %vm874_vm4, %v850_v9  ;;  %880 = vst.msk [vmem:[#allocation3 + $0x28] sm:$0xff] %vm874_vm4, %v847_v36  ;;  %1189 = vrot.lane.b32.xlu0 %v3458_v16, %s2919_s30  ;;  %1061 = vrot.lane.b32.xlu1 %v3210_v18, %s2918_s29 }
  0xe8   : > { %4793 = vst [vmem:[#allocation26_spill] sm:$0xff] %v3541_v48 }
  0xe9   : > { %v734_v28 = vpop.permute.xlu0 %733  ;;  %v728_v38 = vpop.permute.xlu1 %727 }
  0xea   : > { %v852_v43 = vsel %vm841_vm3, %v819_v54, %v734_v28  ;;  %v849_v18 = vsel %vm841_vm3, %v816_v1, %v728_v38  ;;  %v3560_v1 = vld [vmem:[#allocation2 + $0xda] sm:$0xff] }
  0xeb   : > { %885 = vst.msk [vmem:[#allocation3 + $0x50] sm:$0xff] %vm874_vm4, %v852_v43  ;;  %882 = vst.msk [vmem:[#allocation3 + $0x38] sm:$0xff] %vm874_vm4, %v849_v18  ;;  %1765 = vrot.lane.b32.xlu0 %v3498_v53, %s2919_s30  ;;  %1637 = vrot.lane.b32.xlu1 %v3200_v13, %s2918_s29 }
  0xec   : > { %4794 = vst [vmem:[#allocation27_spill] sm:$0xff] %v3560_v1 }
  0xed   : > { %v738_v11 = vpop.permute.xlu0 %737  ;;  %v732_v14 = vpop.permute.xlu1 %731 }
  0xee   : > { %v854_v46 = vsel %vm841_vm3, %v821_v27, %v738_v11  ;;  %v851_v52 = vsel %vm841_vm3, %v818_v55, %v732_v14 }
  0xef   : > { %887 = vst.msk [vmem:[#allocation3 + $0x60] sm:$0xff] %vm874_vm4, %v854_v46  ;;  %884 = vst.msk [vmem:[#allocation3 + $0x48] sm:$0xff] %vm874_vm4, %v851_v52  ;;  %1063 = vrot.lane.b32.xlu0 %v3200_v13, %s2918_s29  ;;  %1639 = vrot.lane.b32.xlu1 %v3218_v20, %s2918_s29  ;;  %v822_v13 = vsel %vm236_vm0, %v3541_v48, %v3349_v61  ;;  %v2098_v48 = vld [vmem:[%s4747_s3 + $0x20] sm:$0xff] }
  0xf1   : > { %v3539_v50 = vpop.permute.xlu0 %1035  ;;  %v736_v47 = vpop.permute.xlu1 %735 }
  0xf2   : > { %v853_v9 = vsel %vm841_vm3, %v820_v57, %v736_v47 }
  0xf3   : > { %886 = vst.msk [vmem:[#allocation3 + $0x58] sm:$0xff] %vm874_vm4, %v853_v9  ;;  %1191 = vrot.lane.b32.xlu0 %v3498_v53, %s2919_s30  ;;  %1767 = vrot.lane.b32.xlu1 %v3534_v56, %s2919_s30 }
  0xf5   : > { %v3552_v59 = vpop.permute.xlu0 %1163  ;;  %v740_v36 = vpop.permute.xlu1 %739 }
  0xf6   : > { %v855_v54 = vsel %vm841_vm3, %v822_v13, %v740_v36 }
  0xf7   : > { %888 = vst.msk [vmem:[#allocation3 + $0x68] sm:$0xff] %vm874_vm4, %v855_v54  ;;  %1193 = vrot.lane.b32.xlu0 %v3534_v56, %s2919_s30  ;;  %1065 = vrot.lane.b32.xlu1 %v3218_v20, %s2918_s29  ;;  %v3578_v20 = vld [vmem:[#allocation2 + $0xe2] sm:$0xff] }
  0xf8   : > { %4795 = vst [vmem:[#allocation28_spill] sm:$0xff] %v3578_v20 }
  0xf9   : > { %v3562_v28 = vpop.permute.xlu0 %1165  ;;  %v3564_v38 = vpop.permute.xlu1 %1037 }
  0xfb   : > { %1769 = vrot.lane.b32.xlu0 %v3560_v1, %s2919_s30  ;;  %1641 = vrot.lane.b32.xlu1 %v3208_v15, %s2918_s29 }
  0xfd   : > { %v3570_v61 = vpop.permute.xlu0 %1741  ;;  %v3572_v43 = vpop.permute.xlu1 %1613 }
  0xff   : > { %1067 = vrot.lane.b32.xlu0 %v3208_v15, %s2918_s29  ;;  %1643 = vrot.lane.b32.xlu1 %v3226_v22, %s2918_s29  ;;  %v3596_v15 = vld [vmem:[#allocation2 + $0xf2] sm:$0xff] }
 0x100   : > { %4796 = vst [vmem:[#allocation29_spill] sm:$0xff] %v3596_v15 }
 0x101   : > { %v3580_v18 = vpop.permute.xlu0 %1039  ;;  %v3582_v27 = vpop.permute.xlu1 %1615 }
 0x103   : > { %1195 = vrot.lane.b32.xlu0 %v3560_v1, %s2919_s30  ;;  %1771 = vrot.lane.b32.xlu1 %v3578_v20, %s2919_s30 }
 0x105   : > { %v3588_v55 = vpop.permute.xlu0 %1167  ;;  %v3590_v11 = vpop.permute.xlu1 %1743 }
 0x107   : > { %1197 = vrot.lane.b32.xlu0 %v3578_v20, %s2919_s30  ;;  %1069 = vrot.lane.b32.xlu1 %v3226_v22, %s2918_s29  ;;  %v3614_v22 = vld [vmem:[#allocation2 + $0xfa] sm:$0xff] }
 0x108   : > { %4797 = vst [vmem:[#allocation30_spill] sm:$0xff] %v3614_v22 }
 0x109   : > { %v3598_v14 = vpop.permute.xlu0 %1169  ;;  %v3600_v46 = vpop.permute.xlu1 %1041 }
 0x10b   : > { %1773 = vrot.lane.b32.xlu0 %v3596_v15, %s2919_s30  ;;  %1645 = vrot.lane.b32.xlu1 %v3216_v19, %s2918_s29 }
 0x10d   : > { %v3606_v52 = vpop.permute.xlu0 %1745  ;;  %v3608_v57 = vpop.permute.xlu1 %1617 }
 0x10f   : > { %1071 = vrot.lane.b32.xlu0 %v3216_v19, %s2918_s29  ;;  %1647 = vrot.lane.b32.xlu1 %v3234_v24, %s2918_s29  ;;  %v3632_v19 = vld [vmem:[#allocation2 + $0x10a] sm:$0xff] }
 0x110   : > { %4798 = vst [vmem:[#allocation31_spill] sm:$0xff] %v3632_v19 }
 0x111   : > { %v3616_v47 = vpop.permute.xlu0 %1043  ;;  %v3618_v9 = vpop.permute.xlu1 %1619 }
 0x113   : > { %1199 = vrot.lane.b32.xlu0 %v3596_v15, %s2919_s30  ;;  %1775 = vrot.lane.b32.xlu1 %v3614_v22, %s2919_s30 }
 0x115   : > { %v3624_v13 = vpop.permute.xlu0 %1171  ;;  %v3626_v36 = vpop.permute.xlu1 %1747 }
 0x117   : > { %1201 = vrot.lane.b32.xlu0 %v3614_v22, %s2919_s30  ;;  %1073 = vrot.lane.b32.xlu1 %v3234_v24, %s2918_s29  ;;  %v3650_v24 = vld [vmem:[#allocation2 + $0x112] sm:$0xff]  ;;  %v964_v22 = vld [vmem:[#allocation2 + $0x141] sm:$0xff] }
 0x118   : > { %4799 = vst [vmem:[#allocation32_spill] sm:$0xff] %v3650_v24 }
 0x119   : > { %v3634_v54 = vpop.permute.xlu0 %1173  ;;  %v3636_v40 = vpop.permute.xlu1 %1045 }
 0x11b   : > { %1777 = vrot.lane.b32.xlu0 %v3632_v19, %s2919_s30  ;;  %1649 = vrot.lane.b32.xlu1 %v3224_v21, %s2918_s29 }
 0x11d   : > { %v3642_v12 = vpop.permute.xlu0 %1749  ;;  %v3644_v34 = vpop.permute.xlu1 %1621 }
 0x11f   : > { %1075 = vrot.lane.b32.xlu0 %v3224_v21, %s2918_s29  ;;  %1651 = vrot.lane.b32.xlu1 %v3240_v26, %s2918_s29  ;;  %v3668_v21 = vld [vmem:[#allocation2 + $0x122] sm:$0xff] }
 0x120   : > { %4800 = vst [vmem:[#allocation33_spill] sm:$0xff] %v3668_v21 }
 0x121   : > { %v3652_v10 = vpop.permute.xlu0 %1047  ;;  %v3654_v29 = vpop.permute.xlu1 %1623 }
 0x123   : > { %1203 = vrot.lane.b32.xlu0 %v3632_v19, %s2919_s30  ;;  %1779 = vrot.lane.b32.xlu1 %v3650_v24, %s2919_s30 }
 0x125   : > { %v3660_v3 = vpop.permute.xlu0 %1175  ;;  %v3662_v25 = vpop.permute.xlu1 %1751 }
 0x127   : > { %1205 = vrot.lane.b32.xlu0 %v3650_v24, %s2919_s30  ;;  %1077 = vrot.lane.b32.xlu1 %v3240_v26, %s2918_s29  ;;  %v3686_v26 = vld [vmem:[#allocation2 + $0x12a] sm:$0xff] }
 0x128   : > { %4801 = vst [vmem:[#allocation34_spill] sm:$0xff] %v3686_v26 }
 0x129   : > { %v3670_v6 = vpop.permute.xlu0 %1177  ;;  %v3672_v8 = vpop.permute.xlu1 %1049 }
 0x12b   : > { %1781 = vrot.lane.b32.xlu0 %v3668_v21, %s2919_s30  ;;  %1653 = vrot.lane.b32.xlu1 %v3232_v23, %s2918_s29 }
 0x12d   : > { %v3678_v4 = vpop.permute.xlu0 %1753  ;;  %v3680_v7 = vpop.permute.xlu1 %1625 }
 0x12f   : > { %1079 = vrot.lane.b32.xlu0 %v3232_v23, %s2918_s29  ;;  %1655 = vrot.lane.b32.xlu1 %v3245_v30, %s2918_s29  ;;  %v3704_v23 = vld [vmem:[#allocation2 + $0x13a] sm:$0xff] }
 0x130   : > { %4802 = vst [vmem:[#allocation35_spill] sm:$0xff] %v3704_v23 }
 0x131   : > { %v3688_v63 = vpop.permute.xlu0 %1051  ;;  %v3690_v5 = vpop.permute.xlu1 %1627 }
 0x133   : > { %1207 = vrot.lane.b32.xlu0 %v3668_v21, %s2919_s30  ;;  %1783 = vrot.lane.b32.xlu1 %v3686_v26, %s2919_s30 }
 0x135   : > { %v3696_v49 = vpop.permute.xlu0 %1179  ;;  %v3698_v0 = vpop.permute.xlu1 %1755 }
 0x137   : > { %1209 = vrot.lane.b32.xlu0 %v3686_v26, %s2919_s30  ;;  %1081 = vrot.lane.b32.xlu1 %v3245_v30, %s2918_s29  ;;  %v3720_v30 = vld [vmem:[#allocation2 + $0x142] sm:$0xff] }
 0x138   : > { %4803 = vst [vmem:[#allocation36_spill] sm:$0xff] %v3720_v30 }
 0x139   : > { %v3706_v62 = vpop.permute.xlu0 %1181  ;;  %v3708_v58 = vpop.permute.xlu1 %1053 }
 0x13b   : > { %1785 = vrot.lane.b32.xlu0 %v3704_v23, %s2919_s30  ;;  %1657 = vrot.lane.b32.xlu1 %v1539_v60, %s2918_s29 }
 0x13d   : > { %v3713_v21 = vpop.permute.xlu0 %1757  ;;  %v3715_v24 = vpop.permute.xlu1 %1629 }
 0x13f   : > { %1083 = vrot.lane.b32.xlu0 %v1539_v60, %s2918_s29  ;;  %1659 = vrot.lane.b32.xlu1 %v3250_v32, %s2918_s29  ;;  %v3737_v32 = vld [vmem:[#allocation2 + $0x152] sm:$0xff] }
 0x140   : > { %4805 = vst [vmem:[#allocation38_spill] sm:$0xff] %v3737_v32  ;;  %v1541_v60 = vld [vmem:[#allocation2 + $0x151] sm:$0xff] }
 0x141   : > { %v3722_v26 = vpop.permute.xlu0 %1055  ;;  %v3724_v19 = vpop.permute.xlu1 %1631 }
 0x143   : > { %1211 = vrot.lane.b32.xlu0 %v3704_v23, %s2919_s30  ;;  %1787 = vrot.lane.b32.xlu1 %v3720_v30, %s2919_s30  ;;  %v1542_v23 = vld [vmem:[#allocation2 + $0x159] sm:$0xff] }
 0x145   : > { %v3730_v15 = vpop.permute.xlu0 %1183  ;;  %v3732_v20 = vpop.permute.xlu1 %1759 }
 0x146   : > { %4804 = vst [vmem:[#allocation37_spill] sm:$0xff] %v3732_v20  ;;  %v1578_v20 = vld [vmem:[#allocation2 + $0x18a] sm:$0xff] }
 0x147   : > { %1213 = vrot.lane.b32.xlu0 %v3720_v30, %s2919_s30  ;;  %1085 = vrot.lane.b32.xlu1 %v964_v22, %s2918_s29  ;;  %v3752_v22 = vld [vmem:[#allocation2 + $0x15a] sm:$0xff] }
 0x148   : > { %4809 = vst [vmem:[#allocation42_spill] sm:$0xff] %v3752_v22 }
 0x149   : > { %v3739_v1 = vpop.permute.xlu0 %1185  ;;  %v3741_v56 = vpop.permute.xlu1 %1057 }
 0x14a   : > { %4806 = vst [vmem:[#allocation39_spill] sm:$0xff] %v3739_v1  ;;  %4807 = vst [vmem:[#allocation40_spill] sm:$0xff] %v3741_v56 }
 0x14b   : > { %1789 = vrot.lane.b32.xlu0 %v3737_v32, %s2919_s30  ;;  %1661 = vrot.lane.b32.xlu1 %v1541_v60, %s2918_s29 }
 0x14d   : > { %v3746_v53 = vpop.permute.xlu0 %1761  ;;  %v3748_v16 = vpop.permute.xlu1 %1633 }
 0x14e   : > { %4808 = vst [vmem:[#allocation41_spill] sm:$0xff] %v3746_v53 }
 0x14f   : > { %1087 = vrot.lane.b32.xlu0 %v1541_v60, %s2918_s29  ;;  %1663 = vrot.lane.b32.xlu1 %v1542_v23, %s2918_s29  ;;  %v3769_v60 = vld [vmem:[#allocation2 + $0x16a] sm:$0xff] }
 0x150   : > { %4814 = vst [vmem:[#allocation47_spill] sm:$0xff] %v3769_v60 }
 0x151   : > { %v3754_v30 = vpop.permute.xlu0 %1059  ;;  %v3756_v37 = vpop.permute.xlu1 %1635 }
 0x152   : > { %4810 = vst [vmem:[#allocation43_spill] sm:$0xff] %v3754_v30  ;;  %4811 = vst [vmem:[#allocation44_spill] sm:$0xff] %v3756_v37  ;;  %v1543_v30 = vld [vmem:[#allocation2 + $0x169] sm:$0xff] }
 0x153   : > { %1215 = vrot.lane.b32.xlu0 %v3737_v32, %s2919_s30  ;;  %1791 = vrot.lane.b32.xlu1 %v3752_v22, %s2919_s30  ;;  %v1544_v32 = vld [vmem:[#allocation2 + $0x171] sm:$0xff] }
 0x155   : > { %v3762_v1 = vpop.permute.xlu0 %1187  ;;  %v3764_v56 = vpop.permute.xlu1 %1763 }
 0x156   : > { %4812 = vst [vmem:[#allocation45_spill] sm:$0xff] %v3762_v1  ;;  %4813 = vst [vmem:[#allocation46_spill] sm:$0xff] %v3764_v56 }
 0x157   : > { %1217 = vrot.lane.b32.xlu0 %v3752_v22, %s2919_s30  ;;  %1089 = vrot.lane.b32.xlu1 %v1542_v23, %s2918_s29  ;;  %v3784_v23 = vld [vmem:[#allocation2 + $0x172] sm:$0xff] }
 0x158   : > { %4819 = vst [vmem:[#allocation52_spill] sm:$0xff] %v3784_v23 }
 0x159   : > { %v3771_v53 = vpop.permute.xlu0 %1189  ;;  %v3773_v37 = vpop.permute.xlu1 %1061 }
 0x15a   : > { %4815 = vst [vmem:[#allocation48_spill] sm:$0xff] %v3771_v53  ;;  %4816 = vst [vmem:[#allocation49_spill] sm:$0xff] %v3773_v37 }
 0x15b   : > { %1793 = vrot.lane.b32.xlu0 %v3769_v60, %s2919_s30  ;;  %1665 = vrot.lane.b32.xlu1 %v1543_v30, %s2918_s29 }
 0x15d   : > { %v3778_v1 = vpop.permute.xlu0 %1765  ;;  %v3780_v56 = vpop.permute.xlu1 %1637 }
 0x15e   : > { %4817 = vst [vmem:[#allocation50_spill] sm:$0xff] %v3778_v1  ;;  %4818 = vst [vmem:[#allocation51_spill] sm:$0xff] %v3780_v56  ;;  %v1545_v56 = vld [vmem:[#allocation2 + $0x181] sm:$0xff] }
 0x15f   : > { %1091 = vrot.lane.b32.xlu0 %v1543_v30, %s2918_s29  ;;  %1667 = vrot.lane.b32.xlu1 %v1544_v32, %s2918_s29  ;;  %v1577_v30 = vld [vmem:[#allocation2 + $0x182] sm:$0xff] }
 0x161   : > { %v3786_v22 = vpop.permute.xlu0 %1063  ;;  %v3788_v53 = vpop.permute.xlu1 %1639 }
 0x162   : > { %4820 = vst [vmem:[#allocation53_spill] sm:$0xff] %v3786_v22  ;;  %4821 = vst [vmem:[#allocation54_spill] sm:$0xff] %v3788_v53 }
 0x163   : > { %1219 = vrot.lane.b32.xlu0 %v3769_v60, %s2919_s30  ;;  %1795 = vrot.lane.b32.xlu1 %v3784_v23, %s2919_s30  ;;  %v2094_v60 = vld [vmem:[%s4747_s3] sm:$0xff] }
 0x165   : > { %v3794_v37 = vpop.permute.xlu0 %1191  ;;  %v3796_v1 = vpop.permute.xlu1 %1767 }
 0x166   : > { %4822 = vst [vmem:[#allocation55_spill] sm:$0xff] %v3794_v37  ;;  %4823 = vst [vmem:[#allocation56_spill] sm:$0xff] %v3796_v1  ;;  %v2095_v37 = vld [vmem:[%s4747_s3 + $0x8] sm:$0xff] }
 0x167   : > { %1221 = vrot.lane.b32.xlu0 %v3784_v23, %s2919_s30  ;;  %1093 = vrot.lane.b32.xlu1 %v1544_v32, %s2918_s29  ;;  %v2870_v1 = vpack.c.bf16 %v2095_v37, %v2094_v60  ;;  %v1546_v32 = vld [vmem:[#allocation2 + $0x189] sm:$0xff]  ;;  %v2097_v37 = vld [vmem:[%s4747_s3 + $0x18] sm:$0xff] }
 0x169   : > { %v3801_v22 = vpop.permute.xlu0 %1193  ;;  %v3803_v53 = vpop.permute.xlu1 %1065  ;;  %2871 = vmatprep.subr.bf16.mxu0 %v2870_v1  ;;  %2886 = vmatprep.subr.bf16.mxu1 %v2870_v1 }
 0x16a   : > { %4824 = vst [vmem:[#allocation57_spill] sm:$0xff] %v3801_v22  ;;  %4825 = vst [vmem:[#allocation58_spill] sm:$0xff] %v3803_v53  ;;  %2873 = vmatpush3.bf16.msra.mxu0 %v2870_v1  ;;  %v2096_v53 = vld [vmem:[%s4747_s3 + $0x10] sm:$0xff]  ;;  %2891 = vmatpush3.bf16.msra.mxu1 %v2870_v1  ;;  %v1259_v1 = vsel %vm236_vm0, %v3412_v35, %v3539_v50  ;;  %v2101_v35 = vld [vmem:[%s4747_s3 + $0x38] sm:$0xff] }
 0x16b   : > { %1797 = vrot.lane.b32.xlu0 %v1577_v30, %s2919_s30  ;;  %1669 = vrot.lane.b32.xlu1 %v1545_v56, %s2918_s29  ;;  %v2874_v60 = vpack.c.bf16 %v2097_v37, %v2096_v53  ;;  %v2099_v53 = vld [vmem:[%s4747_s3 + $0x28] sm:$0xff]  ;;  %v1260_v37 = vsel %vm236_vm0, %v3446_v33, %v3564_v38  ;;  %v1291_v33 = vsel %vm841_vm3, %v1259_v1, %v3552_v59 }
 0x16c   : > { %v1292_v50 = vsel %vm841_vm3, %v1260_v37, %v3562_v28  ;;  %v2102_v28 = vld [vmem:[%s4747_s3 + $0x40] sm:$0xff] }
 0x16d   : > { %v3813_v23 = vpop.permute.xlu0 %1769  ;;  %v3815_v22 = vpop.permute.xlu1 %1641  ;;  %2875 = vmatprep.subr.bf16.mxu0 %v2874_v60  ;;  %2887 = vmatprep.subr.bf16.mxu1 %v2874_v60 }
 0x16e   : > { %4826 = vst [vmem:[#allocation59_spill] sm:$0xff] %v3813_v23  ;;  %4827 = vst [vmem:[#allocation60_spill] sm:$0xff] %v3815_v22  ;;  %2877 = vmatpush3.bf16.msra.mxu0 %v2874_v60  ;;  %2892 = vmatpush3.bf16.msra.mxu1 %v2874_v60 }
 0x16f   : > { %1095 = vrot.lane.b32.xlu0 %v1545_v56, %s2918_s29  ;;  %1671 = vrot.lane.b32.xlu1 %v1546_v32, %s2918_s29  ;;  %v2878_v56 = vpack.c.bf16 %v2099_v53, %v2098_v48  ;;  %v2100_v48 = vld [vmem:[%s4747_s3 + $0x30] sm:$0xff] }
 0x170   : > { %v2882_v38 = vpack.c.bf16 %v2101_v35, %v2100_v48 }
 0x171   : > { %v3825_v23 = vpop.permute.xlu0 %1067  ;;  %v3827_v22 = vpop.permute.xlu1 %1643  ;;  %2879 = vmatprep.subr.bf16.mxu0 %v2878_v56  ;;  %2888 = vmatprep.subr.bf16.mxu1 %v2878_v56 }
 0x172   : > { %4828 = vst [vmem:[#allocation61_spill] sm:$0xff] %v3825_v23  ;;  %4829 = vst [vmem:[#allocation62_spill] sm:$0xff] %v3827_v22  ;;  %2881 = vmatpush3.bf16.msra.mxu0 %v2878_v56  ;;  %2893 = vmatpush3.bf16.msra.mxu1 %v2878_v56  ;;  %v1547_v56 = vld [vmem:[#allocation2 + $0x199] sm:$0xff] }
 0x173   : > { %1097 = vrot.lane.b32.xlu0 %v1546_v32, %s2918_s29  ;;  %1799 = vrot.lane.b32.xlu1 %v1578_v20, %s2919_s30  ;;  %v1837_v32 = vsel %vm236_vm0, %v3427_v42, %v3572_v43  ;;  %v1548_v43 = vld [vmem:[#allocation2 + $0x1a1] sm:$0xff] }
 0x174   : > { %2883 = vmatprep.subr.bf16.mxu0 %v2882_v38  ;;  %2889 = vmatprep.subr.bf16.mxu1 %v2882_v38  ;;  %v1869_v59 = vsel %vm841_vm3, %v1837_v32, %v3570_v61  ;;  %v1838_v61 = vsel %vm236_vm0, %v3468_v45, %v3582_v27 }
 0x175   : > { %v3843_v23 = vpop.permute.xlu0 %1195  ;;  %v3845_v22 = vpop.permute.xlu1 %1771  ;;  %v1870_v35 = vsel %vm841_vm3, %v1838_v61, %v3590_v11  ;;  %v1839_v11 = vsel %vm236_vm0, %v3444_v31, %v3608_v57  ;;  %v1263_v57 = vsel %vm236_vm0, %v3444_v31, %v3616_v47  ;;  %v1840_v31 = vsel %vm236_vm0, %v3488_v51, %v3618_v9 }
 0x176   : > { %2885 = vmatpush3.bf16.msra.mxu0 %v2882_v38  ;;  %2894 = vmatpush3.bf16.msra.mxu1 %v2882_v38  ;;  %v1265_v61 = vsel %vm236_vm0, %v3466_v44, %v3652_v10  ;;  %v1842_v10 = vsel %vm236_vm0, %v3508_v41, %v3654_v29 }
 0x177   : > { %1357 = vrot.lane.b32.xlu0 %v1292_v50, %s2920_s25  ;;  %1355 = vrot.lane.b32.xlu1 %v1291_v33, %s2920_s25  ;;  %v1261_v33 = vsel %vm236_vm0, %v3427_v42, %v3580_v18  ;;  %v1579_v50 = vld [vmem:[#allocation2 + $0x19a] sm:$0xff]  ;;  %v1580_v42 = vld [vmem:[#allocation2 + $0x1a2] sm:$0xff] }
 0x178   : > { %2820 = vmatprep.subr.mxu0 %v2102_v28  ;;  %2890 = vmatprep.subr.mxu1 %v2102_v28  ;;  %v1293_v27 = vsel %vm841_vm3, %v1261_v33, %v3588_v55  ;;  %v1262_v55 = vsel %vm236_vm0, %v3468_v45, %v3600_v46  ;;  %v1841_v45 = vsel %vm236_vm0, %v3466_v44, %v3644_v34 }
 0x179   : > { %v3862_v60 = vpop.permute.xlu0 %1197  ;;  %v3864_v53 = vpop.permute.xlu1 %1069  ;;  %v1264_v34 = vsel %vm236_vm0, %v3488_v51, %v3636_v40  ;;  %v1843_v40 = vsel %vm236_vm0, %v3486_v17, %v3680_v7  ;;  %v1266_v7 = vsel %vm236_vm0, %v3508_v41, %v3672_v8  ;;  %v1267_v33 = vsel %vm236_vm0, %v3486_v17, %v3688_v63 }
 0x17a   : > { %2821 = vmatpush3.msra.mxu0 %v2102_v28  ;;  %2895 = vmatpush3.msra.mxu1 %v2102_v28  ;;  %v1845_v8 = vsel %vm236_vm0, %v3506_v39, %v3715_v24  ;;  %v1844_v63 = vsel %vm236_vm0, %v3524_v2, %v3690_v5  ;;  %v1268_v24 = vsel %vm236_vm0, %v3524_v2, %v3708_v58  ;;  %v4830_v2 = vld [vmem:[#allocation26_spill] sm:$0xff] }
 0x17b   : > { %1933 = vrot.lane.b32.xlu0 %v1869_v59, %s2921_s26  ;;  %1223 = vrot.lane.b32.xlu1 %v1577_v30, %s2919_s30  ;;  %v1871_v59 = vsel %vm841_vm3, %v1839_v11, %v3606_v52  ;;  %v1294_v52 = vsel %vm841_vm3, %v1262_v55, %v3598_v14  ;;  %v1873_v14 = vsel %vm841_vm3, %v1841_v45, %v3642_v12 }
 0x17c   : > { %v1296_v12 = vsel %vm841_vm3, %v1264_v34, %v3634_v54  ;;  %v1875_v54 = vsel %vm841_vm3, %v1843_v40, %v3678_v4  ;;  %v1298_v4 = vsel %vm841_vm3, %v1266_v7, %v3670_v6  ;;  %v1877_v6 = vsel %vm841_vm3, %v1845_v8, %v3713_v21  ;;  %v4840_v8 = vld [vmem:[#allocation50_spill] sm:$0xff] }
 0x17d   : > { %v3873_v1 = vpop.permute.xlu0 %1773  ;;  %v3875_v37 = vpop.permute.xlu1 %1645  ;;  %v1300_v58 = vsel %vm841_vm3, %v1268_v24, %v3706_v62  ;;  %v4832_v62 = vld [vmem:[#allocation41_spill] sm:$0xff]  ;;  %v4081_v24 = vld [vmem:[#allocation2 + $0xc8] sm:$0xff] }
 0x17f   : > { %1675 = vrot.lane.b32.xlu0 %v1548_v43, %s2918_s29  ;;  %1673 = vrot.lane.b32.xlu1 %v1547_v56, %s2918_s29  ;;  %v1295_v56 = vsel %vm841_vm3, %v1263_v57, %v3624_v13  ;;  %v1872_v13 = vsel %vm841_vm3, %v1840_v31, %v3626_v36  ;;  %v1297_v36 = vsel %vm841_vm3, %v1265_v61, %v3660_v3  ;;  %v4836_v61 = vld [vmem:[#allocation39_spill] sm:$0xff] }
 0x180   : > { %v1874_v3 = vsel %vm841_vm3, %v1842_v10, %v3662_v25  ;;  %v1299_v25 = vsel %vm841_vm3, %v1267_v33, %v3696_v49  ;;  %v1876_v49 = vsel %vm841_vm3, %v1844_v63, %v3698_v0  ;;  %v4018_v0 = vld [vmem:[#allocation2 + $0xa8] sm:$0xff]  ;;  %v4063_v10 = vld [vmem:[#allocation2 + $0xb0] sm:$0xff] }
 0x181   : > { %v3882_v30 = vpop.permute.xlu0 %1071  ;;  %v3884_v48 = vpop.permute.xlu1 %1647 }
 0x183   : > { %1935 = vrot.lane.b32.xlu0 %v1870_v35, %s2921_s26  ;;  %1225 = vrot.lane.b32.xlu1 %v1578_v20, %s2919_s30 }
 0x185   : > { %v3893_v38 = vpop.permute.xlu0 %1199  ;;  %v3895_v32 = vpop.permute.xlu1 %1775 }
 0x187   : > { %1359 = vrot.lane.b32.xlu0 %v1293_v27, %s2920_s25  ;;  %1801 = vrot.lane.b32.xlu1 %v1579_v50, %s2919_s30  ;;  %v1269_v27 = vsel %vm236_vm0, %v3506_v39, %v3722_v26  ;;  %v1847_v39 = vsel %vm236_vm0, %v4018_v0, %v3748_v16  ;;  %v1846_v26 = vsel %vm236_vm0, %v4830_v2, %v3724_v19 }
 0x188   : > { %v1301_v21 = vsel %vm841_vm3, %v1269_v27, %v3730_v15  ;;  %v4831_v15 = vld [vmem:[#allocation37_spill] sm:$0xff]  ;;  %v1879_v57 = vsel %vm841_vm3, %v1847_v39, %v4832_v62  ;;  %v4842_v27 = vld [vmem:[#allocation54_spill] sm:$0xff] }
 0x189   : > { %v3904_v18 = vpop.permute.xlu0 %1201  ;;  %v3906_v20 = vpop.permute.xlu1 %1073  ;;  %v1878_v55 = vsel %vm841_vm3, %v1846_v26, %v4831_v15  ;;  %v4844_v15 = vld [vmem:[#allocation48_spill] sm:$0xff]  ;;  %v4845_v62 = vld [vmem:[#allocation53_spill] sm:$0xff] }
 0x18b   : > { %1937 = vrot.lane.b32.xlu0 %v1871_v59, %s2921_s26  ;;  %1803 = vrot.lane.b32.xlu1 %v1580_v42, %s2919_s30 }
 0x18d   : > { %v3918_v28 = vpop.permute.xlu0 %1777  ;;  %v3920_v43 = vpop.permute.xlu1 %1649 }
 0x18f   : > { %1363 = vrot.lane.b32.xlu0 %v1295_v56, %s2920_s25  ;;  %1361 = vrot.lane.b32.xlu1 %v1294_v52, %s2920_s25  ;;  %v4833_v56 = vld [vmem:[#allocation40_spill] sm:$0xff]  ;;  %v4834_v52 = vld [vmem:[#allocation43_spill] sm:$0xff] }
 0x190   : > { %v1270_v16 = vsel %vm236_vm0, %v4830_v2, %v4833_v56  ;;  %v1271_v45 = vsel %vm236_vm0, %v4018_v0, %v4834_v52  ;;  %v4843_v2 = vld [vmem:[#allocation56_spill] sm:$0xff]  ;;  %v4103_v52 = vld [vmem:[#allocation2 + $0xd8] sm:$0xff] }
 0x191   : > { %v3934_v46 = vpop.permute.xlu0 %1075  ;;  %v3936_v47 = vpop.permute.xlu1 %1651 }
 0x193   : > { %1941 = vrot.lane.b32.xlu0 %v1873_v14, %s2921_s26  ;;  %1939 = vrot.lane.b32.xlu1 %v1872_v13, %s2921_s26  ;;  %v4052_v13 = vld [vmem:[#allocation2 + $0xc0] sm:$0xff]  ;;  %v4835_v14 = vld [vmem:[#allocation45_spill] sm:$0xff] }
 0x194   : > { %v1303_v34 = vsel %vm841_vm3, %v1271_v45, %v4835_v14  ;;  %v4846_v45 = vld [vmem:[#allocation55_spill] sm:$0xff] }
 0x195   : > { %v3950_v9 = vpop.permute.xlu0 %1203  ;;  %v3952_v35 = vpop.permute.xlu1 %1779 }
 0x197   : > { %1367 = vrot.lane.b32.xlu0 %v1297_v36, %s2920_s25  ;;  %1365 = vrot.lane.b32.xlu1 %v1296_v12, %s2920_s25  ;;  %v1302_v36 = vsel %vm841_vm3, %v1270_v16, %v4836_v61  ;;  %v4837_v12 = vld [vmem:[#allocation51_spill] sm:$0xff] }
 0x198   : > { %v1849_v40 = vsel %vm236_vm0, %v4052_v13, %v4837_v12 }
 0x199   : > { %v3966_v44 = vpop.permute.xlu0 %1205  ;;  %v3968_v51 = vpop.permute.xlu1 %1077  ;;  %v1881_v63 = vsel %vm841_vm3, %v1849_v40, %v4840_v8  ;;  %v4851_v8 = vld [vmem:[#allocation23_spill] sm:$0xff] }
 0x19b   : > { %1945 = vrot.lane.b32.xlu0 %v1875_v54, %s2921_s26  ;;  %1943 = vrot.lane.b32.xlu1 %v1874_v3, %s2921_s26  ;;  %v4838_v3 = vld [vmem:[#allocation44_spill] sm:$0xff] }
 0x19c   : > { %v1848_v54 = vsel %vm236_vm0, %v4063_v10, %v4838_v3  ;;  %v4849_v3 = vld [vmem:[#allocation59_spill] sm:$0xff] }
 0x19d   : > { %v3982_v29 = vpop.permute.xlu0 %1781  ;;  %v3984_v50 = vpop.permute.xlu1 %1653 }
 0x19f   : > { %1371 = vrot.lane.b32.xlu0 %v1299_v25, %s2920_s25  ;;  %1369 = vrot.lane.b32.xlu1 %v1298_v4, %s2920_s25  ;;  %v4839_v25 = vld [vmem:[#allocation46_spill] sm:$0xff] }
 0x1a0   : > { %v1880_v4 = vsel %vm841_vm3, %v1848_v54, %v4839_v25  ;;  %v4850_v25 = vld [vmem:[#allocation58_spill] sm:$0xff] }
 0x1a1   : > { %v3998_v17 = vpop.permute.xlu0 %1079  ;;  %v4000_v41 = vpop.permute.xlu1 %1655 }
 0x1a3   : > { %1949 = vrot.lane.b32.xlu0 %v1877_v6, %s2921_s26  ;;  %1947 = vrot.lane.b32.xlu1 %v1876_v49, %s2921_s26  ;;  %v4841_v49 = vld [vmem:[#allocation49_spill] sm:$0xff] }
 0x1a4   : > { %v1272_v6 = vsel %vm236_vm0, %v4063_v10, %v4841_v49  ;;  %v4852_v49 = vld [vmem:[#allocation62_spill] sm:$0xff] }
 0x1a5   : > { %v4014_v5 = vpop.permute.xlu0 %1207  ;;  %v4016_v11 = vpop.permute.xlu1 %1783 }
 0x1a7   : > { %1375 = vrot.lane.b32.xlu0 %v1301_v21, %s2920_s25  ;;  %1373 = vrot.lane.b32.xlu1 %v1300_v58, %s2920_s25  ;;  %v1850_v21 = vsel %vm236_vm0, %v4081_v24, %v4842_v27 }
 0x1a8   : > { %v1882_v26 = vsel %vm841_vm3, %v1850_v21, %v4843_v2 }
 0x1a9   : > { %v4032_v42 = vpop.permute.xlu0 %1209  ;;  %v4034_v59 = vpop.permute.xlu1 %1081 }
 0x1ab   : > { %1953 = vrot.lane.b32.xlu0 %v1879_v57, %s2921_s26  ;;  %1951 = vrot.lane.b32.xlu1 %v1878_v55, %s2921_s26  ;;  %v1304_v55 = vsel %vm841_vm3, %v1272_v6, %v4844_v15  ;;  %v1273_v57 = vsel %vm236_vm0, %v4052_v13, %v4845_v62 }
 0x1ac   : > { %v1305_v14 = vsel %vm841_vm3, %v1273_v57, %v4846_v45 }
 0x1ad   : > { %v4048_v19 = vpop.permute.xlu0 %1785  ;;  %v4050_v31 = vpop.permute.xlu1 %1657 }
 0x1af   : > { %1379 = vrot.lane.b32.xlu0 %v1303_v34, %s2920_s25  ;;  %1377 = vrot.lane.b32.xlu1 %v1302_v36, %s2920_s25  ;;  %v4847_v34 = vld [vmem:[#allocation60_spill] sm:$0xff]  ;;  %v4848_v36 = vld [vmem:[#allocation21_spill] sm:$0xff] }
 0x1b0   : > { %v1851_v61 = vsel %vm236_vm0, %v4103_v52, %v4847_v34 }
 0x1b1   : > { %v4068_v7 = vpop.permute.xlu0 %1083  ;;  %v4070_v33 = vpop.permute.xlu1 %1659  ;;  %v1883_v54 = vsel %vm841_vm3, %v1851_v61, %v4849_v3  ;;  %v4855_v61 = vld [vmem:[#allocation24_spill] sm:$0xff] }
 0x1b3   : > { %1957 = vrot.lane.b32.xlu0 %v1881_v63, %s2921_s26  ;;  %1955 = vrot.lane.b32.xlu1 %v1880_v4, %s2921_s26  ;;  %v1274_v4 = vsel %vm236_vm0, %v4081_v24, %v4850_v25  ;;  %v4125_v63 = vld [vmem:[#allocation2 + $0xe0] sm:$0xff]  ;;  %v4856_v25 = vld [vmem:[#allocation25_spill] sm:$0xff] }
 0x1b4   : > { %v1852_v6 = vsel %vm236_vm0, %v4125_v63, %v4852_v49 }
 0x1b5   : > { %v4086_v58 = vpop.permute.xlu0 %1211  ;;  %v4088_v39 = vpop.permute.xlu1 %1787  ;;  %v1884_v2 = vsel %vm841_vm3, %v1852_v6, %v3845_v22 }
 0x1b7   : > { %1959 = vrot.lane.b32.xlu0 %v1882_v26, %s2921_s26  ;;  %1381 = vrot.lane.b32.xlu1 %v1304_v55, %s2920_s25  ;;  %v4853_v26 = vld [vmem:[#allocation57_spill] sm:$0xff] }
 0x1b8   : > { %v1306_v15 = vsel %vm841_vm3, %v1274_v4, %v4853_v26  ;;  %v4854_v55 = vld [vmem:[#allocation61_spill] sm:$0xff]  ;;  %v4191_v26 = vld [vmem:[#allocation2 + $0x108] sm:$0xff] }
 0x1b9   : > { %v4099_v56 = vpop.permute.xlu0 %1213  ;;  %v4101_v16 = vpop.permute.xlu1 %1085  ;;  %v1275_v62 = vsel %vm236_vm0, %v4103_v52, %v4854_v55 }
 0x1ba   : > { %v1307_v22 = vsel %vm841_vm3, %v1275_v62, %v3843_v23  ;;  %v1276_v23 = vsel %vm236_vm0, %v4125_v63, %v3864_v53 }
 0x1bb   : > { %1383 = vrot.lane.b32.xlu0 %v1305_v14, %s2920_s25  ;;  %741 = vrot.lane.b32.xlu1 %v4848_v36, %s2919_s30  ;;  %v4147_v14 = vld [vmem:[#allocation2 + $0xf0] sm:$0xff]  ;;  %v1308_v53 = vsel %vm841_vm3, %v1276_v23, %v3862_v60  ;;  %v1855_v60 = vsel %vm236_vm0, %v4191_v26, %v3920_v43  ;;  %v1279_v23 = vsel %vm236_vm0, %v4191_v26, %v3934_v46 }
 0x1bc   : > { %v1853_v34 = vsel %vm236_vm0, %v4147_v14, %v3875_v37  ;;  %v4169_v37 = vld [vmem:[#allocation2 + $0xf8] sm:$0xff]  ;;  %v1277_v6 = vsel %vm236_vm0, %v4147_v14, %v3882_v30  ;;  %v1887_v62 = vsel %vm841_vm3, %v1855_v60, %v3918_v28  ;;  %v4213_v43 = vld [vmem:[#allocation2 + $0x110] sm:$0xff] }
 0x1bd   : > { %v4113_v12 = vpop.permute.xlu0 %1789  ;;  %v4115_v40 = vpop.permute.xlu1 %1661  ;;  %v1854_v4 = vsel %vm236_vm0, %v4169_v37, %v3884_v48 }
 0x1bf   : > { %1961 = vrot.lane.b32.xlu0 %v1883_v54, %s2921_s26  ;;  %743 = vrot.lane.b32.xlu1 %v4851_v8, %s2919_s30  ;;  %v1885_v54 = vsel %vm841_vm3, %v1853_v34, %v3873_v1  ;;  %v1886_v1 = vsel %vm841_vm3, %v1854_v4, %v3895_v32  ;;  %v1309_v32 = vsel %vm841_vm3, %v1277_v6, %v3893_v38  ;;  %v4235_v4 = vld [vmem:[#allocation2 + $0x120] sm:$0xff] }
 0x1c0   : > { %v1278_v38 = vsel %vm236_vm0, %v4169_v37, %v3906_v20  ;;  %v1856_v34 = vsel %vm236_vm0, %v4213_v43, %v3936_v47 }
 0x1c1   : > { %v4130_v27 = vpop.permute.xlu0 %1087  ;;  %v4132_v21 = vpop.permute.xlu1 %1663  ;;  %v1888_v28 = vsel %vm841_vm3, %v1856_v34, %v3952_v35  ;;  %v1310_v20 = vsel %vm841_vm3, %v1278_v38, %v3904_v18  ;;  %v1311_v35 = vsel %vm841_vm3, %v1279_v23, %v3950_v9  ;;  %v1857_v18 = vsel %vm236_vm0, %v4235_v4, %v3984_v50  ;;  %v4257_v50 = vld [vmem:[#allocation2 + $0x128] sm:$0xff]  ;;  %v4275_v34 = vld [vmem:[#allocation2 + $0x138] sm:$0xff] }
 0x1c2   : > { %v1889_v6 = vsel %vm841_vm3, %v1857_v18, %v3982_v29  ;;  %v1280_v9 = vsel %vm236_vm0, %v4213_v43, %v3968_v51  ;;  %v1858_v60 = vsel %vm236_vm0, %v4257_v50, %v4000_v41  ;;  %v1281_v38 = vsel %vm236_vm0, %v4235_v4, %v3998_v17  ;;  %v4861_v17 = vld [vmem:[#allocation31_spill] sm:$0xff] }
 0x1c3   : > { %1385 = vrot.lane.b32.xlu1 %v1306_v15, %s2920_s25  ;;  %1963 = vrot.lane.b32.xlu0 %v1884_v2, %s2921_s26  ;;  %v4857_v15 = vld [vmem:[#allocation27_spill] sm:$0xff]  ;;  %v1890_v29 = vsel %vm841_vm3, %v1858_v60, %v4016_v11  ;;  %v1312_v51 = vsel %vm841_vm3, %v1280_v9, %v3966_v44  ;;  %v1859_v44 = vsel %vm236_vm0, %v4275_v34, %v4050_v31  ;;  %v4862_v31 = vld [vmem:[#allocation32_spill] sm:$0xff] }
 0x1c4   : > { %v1282_v23 = vsel %vm236_vm0, %v4257_v50, %v4034_v59  ;;  %v1283_v9 = vsel %vm236_vm0, %v4275_v34, %v4068_v7  ;;  %v4863_v7 = vld [vmem:[#allocation33_spill] sm:$0xff] }
 0x1c5   : > { %v4143_v57 = vpop.permute.xlu0 %1215  ;;  %v4145_v45 = vpop.permute.xlu1 %1791  ;;  %v1314_v59 = vsel %vm841_vm3, %v1282_v23, %v4032_v42 }
 0x1c7   : > { %1387 = vrot.lane.b32.xlu0 %v1307_v22, %s2920_s25  ;;  %745 = vrot.lane.b32.xlu1 %v4855_v61, %s2919_s30  ;;  %v4858_v22 = vld [vmem:[#allocation28_spill] sm:$0xff] }
 0x1c9   : > { %v4157_v36 = vpop.permute.xlu0 %1217  ;;  %v4159_v3 = vpop.permute.xlu1 %1089 }
 0x1cb   : > { %747 = vrot.lane.b32.xlu1 %v4856_v25, %s2919_s30  ;;  %1965 = vrot.lane.b32.xlu0 %v1885_v54, %s2921_s26 }
 0x1cd   : > { %v4174_v8 = vpop.permute.xlu0 %1793  ;;  %v4176_v49 = vpop.permute.xlu1 %1665 }
 0x1cf   : > { %1389 = vrot.lane.b32.xlu1 %v1308_v53, %s2920_s25  ;;  %1967 = vrot.lane.b32.xlu0 %v1886_v1, %s2921_s26  ;;  %v4859_v1 = vld [vmem:[#allocation29_spill] sm:$0xff] }
 0x1d1   : > { %v4187_v2 = vpop.permute.xlu0 %1091  ;;  %v4189_v48 = vpop.permute.xlu1 %1667 }
 0x1d3   : > { %749 = vrot.lane.b32.xlu1 %v4857_v15, %s2919_s30  ;;  %1391 = vrot.lane.b32.xlu0 %v1309_v32, %s2920_s25  ;;  %v4860_v32 = vld [vmem:[#allocation30_spill] sm:$0xff] }
 0x1d5   : > { %v4201_v30 = vpop.permute.xlu0 %1219  ;;  %v4203_v55 = vpop.permute.xlu1 %1795 }
 0x1d7   : > { %751 = vrot.lane.b32.xlu1 %v4858_v22, %s2919_s30  ;;  %1969 = vrot.lane.b32.xlu0 %v1887_v62, %s2921_s26 }
 0x1d9   : > { %v4218_v61 = vpop.permute.xlu0 %1221  ;;  %v4220_v54 = vpop.permute.xlu1 %1093 }
 0x1db   : > { %1393 = vrot.lane.b32.xlu1 %v1310_v20, %s2920_s25  ;;  %1971 = vrot.lane.b32.xlu0 %v1888_v28, %s2921_s26  ;;  %v1313_v28 = vsel %vm841_vm3, %v1281_v38, %v4014_v5  ;;  %v1891_v5 = vsel %vm841_vm3, %v1859_v44, %v4048_v19 }
 0x1dd   : > { %v4231_v25 = vpop.permute.xlu0 %1797  ;;  %v4233_v47 = vpop.permute.xlu1 %1669 }
 0x1df   : > { %753 = vrot.lane.b32.xlu1 %v4859_v1, %s2919_s30  ;;  %1395 = vrot.lane.b32.xlu0 %v1311_v35, %s2920_s25  ;;  %v4298_v35 = vld [vmem:[#allocation2 + $0x140] sm:$0xff] }
 0x1e0   : > { %v1860_v18 = vsel %vm236_vm0, %v4298_v35, %v4070_v33  ;;  %v1509_v33 = vld [vmem:[#allocation2 + $0x150] sm:$0xff] }
 0x1e1   : > { %v4245_v46 = vpop.permute.xlu0 %1095  ;;  %v4247_v53 = vpop.permute.xlu1 %1671  ;;  %v1892_v19 = vsel %vm841_vm3, %v1860_v18, %v4088_v39  ;;  %v1315_v39 = vsel %vm841_vm3, %v1283_v9, %v4086_v58  ;;  %v1861_v42 = vsel %vm236_vm0, %v1509_v33, %v4115_v40  ;;  %v4338_v40 = vld [vmem:[#allocation2 + $0x158] sm:$0xff]  ;;  %v4865_v18 = vld [vmem:[#allocation35_spill] sm:$0xff] }
 0x1e2   : > { %v1893_v58 = vsel %vm841_vm3, %v1861_v42, %v4113_v12 }
 0x1e3   : > { %755 = vrot.lane.b32.xlu1 %v4860_v32, %s2919_s30  ;;  %1973 = vrot.lane.b32.xlu0 %v1889_v6, %s2921_s26 }
 0x1e5   : > { %v4262_v15 = vpop.permute.xlu0 %1097  ;;  %v4264_v62 = vpop.permute.xlu1 %1799 }
 0x1e7   : > { %1397 = vrot.lane.b32.xlu1 %v1312_v51, %s2920_s25  ;;  %1975 = vrot.lane.b32.xlu0 %v1890_v29, %s2921_s26 }
 0x1e9   : > { %v1358_v41 = vpop.permute.xlu0 %1357  ;;  %v1356_v22 = vpop.permute.xlu1 %1355 }
 0x1ea   : > { %1453 = vst.msk [vmem:[#allocation3 + $0x8] sm:$0xff] %vm1451_vm5, %v1358_v41  ;;  %1452 = vst.msk [vmem:[#allocation3] sm:$0xff] %vm1451_vm5, %v1356_v22  ;;  %v1284_v41 = vsel %vm236_vm0, %v4298_v35, %v4101_v16  ;;  %v4864_v22 = vld [vmem:[#allocation34_spill] sm:$0xff] }
 0x1eb   : > { %757 = vrot.lane.b32.xlu1 %v4861_v17, %s2919_s30  ;;  %1399 = vrot.lane.b32.xlu0 %v1313_v28, %s2920_s25  ;;  %v1862_v28 = vsel %vm236_vm0, %v4338_v40, %v4132_v21  ;;  %v1316_v16 = vsel %vm841_vm3, %v1284_v41, %v4099_v56  ;;  %v1511_v21 = vld [vmem:[#allocation2 + $0x168] sm:$0xff] }
 0x1ec   : > { %v1894_v12 = vsel %vm841_vm3, %v1862_v28, %v4145_v45  ;;  %v1863_v56 = vsel %vm236_vm0, %v1511_v21, %v4176_v49 }
 0x1ed   : > { %v1934_v11 = vpop.permute.xlu0 %1933  ;;  %v4287_v20 = vpop.permute.xlu1 %1223 }
 0x1ee   : > { %2030 = vst.msk [vmem:[#allocation3] sm:$0xff] %vm2029_vm6, %v1934_v11 }
 0x1ef   : > { %759 = vrot.lane.b32.xlu1 %v4862_v31, %s2919_s30  ;;  %1977 = vrot.lane.b32.xlu0 %v1891_v5, %s2921_s26  ;;  %v1285_v5 = vsel %vm236_vm0, %v1509_v33, %v4130_v27  ;;  %v934_v27 = vld [vmem:[#allocation2 + $0x158] sm:$0xff]  ;;  %v1512_v33 = vld [vmem:[#allocation2 + $0x170] sm:$0xff] }
 0x1f0   : > { %v1317_v45 = vsel %vm841_vm3, %v1285_v5, %v4143_v57  ;;  %v1895_v57 = vsel %vm841_vm3, %v1863_v56, %v4174_v8  ;;  %v1286_v49 = vsel %vm236_vm0, %v934_v27, %v4159_v3  ;;  %v1287_v8 = vsel %vm236_vm0, %v1511_v21, %v4187_v2  ;;  %v4867_v2 = vld [vmem:[#allocation38_spill] sm:$0xff] }
 0x1f1   : > { %v4303_v1 = vpop.permute.xlu0 %1675  ;;  %v4305_v6 = vpop.permute.xlu1 %1673  ;;  %v1318_v3 = vsel %vm841_vm3, %v1286_v49, %v4157_v36 }
 0x1f3   : > { %1401 = vrot.lane.b32.xlu1 %v1314_v59, %s2920_s25  ;;  %1979 = vrot.lane.b32.xlu0 %v1892_v19, %s2921_s26 }
 0x1f5   : > { %v1936_v32 = vpop.permute.xlu0 %1935  ;;  %v4316_v60 = vpop.permute.xlu1 %1225  ;;  %v2062_v29 = vld [vmem:[#allocation3] sm:$0xff] }
 0x1f6   : > { %2031 = vst.msk [vmem:[#allocation3 + $0x8] sm:$0xff] %vm2029_vm6, %v1936_v32  ;;  %2822 = vmatprep.mubr.msk.f32.mxu0 %vm2103_vm7, %v2062_v29  ;;  %v4866_v32 = vld [vmem:[#allocation36_spill] sm:$0xff]  ;;  %v1864_v29 = vsel %vm236_vm0, %v1512_v33, %v4189_v48  ;;  %v1513_v48 = vld [vmem:[#allocation2 + $0x180] sm:$0xff] }
 0x1f7   : > { %761 = vrot.lane.b32.xlu1 %v4863_v7, %s2919_s30  ;;  %1403 = vrot.lane.b32.xlu0 %v1315_v39, %s2920_s25  ;;  %v1896_v7 = vsel %vm841_vm3, %v1864_v29, %v4203_v55  ;;  %v1319_v55 = vsel %vm841_vm3, %v1287_v8, %v4201_v30  ;;  %v1865_v36 = vsel %vm236_vm0, %v1513_v48, %v4233_v47 }
 0x1f8   : > { %v1897_v30 = vsel %vm841_vm3, %v1865_v36, %v4231_v25  ;;  %v1288_v47 = vsel %vm236_vm0, %v1512_v33, %v4220_v54  ;;  %v1289_v25 = vsel %vm236_vm0, %v1513_v48, %v4245_v46  ;;  %v4870_v33 = vld [vmem:[#allocation52_spill] sm:$0xff] }
 0x1f9   : > { %v1360_v51 = vpop.permute.xlu0 %1359  ;;  %v4327_v38 = vpop.permute.xlu1 %1801  ;;  %v1320_v54 = vsel %vm841_vm3, %v1288_v47, %v4218_v61  ;;  %v1321_v56 = vsel %vm841_vm3, %v1289_v25, %v4287_v20  ;;  %v4869_v61 = vld [vmem:[#allocation47_spill] sm:$0xff]  ;;  %v4873_v47 = vld [vmem:[#allocation5_spill] sm:$0xff] }
 0x1fa   : > { %1454 = vst.msk [vmem:[#allocation3 + $0x10] sm:$0xff] %vm1451_vm5, %v1360_v51 }
 0x1fb   : > { %763 = vrot.lane.b32.xlu1 %v4864_v22, %s2919_s30  ;;  %1981 = vrot.lane.b32.xlu0 %v1893_v58, %s2921_s26 }
 0x1fd   : > { %v1938_v44 = vpop.permute.xlu0 %1937  ;;  %v4343_v17 = vpop.permute.xlu1 %1803  ;;  %v2063_v11 = vld [vmem:[#allocation3 + $0x8] sm:$0xff] }
 0x1fe   : > { %2032 = vst.msk [vmem:[#allocation3 + $0x10] sm:$0xff] %vm2029_vm6, %v1938_v44  ;;  %2823 = vmatmul.mubr.msk.f32.vlgmr.msra.gmra.mrb[0].mxu0 %vm2103_vm7, %v2063_v11  ;;  %v1514_v11 = vld [vmem:[#allocation2 + $0x188] sm:$0xff] }
 0x1ff   : > { %1405 = vrot.lane.b32.xlu1 %v1316_v16, %s2920_s25  ;;  %1983 = vrot.lane.b32.xlu0 %v1894_v12, %s2921_s26  ;;  %v4868_v12 = vld [vmem:[#allocation42_spill] sm:$0xff]  ;;  %v1866_v16 = vsel %vm236_vm0, %v1514_v11, %v4247_v53 }
 0x201   : > { %v1364_v23 = vpop.permute.xlu0 %1363  ;;  %v1362_v31 = vpop.permute.xlu1 %1361 }
 0x202   : > { %1456 = vst.msk [vmem:[#allocation3 + $0x20] sm:$0xff] %vm1451_vm5, %v1364_v23  ;;  %1455 = vst.msk [vmem:[#allocation3 + $0x18] sm:$0xff] %vm1451_vm5, %v1362_v31 }
 0x203   : > { %765 = vrot.lane.b32.xlu1 %v4865_v18, %s2919_s30  ;;  %1407 = vrot.lane.b32.xlu0 %v1317_v45, %s2920_s25  ;;  %v1898_v45 = vsel %vm841_vm3, %v1866_v16, %v4264_v62  ;;  %v1515_v18 = vld [vmem:[#allocation2 + $0x198] sm:$0xff] }
 0x204   : > { %v1867_v27 = vsel %vm236_vm0, %v1515_v18, %v4305_v6  ;;  %v1290_v6 = vsel %vm236_vm0, %v1514_v11, %v4262_v15 }
 0x205   : > { %v1942_v19 = vpop.permute.xlu0 %1941  ;;  %v1940_v59 = vpop.permute.xlu1 %1939  ;;  %v2064_v9 = vld [vmem:[#allocation3 + $0x10] sm:$0xff]  ;;  %v1899_v20 = vsel %vm841_vm3, %v1867_v27, %v4327_v38  ;;  %v1322_v38 = vsel %vm841_vm3, %v1290_v6, %v4316_v60 }
 0x206   : > { %2034 = vst.msk [vmem:[#allocation3 + $0x20] sm:$0xff] %vm2029_vm6, %v1942_v19  ;;  %2033 = vst.msk [vmem:[#allocation3 + $0x18] sm:$0xff] %vm2029_vm6, %v1940_v59  ;;  %2825 = vmatprep.mubr.msk.f32.mxu0 %vm2103_vm7, %v2064_v9 }
 0x207   : > { %767 = vrot.lane.b32.xlu1 %v4866_v32, %s2919_s30  ;;  %1985 = vrot.lane.b32.xlu0 %v1895_v57, %s2921_s26  ;;  %v1516_v32 = vld [vmem:[#allocation2 + $0x1a0] sm:$0xff] }
 0x208   : > { %v1868_v29 = vsel %vm236_vm0, %v1516_v32, %v4303_v1  ;;  %v4871_v1 = vld [vmem:[#allocation4_spill] sm:$0xff] }
 0x209   : > { %v1368_v39 = vpop.permute.xlu0 %1367  ;;  %v1366_v42 = vpop.permute.xlu1 %1365  ;;  %v1900_v15 = vsel %vm841_vm3, %v1868_v29, %v4343_v17  ;;  %v823_v17 = vsel %vm236_vm0, %v4018_v0, %v4871_v1 }
 0x20a   : > { %1458 = vst.msk [vmem:[#allocation3 + $0x30] sm:$0xff] %vm1451_vm5, %v1368_v39  ;;  %1457 = vst.msk [vmem:[#allocation3 + $0x28] sm:$0xff] %vm1451_vm5, %v1366_v42 }
 0x20b   : > { %1409 = vrot.lane.b32.xlu1 %v1318_v3, %s2920_s25  ;;  %1987 = vrot.lane.b32.xlu0 %v1896_v7, %s2921_s26 }
 0x20d   : > { %v1946_v51 = vpop.permute.xlu0 %1945  ;;  %v1944_v58 = vpop.permute.xlu1 %1943  ;;  %v2065_v41 = vld [vmem:[#allocation3 + $0x18] sm:$0xff]  ;;  %v2066_v22 = vld [vmem:[#allocation3 + $0x20] sm:$0xff] }
 0x20e   : > { %2036 = vst.msk [vmem:[#allocation3 + $0x30] sm:$0xff] %vm2029_vm6, %v1946_v51  ;;  %2035 = vst.msk [vmem:[#allocation3 + $0x28] sm:$0xff] %vm2029_vm6, %v1944_v58  ;;  %2826 = vmatmul.mubr.msk.f32.gmra.mrb[2].mxu0 %vm2103_vm7, %v2065_v41 }
 0x20f   : > { %769 = vrot.lane.b32.xlu1 %v4867_v2, %s2919_s30  ;;  %1411 = vrot.lane.b32.xlu0 %v1319_v55, %s2920_s25  ;;  %v4872_v55 = vld [vmem:[#allocation7_spill] sm:$0xff] }
 0x210   : > { %2828 = vmatprep.mubr.msk.f32.mxu0 %vm2103_vm7, %v2066_v22  ;;  %v824_v36 = vsel %vm236_vm0, %v4063_v10, %v4872_v55  ;;  %v825_v10 = vsel %vm236_vm0, %v4052_v13, %v4873_v47 }
 0x211   : > { %v1372_v28 = vpop.permute.xlu0 %1371  ;;  %v1370_v44 = vpop.permute.xlu1 %1369 }
 0x212   : > { %1460 = vst.msk [vmem:[#allocation3 + $0x40] sm:$0xff] %vm1451_vm5, %v1372_v28  ;;  %1459 = vst.msk [vmem:[#allocation3 + $0x38] sm:$0xff] %vm1451_vm5, %v1370_v44 }
 0x213   : > { %771 = vrot.lane.b32.xlu1 %v4868_v12, %s2919_s30  ;;  %1989 = vrot.lane.b32.xlu0 %v1897_v30, %s2921_s26 }
 0x215   : > { %v1950_v5 = vpop.permute.xlu0 %1949  ;;  %v1948_v21 = vpop.permute.xlu1 %1947  ;;  %v2067_v23 = vld [vmem:[#allocation3 + $0x28] sm:$0xff]  ;;  %v2068_v31 = vld [vmem:[#allocation3 + $0x30] sm:$0xff] }
 0x216   : > { %2038 = vst.msk [vmem:[#allocation3 + $0x40] sm:$0xff] %vm2029_vm6, %v1950_v5  ;;  %2037 = vst.msk [vmem:[#allocation3 + $0x38] sm:$0xff] %vm2029_vm6, %v1948_v21  ;;  %2829 = vmatmul.mubr.msk.f32.gmra.mrb[4].mxu0 %vm2103_vm7, %v2067_v23  ;;  %v4874_v23 = vld [vmem:[#allocation9_spill] sm:$0xff] }
 0x217   : > { %1413 = vrot.lane.b32.xlu1 %v1320_v54, %s2920_s25  ;;  %1991 = vrot.lane.b32.xlu0 %v1898_v45, %s2921_s26 }
 0x218   : > { %2831 = vmatprep.mubr.msk.f32.mxu0 %vm2103_vm7, %v2068_v31  ;;  %v826_v31 = vsel %vm236_vm0, %v4081_v24, %v4874_v23 }
 0x219   : > { %v1376_v53 = vpop.permute.xlu0 %1375  ;;  %v1374_v62 = vpop.permute.xlu1 %1373 }
 0x21a   : > { %1462 = vst.msk [vmem:[#allocation3 + $0x50] sm:$0xff] %vm1451_vm5, %v1376_v53  ;;  %1461 = vst.msk [vmem:[#allocation3 + $0x48] sm:$0xff] %vm1451_vm5, %v1374_v62 }
 0x21b   : > { %773 = vrot.lane.b32.xlu1 %v4869_v61, %s2919_s30  ;;  %1415 = vrot.lane.b32.xlu0 %v1321_v56, %s2920_s25  ;;  %v4875_v56 = vld [vmem:[#allocation6_spill] sm:$0xff] }
 0x21c   : > { %v827_v24 = vsel %vm236_vm0, %v4103_v52, %v4875_v56 }
 0x21d   : > { %v1954_v19 = vpop.permute.xlu0 %1953  ;;  %v1952_v46 = vpop.permute.xlu1 %1951  ;;  %v2069_v59 = vld [vmem:[#allocation3 + $0x38] sm:$0xff]  ;;  %v2070_v9 = vld [vmem:[#allocation3 + $0x40] sm:$0xff] }
 0x21e   : > { %2040 = vst.msk [vmem:[#allocation3 + $0x50] sm:$0xff] %vm2029_vm6, %v1954_v19  ;;  %2039 = vst.msk [vmem:[#allocation3 + $0x48] sm:$0xff] %vm2029_vm6, %v1952_v46  ;;  %2832 = vmatmul.mubr.msk.f32.gmra.mrb[6].mxu0 %vm2103_vm7, %v2069_v59  ;;  %v4876_v46 = vld [vmem:[#allocation11_spill] sm:$0xff] }
 0x21f   : > { %775 = vrot.lane.b32.xlu1 %v4870_v33, %s2919_s30  ;;  %1993 = vrot.lane.b32.xlu0 %v1899_v20, %s2921_s26  ;;  %v828_v59 = vsel %vm236_vm0, %v4125_v63, %v4876_v46 }
 0x220   : > { %2834 = vmatprep.mubr.msk.f32.mxu0 %vm2103_vm7, %v2070_v9 }
 0x221   : > { %v1380_v57 = vpop.permute.xlu0 %1379  ;;  %v1378_v49 = vpop.permute.xlu1 %1377 }
 0x222   : > { %1464 = vst.msk [vmem:[#allocation3 + $0x60] sm:$0xff] %vm1451_vm5, %v1380_v57  ;;  %1463 = vst.msk [vmem:[#allocation3 + $0x58] sm:$0xff] %vm1451_vm5, %v1378_v49  ;;  %v4877_v49 = vld [vmem:[#allocation8_spill] sm:$0xff] }
 0x223   : > { %1417 = vrot.lane.b32.xlu1 %v1322_v38, %s2920_s25  ;;  %v829_v63 = vsel %vm236_vm0, %v4147_v14, %v4877_v49  ;;  %v4886_v49 = vld [vmem:[#allocation20_spill] sm:$0xff] }
 0x225   : > { %v1958_v39 = vpop.permute.xlu0 %1957  ;;  %v1956_v42 = vpop.permute.xlu1 %1955  ;;  %v2071_v7 = vld [vmem:[#allocation3 + $0x48] sm:$0xff]  ;;  %v2072_v3 = vld [vmem:[#allocation3 + $0x50] sm:$0xff] }
 0x226   : > { %2042 = vst.msk [vmem:[#allocation3 + $0x60] sm:$0xff] %vm2029_vm6, %v1958_v39  ;;  %2041 = vst.msk [vmem:[#allocation3 + $0x58] sm:$0xff] %vm2029_vm6, %v1956_v42  ;;  %2835 = vmatmul.mubr.msk.f32.gmra.mrb[8].mxu0 %vm2103_vm7, %v2071_v7  ;;  %v4878_v42 = vld [vmem:[#allocation13_spill] sm:$0xff] }
 0x227   : > { %1995 = vrot.lane.b32.xlu1 %v1900_v15, %s2921_s26  ;;  %2837 = vmatprep.mubr.msk.f32.mxu0 %vm2103_vm7, %v2072_v3  ;;  %v830_v7 = vsel %vm236_vm0, %v4169_v37, %v4878_v42 }
 0x229   : > { %v1960_v60 = vpop.permute.xlu0 %1959  ;;  %v1382_v8 = vpop.permute.xlu1 %1381 }
 0x22a   : > { %1465 = vst.msk [vmem:[#allocation3 + $0x68] sm:$0xff] %vm1451_vm5, %v1382_v8 }
 0x22b   : > { %2043 = vst.msk [vmem:[#allocation3 + $0x68] sm:$0xff] %vm2029_vm6, %v1960_v60 }
 0x22d   : > { %v1384_v48 = vpop.permute.xlu0 %1383  ;;  %v742_v51 = vpop.permute.xlu1 %741  ;;  %v2073_v58 = vld [vmem:[#allocation3 + $0x58] sm:$0xff]  ;;  %v2074_v41 = vld [vmem:[#allocation3 + $0x60] sm:$0xff] }
 0x22e   : > { %v856_v22 = vsel %vm841_vm3, %v823_v17, %v742_v51  ;;  %2838 = vmatmul.mubr.msk.f32.gmra.mrb[10].mxu0 %vm2103_vm7, %v2073_v58  ;;  %v4879_v17 = vld [vmem:[#allocation10_spill] sm:$0xff] }
 0x22f   : > { %889 = vst.msk [vmem:[#allocation3 + $0x70] sm:$0xff] %vm874_vm4, %v856_v22  ;;  %2840 = vmatprep.mubr.msk.f32.mxu0 %vm2103_vm7, %v2074_v41  ;;  %v831_v37 = vsel %vm236_vm0, %v4191_v26, %v4879_v17  ;;  %v4880_v22 = vld [vmem:[#allocation15_spill] sm:$0xff] }
 0x230   : > { %1466 = vst.msk [vmem:[#allocation3 + $0x70] sm:$0xff] %vm1451_vm5, %v1384_v48  ;;  %v832_v55 = vsel %vm236_vm0, %v4213_v43, %v4880_v22 }
 0x231   : > { %v1962_v2 = vpop.permute.xlu0 %1961  ;;  %v744_v0 = vpop.permute.xlu1 %743 }
 0x232   : > { %2044 = vst.msk [vmem:[#allocation3 + $0x70] sm:$0xff] %vm2029_vm6, %v1962_v2  ;;  %v857_v28 = vsel %vm841_vm3, %v824_v36, %v744_v0  ;;  %v2075_v44 = vld [vmem:[#allocation3 + $0x68] sm:$0xff] }
 0x233   : > { %890 = vst.msk [vmem:[#allocation3 + $0x78] sm:$0xff] %vm874_vm4, %v857_v28  ;;  %2841 = vmatmul.mubr.msk.f32.gmra.mrb[12].mxu0 %vm2103_vm7, %v2075_v44 }
 0x235   : > { %v1964_v11 = vpop.permute.xlu0 %1963  ;;  %v1386_v30 = vpop.permute.xlu1 %1385 }
 0x236   : > { %1467 = vst.msk [vmem:[#allocation3 + $0x78] sm:$0xff] %vm1451_vm5, %v1386_v30 }
 0x237   : > { %2045 = vst.msk [vmem:[#allocation3 + $0x78] sm:$0xff] %vm2029_vm6, %v1964_v11  ;;  %v4881_v11 = vld [vmem:[#allocation12_spill] sm:$0xff] }
 0x238   : > { %v833_v43 = vsel %vm236_vm0, %v4235_v4, %v4881_v11 }
 0x239   : > { %v1388_v12 = vpop.permute.xlu0 %1387  ;;  %v746_v16 = vpop.permute.xlu1 %745  ;;  %v2076_v5 = vld [vmem:[#allocation3 + $0x70] sm:$0xff] }
 0x23a   : > { %v858_v21 = vsel %vm841_vm3, %v825_v10, %v746_v16  ;;  %2843 = vmatprep.mubr.msk.f32.mxu0 %vm2103_vm7, %v2076_v5  ;;  %v4882_v16 = vld [vmem:[#allocation17_spill] sm:$0xff] }
 0x23b   : > { %891 = vst.msk [vmem:[#allocation3 + $0x80] sm:$0xff] %vm874_vm4, %v858_v21  ;;  %v834_v5 = vsel %vm236_vm0, %v4257_v50, %v4882_v16 }
 0x23c   : > { %1468 = vst.msk [vmem:[#allocation3 + $0x80] sm:$0xff] %vm1451_vm5, %v1388_v12 }
 0x23d   : > { %v1966_v45 = vpop.permute.xlu0 %1965  ;;  %v748_v54 = vpop.permute.xlu1 %747 }
 0x23e   : > { %2046 = vst.msk [vmem:[#allocation3 + $0x80] sm:$0xff] %vm2029_vm6, %v1966_v45  ;;  %v859_v13 = vsel %vm841_vm3, %v826_v31, %v748_v54  ;;  %v2077_v25 = vld [vmem:[#allocation3 + $0x78] sm:$0xff] }
 0x23f   : > { %892 = vst.msk [vmem:[#allocation3 + $0x88] sm:$0xff] %vm874_vm4, %v859_v13  ;;  %2844 = vmatmul.mubr.msk.f32.gmra.mrb[14].mxu0 %vm2103_vm7, %v2077_v25  ;;  %v4883_v13 = vld [vmem:[#allocation14_spill] sm:$0xff] }
 0x240   : > { %v835_v50 = vsel %vm236_vm0, %v4275_v34, %v4883_v13 }
 0x241   : > { %v1968_v53 = vpop.permute.xlu0 %1967  ;;  %v1390_v62 = vpop.permute.xlu1 %1389 }
 0x242   : > { %1469 = vst.msk [vmem:[#allocation3 + $0x88] sm:$0xff] %vm1451_vm5, %v1390_v62 }
 0x243   : > { %2047 = vst.msk [vmem:[#allocation3 + $0x88] sm:$0xff] %vm2029_vm6, %v1968_v53 }
 0x245   : > { %v1392_v18 = vpop.permute.xlu0 %1391  ;;  %v750_v61 = vpop.permute.xlu1 %749  ;;  %v2078_v27 = vld [vmem:[#allocation3 + $0x80] sm:$0xff] }
 0x246   : > { %v860_v19 = vsel %vm841_vm3, %v827_v24, %v750_v61  ;;  %2846 = vmatprep.mubr.msk.f32.mxu1 %vm2103_vm7, %v2078_v27  ;;  %v4884_v24 = vld [vmem:[#allocation19_spill] sm:$0xff] }
 0x247   : > { %893 = vst.msk [vmem:[#allocation3 + $0x90] sm:$0xff] %vm874_vm4, %v860_v19 }
 0x248   : > { %1470 = vst.msk [vmem:[#allocation3 + $0x90] sm:$0xff] %vm1451_vm5, %v1392_v18  ;;  %v836_v18 = vsel %vm236_vm0, %v4298_v35, %v4884_v24 }
 0x249   : > { %v1970_v9 = vpop.permute.xlu0 %1969  ;;  %v752_v20 = vpop.permute.xlu1 %751 }
 0x24a   : > { %2048 = vst.msk [vmem:[#allocation3 + $0x90] sm:$0xff] %vm2029_vm6, %v1970_v9  ;;  %v861_v52 = vsel %vm841_vm3, %v828_v59, %v752_v20  ;;  %v2079_v33 = vld [vmem:[#allocation3 + $0x88] sm:$0xff]  ;;  %v485_v9 = vld [vmem:[#allocation2 + $0x150] sm:$0xff] }
 0x24b   : > { %894 = vst.msk [vmem:[#allocation3 + $0x98] sm:$0xff] %vm874_vm4, %v861_v52  ;;  %2847 = vmatmul.mubr.msk.f32.vlgmr.msra.gmra.mrb[0].mxu1 %vm2103_vm7, %v2079_v33  ;;  %v4885_v20 = vld [vmem:[#allocation16_spill] sm:$0xff] }
 0x24c   : > { %v837_v35 = vsel %vm236_vm0, %v485_v9, %v4885_v20 }
 0x24d   : > { %v1972_v6 = vpop.permute.xlu0 %1971  ;;  %v1394_v57 = vpop.permute.xlu1 %1393 }
 0x24e   : > { %1471 = vst.msk [vmem:[#allocation3 + $0x98] sm:$0xff] %vm1451_vm5, %v1394_v57 }
 0x24f   : > { %2049 = vst.msk [vmem:[#allocation3 + $0x98] sm:$0xff] %vm2029_vm6, %v1972_v6 }
 0x251   : > { %v1396_v32 = vpop.permute.xlu0 %1395  ;;  %v754_v38 = vpop.permute.xlu1 %753  ;;  %v2080_v29 = vld [vmem:[#allocation3 + $0x90] sm:$0xff] }
 0x252   : > { %v862_v39 = vsel %vm841_vm3, %v829_v63, %v754_v38  ;;  %2849 = vmatprep.mubr.msk.f32.mxu1 %vm2103_vm7, %v2080_v29  ;;  %v838_v63 = vsel %vm236_vm0, %v4338_v40, %v4886_v49 }
 0x253   : > { %895 = vst.msk [vmem:[#allocation3 + $0xa0] sm:$0xff] %vm874_vm4, %v862_v39 }
 0x254   : > { %1472 = vst.msk [vmem:[#allocation3 + $0xa0] sm:$0xff] %vm1451_vm5, %v1396_v32 }
 0x255   : > { %v1974_v3 = vpop.permute.xlu0 %1973  ;;  %v756_v15 = vpop.permute.xlu1 %755 }
 0x256   : > { %2050 = vst.msk [vmem:[#allocation3 + $0xa0] sm:$0xff] %vm2029_vm6, %v1974_v3  ;;  %v863_v14 = vsel %vm841_vm3, %v830_v7, %v756_v15  ;;  %v2081_v60 = vld [vmem:[#allocation3 + $0x98] sm:$0xff]  ;;  %v4887_v15 = vld [vmem:[#allocation18_spill] sm:$0xff] }
 0x257   : > { %896 = vst.msk [vmem:[#allocation3 + $0xa8] sm:$0xff] %vm874_vm4, %v863_v14  ;;  %2850 = vmatmul.mubr.msk.f32.gmra.mrb[2].mxu1 %vm2103_vm7, %v2081_v60  ;;  %v487_v3 = vld [vmem:[#allocation2 + $0x168] sm:$0xff] }
 0x258   : > { %v839_v40 = vsel %vm236_vm0, %v487_v3, %v4887_v15 }
 0x259   : > { %v1976_v8 = vpop.permute.xlu0 %1975  ;;  %v1398_v1 = vpop.permute.xlu1 %1397 }
 0x25a   : > { %1473 = vst.msk [vmem:[#allocation3 + $0xa8] sm:$0xff] %vm1451_vm5, %v1398_v1  ;;  %v488_v1 = vld [vmem:[#allocation2 + $0x170] sm:$0xff] }
 0x25b   : > { %2051 = vst.msk [vmem:[#allocation3 + $0xa8] sm:$0xff] %vm2029_vm6, %v1976_v8 }
 0x25d   : > { %v1400_v48 = vpop.permute.xlu0 %1399  ;;  %v758_v51 = vpop.permute.xlu1 %757  ;;  %v2082_v58 = vld [vmem:[#allocation3 + $0xa0] sm:$0xff] }
 0x25e   : > { %v864_v41 = vsel %vm841_vm3, %v831_v37, %v758_v51  ;;  %2852 = vmatprep.mubr.msk.f32.mxu1 %vm2103_vm7, %v2082_v58  ;;  %v4888_v37 = vld [vmem:[#allocation22_spill] sm:$0xff] }
 0x25f   : > { %897 = vst.msk [vmem:[#allocation3 + $0xb0] sm:$0xff] %vm874_vm4, %v864_v41 }
 0x260   : > { %1474 = vst.msk [vmem:[#allocation3 + $0xb0] sm:$0xff] %vm1451_vm5, %v1400_v48  ;;  %v840_v48 = vsel %vm236_vm0, %v488_v1, %v4888_v37 }
 0x261   : > { %v1978_v36 = vpop.permute.xlu0 %1977  ;;  %v760_v2 = vpop.permute.xlu1 %759 }
 0x262   : > { %2052 = vst.msk [vmem:[#allocation3 + $0xb0] sm:$0xff] %vm2029_vm6, %v1978_v36  ;;  %v865_v26 = vsel %vm841_vm3, %v832_v55, %v760_v2  ;;  %v2083_v0 = vld [vmem:[#allocation3 + $0xa8] sm:$0xff] }
 0x263   : > { %898 = vst.msk [vmem:[#allocation3 + $0xb8] sm:$0xff] %vm874_vm4, %v865_v26  ;;  %2853 = vmatmul.mubr.msk.f32.gmra.mrb[4].mxu1 %vm2103_vm7, %v2083_v0 }
 0x265   : > { %v1980_v28 = vpop.permute.xlu0 %1979  ;;  %v1402_v44 = vpop.permute.xlu1 %1401 }
 0x266   : > { %1475 = vst.msk [vmem:[#allocation3 + $0xb8] sm:$0xff] %vm1451_vm5, %v1402_v44 }
 0x267   : > { %2053 = vst.msk [vmem:[#allocation3 + $0xb8] sm:$0xff] %vm2029_vm6, %v1980_v28 }
 0x269   : > { %v1404_v30 = vpop.permute.xlu0 %1403  ;;  %v762_v47 = vpop.permute.xlu1 %761  ;;  %v2084_v10 = vld [vmem:[#allocation3 + $0xb0] sm:$0xff] }
 0x26a   : > { %v866_v12 = vsel %vm841_vm3, %v833_v43, %v762_v47  ;;  %2855 = vmatprep.mubr.msk.f32.mxu1 %vm2103_vm7, %v2084_v10 }
 0x26b   : > { %899 = vst.msk [vmem:[#allocation3 + $0xc0] sm:$0xff] %vm874_vm4, %v866_v12 }
 0x26c   : > { %1476 = vst.msk [vmem:[#allocation3 + $0xc0] sm:$0xff] %vm1451_vm5, %v1404_v30 }
 0x26d   : > { %v1982_v21 = vpop.permute.xlu0 %1981  ;;  %v764_v23 = vpop.permute.xlu1 %763 }
 0x26e   : > { %2054 = vst.msk [vmem:[#allocation3 + $0xc0] sm:$0xff] %vm2029_vm6, %v1982_v21  ;;  %v867_v4 = vsel %vm841_vm3, %v834_v5, %v764_v23  ;;  %v2085_v31 = vld [vmem:[#allocation3 + $0xb8] sm:$0xff] }
 0x26f   : > { %900 = vst.msk [vmem:[#allocation3 + $0xc8] sm:$0xff] %vm874_vm4, %v867_v4  ;;  %2856 = vmatmul.mubr.msk.f32.gmra.mrb[6].mxu1 %vm2103_vm7, %v2085_v31 }
 0x271   : > { %v1984_v45 = vpop.permute.xlu0 %1983  ;;  %v1406_v54 = vpop.permute.xlu1 %1405 }
 0x272   : > { %1477 = vst.msk [vmem:[#allocation3 + $0xc8] sm:$0xff] %vm1451_vm5, %v1406_v54 }
 0x273   : > { %2055 = vst.msk [vmem:[#allocation3 + $0xc8] sm:$0xff] %vm2029_vm6, %v1984_v45 }
 0x275   : > { %v1408_v25 = vpop.permute.xlu0 %1407  ;;  %v766_v53 = vpop.permute.xlu1 %765  ;;  %v2086_v62 = vld [vmem:[#allocation3 + $0xc0] sm:$0xff] }
 0x276   : > { %v868_v56 = vsel %vm841_vm3, %v835_v50, %v766_v53  ;;  %2858 = vmatprep.mubr.msk.f32.mxu1 %vm2103_vm7, %v2086_v62 }
 0x277   : > { %901 = vst.msk [vmem:[#allocation3 + $0xd0] sm:$0xff] %vm874_vm4, %v868_v56 }
 0x278   : > { %1478 = vst.msk [vmem:[#allocation3 + $0xd0] sm:$0xff] %vm1451_vm5, %v1408_v25 }
 0x279   : > { %v1986_v61 = vpop.permute.xlu0 %1985  ;;  %v768_v27 = vpop.permute.xlu1 %767 }
 0x27a   : > { %2056 = vst.msk [vmem:[#allocation3 + $0xd0] sm:$0xff] %vm2029_vm6, %v1986_v61  ;;  %v869_v34 = vsel %vm841_vm3, %v836_v18, %v768_v27  ;;  %v2087_v19 = vld [vmem:[#allocation3 + $0xc8] sm:$0xff] }
 0x27b   : > { %902 = vst.msk [vmem:[#allocation3 + $0xd8] sm:$0xff] %vm874_vm4, %v869_v34  ;;  %2859 = vmatmul.mubr.msk.f32.gmra.mrb[8].mxu1 %vm2103_vm7, %v2087_v19 }
 0x27d   : > { %v1988_v46 = vpop.permute.xlu0 %1987  ;;  %v1410_v59 = vpop.permute.xlu1 %1409 }
 0x27e   : > { %1479 = vst.msk [vmem:[#allocation3 + $0xd8] sm:$0xff] %vm1451_vm5, %v1410_v59 }
 0x27f   : > { %2057 = vst.msk [vmem:[#allocation3 + $0xd8] sm:$0xff] %vm2029_vm6, %v1988_v46 }
 0x281   : > { %v1412_v52 = vpop.permute.xlu0 %1411  ;;  %v770_v33 = vpop.permute.xlu1 %769  ;;  %v2088_v6 = vld [vmem:[#allocation3 + $0xd0] sm:$0xff] }
 0x282   : > { %v870_v57 = vsel %vm841_vm3, %v837_v35, %v770_v33  ;;  %2861 = vmatprep.mubr.msk.f32.mxu1 %vm2103_vm7, %v2088_v6 }
 0x283   : > { %903 = vst.msk [vmem:[#allocation3 + $0xe0] sm:$0xff] %vm874_vm4, %v870_v57 }
 0x284   : > { %1480 = vst.msk [vmem:[#allocation3 + $0xe0] sm:$0xff] %vm1451_vm5, %v1412_v52 }
 0x285   : > { %v1990_v32 = vpop.permute.xlu0 %1989  ;;  %v772_v38 = vpop.permute.xlu1 %771 }
 0x286   : > { %2058 = vst.msk [vmem:[#allocation3 + $0xe0] sm:$0xff] %vm2029_vm6, %v1990_v32  ;;  %v871_v29 = vsel %vm841_vm3, %v838_v63, %v772_v38  ;;  %v2089_v39 = vld [vmem:[#allocation3 + $0xd8] sm:$0xff] }
 0x287   : > { %904 = vst.msk [vmem:[#allocation3 + $0xe8] sm:$0xff] %vm874_vm4, %v871_v29  ;;  %2862 = vmatmul.mubr.msk.f32.gmra.mrb[10].mxu1 %vm2103_vm7, %v2089_v39 }
 0x289   : > { %v1992_v42 = vpop.permute.xlu0 %1991  ;;  %v1414_v7 = vpop.permute.xlu1 %1413 }
 0x28a   : > { %1481 = vst.msk [vmem:[#allocation3 + $0xe8] sm:$0xff] %vm1451_vm5, %v1414_v7 }
 0x28b   : > { %2059 = vst.msk [vmem:[#allocation3 + $0xe8] sm:$0xff] %vm2029_vm6, %v1992_v42 }
 0x28d   : > { %v1416_v14 = vpop.permute.xlu0 %1415  ;;  %v774_v60 = vpop.permute.xlu1 %773  ;;  %v2090_v8 = vld [vmem:[#allocation3 + $0xe0] sm:$0xff] }
 0x28e   : > { %v872_v17 = vsel %vm841_vm3, %v839_v40, %v774_v60  ;;  %2864 = vmatprep.mubr.msk.f32.mxu1 %vm2103_vm7, %v2090_v8 }
 0x28f   : > { %905 = vst.msk [vmem:[#allocation3 + $0xf0] sm:$0xff] %vm874_vm4, %v872_v17 }
 0x290   : > { %1482 = vst.msk [vmem:[#allocation3 + $0xf0] sm:$0xff] %vm1451_vm5, %v1416_v14 }
 0x291   : > { %v1994_v51 = vpop.permute.xlu0 %1993  ;;  %v776_v58 = vpop.permute.xlu1 %775 }
 0x292   : > { %2060 = vst.msk [vmem:[#allocation3 + $0xf0] sm:$0xff] %vm2029_vm6, %v1994_v51  ;;  %v873_v41 = vsel %vm841_vm3, %v840_v48, %v776_v58  ;;  %v2091_v22 = vld [vmem:[#allocation3 + $0xe8] sm:$0xff] }
 0x293   : > { %906 = vst.msk [vmem:[#allocation3 + $0xf8] sm:$0xff] %vm874_vm4, %v873_v41  ;;  %2865 = vmatmul.mubr.msk.f32.gmra.mrb[12].mxu1 %vm2103_vm7, %v2091_v22 }
 0x295   : > { %v1418_v55 = vpop.permute.xlu1 %1417 }
 0x296   : > { %1483 = vst.msk [vmem:[#allocation3 + $0xf8] sm:$0xff] %vm1451_vm5, %v1418_v55 }
 0x299   : > { %v1996_v36 = vpop.permute.xlu1 %1995  ;;  %v2092_v2 = vld [vmem:[#allocation3 + $0xf0] sm:$0xff] }
 0x29a   : > { %2061 = vst.msk [vmem:[#allocation3 + $0xf8] sm:$0xff] %vm2029_vm6, %v1996_v36  ;;  %2867 = vmatprep.mubr.msk.f32.mxu1 %vm2103_vm7, %v2092_v2 }
 0x2a1   : > { %v2093_v26 = vld [vmem:[#allocation3 + $0xf8] sm:$0xff] }
 0x2a2   : > { %2868 = vmatmul.mubr.msk.f32.gmra.mrb[14].mxu1 %vm2103_vm7, %v2093_v26 }
 0x2d1   : > { %v2824_v0 = vpop.f32.mrb[0].mxu0 }
 0x2d2   : > { %2426 = vst.msk [vmem:[%s4605_s6 + $0x8] sm:$0xff] %vm236_vm0, %v2824_v0  ;;  %v2458_v28 = vsel %vm236_vm0, %v2824_v0, 0.0  ;;  %v2528_v44 = vmul.f32 %v2824_v0, %v2824_v0  ;;  %v2266_v11 = vpop.f32.mrb[1].mxu0 }
 0x2d3   : > { %2425 = vst.msk [vmem:[%s4605_s6] sm:$0xff] %vm236_vm0, %v2266_v11  ;;  %v2457_v43 = vsel %vm236_vm0, %v2266_v11, 0.0  ;;  %v2527_v30 = vmul.f32 %v2266_v11, %v2266_v11 }
 0x2d4   : > { %v2560_v47 = vsel %vm236_vm0, %v2528_v44, 0.0  ;;  %v2459_v10 = vadd.f32 %v2458_v28, %v2457_v43 }
 0x2d5   : > { %v2559_v12 = vsel %vm236_vm0, %v2527_v30, 0.0 }
 0x2d6   : > { %v2561_v16 = vadd.f32 %v2560_v47, %v2559_v12 }
 0x2e1   : > { %v2827_v5 = vpop.f32.mrb[2].mxu0 }
 0x2e2   : > { %2428 = vst.msk [vmem:[%s4605_s6 + $0x18] sm:$0xff] %vm236_vm0, %v2827_v5  ;;  %v2276_v21 = vpop.f32.mrb[3].mxu0  ;;  %v2530_v23 = vmul.f32 %v2827_v5, %v2827_v5  ;;  %v2462_v54 = vsel %vm236_vm0, %v2827_v5, 0.0 }
 0x2e3   : > { %2427 = vst.msk [vmem:[%s4605_s6 + $0x10] sm:$0xff] %vm236_vm0, %v2276_v21  ;;  %v2460_v4 = vsel %vm236_vm0, %v2276_v21, 0.0  ;;  %v2529_v31 = vmul.f32 %v2276_v21, %v2276_v21 }
 0x2e4   : > { %v2461_v45 = vadd.f32 %v2460_v4, %v2459_v10  ;;  %v2564_v53 = vsel %vm236_vm0, %v2530_v23, 0.0 }
 0x2e5   : > { %v2562_v13 = vsel %vm236_vm0, %v2529_v31, 0.0 }
 0x2e6   : > { %v2563_v50 = vadd.f32 %v2562_v13, %v2561_v16  ;;  %v2463_v25 = vadd.f32 %v2462_v54, %v2461_v45 }
 0x2e8   : > { %v2565_v62 = vadd.f32 %v2564_v53, %v2563_v50 }
 0x2e9   : > { %v2830_v56 = vpop.f32.mrb[4].mxu0 }
 0x2ea   : > { %2430 = vst.msk [vmem:[%s4605_s6 + $0x28] sm:$0xff] %vm236_vm0, %v2830_v56  ;;  %v2286_v24 = vpop.f32.mrb[5].mxu0  ;;  %v2532_v18 = vmul.f32 %v2830_v56, %v2830_v56  ;;  %v2466_v19 = vsel %vm236_vm0, %v2830_v56, 0.0 }
 0x2eb   : > { %2429 = vst.msk [vmem:[%s4605_s6 + $0x20] sm:$0xff] %vm236_vm0, %v2286_v24  ;;  %v2464_v61 = vsel %vm236_vm0, %v2286_v24, 0.0  ;;  %v2531_v27 = vmul.f32 %v2286_v24, %v2286_v24 }
 0x2ec   : > { %v2465_v34 = vadd.f32 %v2464_v61, %v2463_v25  ;;  %v2568_v20 = vsel %vm236_vm0, %v2532_v18, 0.0 }
 0x2ed   : > { %v2566_v46 = vsel %vm236_vm0, %v2531_v27, 0.0 }
 0x2ee   : > { %v2567_v59 = vadd.f32 %v2566_v46, %v2565_v62  ;;  %v2467_v9 = vadd.f32 %v2466_v19, %v2465_v34 }
 0x2f0   : > { %v2569_v35 = vadd.f32 %v2568_v20, %v2567_v59 }
 0x2f1   : > { %v2833_v52 = vpop.f32.mrb[6].mxu0 }
 0x2f2   : > { %2432 = vst.msk [vmem:[%s4605_s6 + $0x38] sm:$0xff] %vm236_vm0, %v2833_v52  ;;  %v2296_v33 = vpop.f32.mrb[7].mxu0  ;;  %v2534_v6 = vmul.f32 %v2833_v52, %v2833_v52  ;;  %v2470_v32 = vsel %vm236_vm0, %v2833_v52, 0.0 }
 0x2f3   : > { %2431 = vst.msk [vmem:[%s4605_s6 + $0x30] sm:$0xff] %vm236_vm0, %v2296_v33  ;;  %v2468_v57 = vsel %vm236_vm0, %v2296_v33, 0.0  ;;  %v2533_v49 = vmul.f32 %v2296_v33, %v2296_v33 }
 0x2f4   : > { %v2469_v63 = vadd.f32 %v2468_v57, %v2467_v9  ;;  %v2572_v42 = vsel %vm236_vm0, %v2534_v6, 0.0 }
 0x2f5   : > { %v2570_v38 = vsel %vm236_vm0, %v2533_v49, 0.0 }
 0x2f6   : > { %v2571_v29 = vadd.f32 %v2570_v38, %v2569_v35  ;;  %v2471_v39 = vadd.f32 %v2470_v32, %v2469_v63 }
 0x2f8   : > { %v2573_v7 = vadd.f32 %v2572_v42, %v2571_v29 }
 0x2f9   : > { %v2836_v3 = vpop.f32.mrb[8].mxu0 }
 0x2fa   : > { %2434 = vst.msk [vmem:[%s4605_s6 + $0x48] sm:$0xff] %vm236_vm0, %v2836_v3  ;;  %v2306_v15 = vpop.f32.mrb[9].mxu0  ;;  %v2536_v40 = vmul.f32 %v2836_v3, %v2836_v3  ;;  %v2474_v1 = vsel %vm236_vm0, %v2836_v3, 0.0 }
 0x2fb   : > { %2433 = vst.msk [vmem:[%s4605_s6 + $0x40] sm:$0xff] %vm236_vm0, %v2306_v15  ;;  %v2472_v14 = vsel %vm236_vm0, %v2306_v15, 0.0  ;;  %v2535_v60 = vmul.f32 %v2306_v15, %v2306_v15 }
 0x2fc   : > { %v2473_v8 = vadd.f32 %v2472_v14, %v2471_v39  ;;  %v2576_v51 = vsel %vm236_vm0, %v2536_v40, 0.0 }
 0x2fd   : > { %v2574_v17 = vsel %vm236_vm0, %v2535_v60, 0.0 }
 0x2fe   : > { %v2575_v37 = vadd.f32 %v2574_v17, %v2573_v7  ;;  %v2475_v48 = vadd.f32 %v2474_v1, %v2473_v8 }
 0x300   : > { %v2577_v58 = vadd.f32 %v2576_v51, %v2575_v37 }
 0x301   : > { %v2839_v41 = vpop.f32.mrb[10].mxu0 }
 0x302   : > { %2436 = vst.msk [vmem:[%s4605_s6 + $0x58] sm:$0xff] %vm236_vm0, %v2839_v41  ;;  %v2316_v22 = vpop.f32.mrb[11].mxu0  ;;  %v2538_v55 = vmul.f32 %v2839_v41, %v2839_v41  ;;  %v2478_v0 = vsel %vm236_vm0, %v2839_v41, 0.0 }
 0x303   : > { %2435 = vst.msk [vmem:[%s4605_s6 + $0x50] sm:$0xff] %vm236_vm0, %v2316_v22  ;;  %v2476_v36 = vsel %vm236_vm0, %v2316_v22, 0.0  ;;  %v2537_v2 = vmul.f32 %v2316_v22, %v2316_v22 }
 0x304   : > { %v2477_v26 = vadd.f32 %v2476_v36, %v2475_v48  ;;  %v2580_v30 = vsel %vm236_vm0, %v2538_v55, 0.0 }
 0x305   : > { %v2578_v28 = vsel %vm236_vm0, %v2537_v2, 0.0 }
 0x306   : > { %v2579_v44 = vadd.f32 %v2578_v28, %v2577_v58  ;;  %v2842_v11 = vpop.f32.mrb[12].mxu0  ;;  %v2479_v43 = vadd.f32 %v2478_v0, %v2477_v26 }
 0x307   : > { %2438 = vst.msk [vmem:[%s4605_s6 + $0x68] sm:$0xff] %vm236_vm0, %v2842_v11  ;;  %v2326_v47 = vpop.f32.mrb[13].mxu0  ;;  %v2540_v10 = vmul.f32 %v2842_v11, %v2842_v11  ;;  %v2482_v23 = vsel %vm236_vm0, %v2842_v11, 0.0 }
 0x308   : > { %2437 = vst.msk [vmem:[%s4605_s6 + $0x60] sm:$0xff] %vm236_vm0, %v2326_v47  ;;  %v2480_v12 = vsel %vm236_vm0, %v2326_v47, 0.0  ;;  %v2539_v16 = vmul.f32 %v2326_v47, %v2326_v47  ;;  %v2581_v5 = vadd.f32 %v2580_v30, %v2579_v44 }
 0x309   : > { %v2481_v21 = vadd.f32 %v2480_v12, %v2479_v43  ;;  %v2584_v54 = vsel %vm236_vm0, %v2540_v10, 0.0 }
 0x30a   : > { %v2582_v4 = vsel %vm236_vm0, %v2539_v16, 0.0 }
 0x30b   : > { %v2583_v31 = vadd.f32 %v2582_v4, %v2581_v5  ;;  %v2483_v45 = vadd.f32 %v2482_v23, %v2481_v21 }
 0x30d   : > { %v2585_v13 = vadd.f32 %v2584_v54, %v2583_v31 }
 0x312   : > { %v2845_v50 = vpop.f32.mrb[14].mxu0 }
 0x313   : > { %2440 = vst.msk [vmem:[%s4605_s6 + $0x78] sm:$0xff] %vm236_vm0, %v2845_v50  ;;  %v2336_v25 = vpop.f32.mrb[15].mxu0  ;;  %v2542_v53 = vmul.f32 %v2845_v50, %v2845_v50  ;;  %v2486_v18 = vsel %vm236_vm0, %v2845_v50, 0.0 }
 0x314   : > { %2439 = vst.msk [vmem:[%s4605_s6 + $0x70] sm:$0xff] %vm236_vm0, %v2336_v25  ;;  %v2484_v62 = vsel %vm236_vm0, %v2336_v25, 0.0  ;;  %v2541_v56 = vmul.f32 %v2336_v25, %v2336_v25 }
 0x315   : > { %v2485_v24 = vadd.f32 %v2484_v62, %v2483_v45  ;;  %v2588_v19 = vsel %vm236_vm0, %v2542_v53, 0.0 }
 0x316   : > { %v2586_v61 = vsel %vm236_vm0, %v2541_v56, 0.0 }
 0x317   : > { %v2487_v27 = vadd.f32 %v2486_v18, %v2485_v24  ;;  %v2587_v34 = vadd.f32 %v2586_v61, %v2585_v13 }
 0x319   : > { %v2589_v46 = vadd.f32 %v2588_v19, %v2587_v34 }
 0x31e   : > { %v2848_v59 = vpop.f32.mrb[0].mxu1 }
 0x31f   : > { %2442 = vst.msk [vmem:[%s4605_s6 + $0x88] sm:$0xff] %vm236_vm0, %v2848_v59  ;;  %v2346_v9 = vpop.f32.mrb[1].mxu1  ;;  %v2544_v20 = vmul.f32 %v2848_v59, %v2848_v59  ;;  %v2490_v6 = vsel %vm236_vm0, %v2848_v59, 0.0 }
 0x320   : > { %2441 = vst.msk [vmem:[%s4605_s6 + $0x80] sm:$0xff] %vm236_vm0, %v2346_v9  ;;  %v2488_v35 = vsel %vm236_vm0, %v2346_v9, 0.0  ;;  %v2543_v52 = vmul.f32 %v2346_v9, %v2346_v9 }
 0x321   : > { %v2489_v33 = vadd.f32 %v2488_v35, %v2487_v27  ;;  %v2592_v32 = vsel %vm236_vm0, %v2544_v20, 0.0 }
 0x322   : > { %v2590_v57 = vsel %vm236_vm0, %v2543_v52, 0.0 }
 0x323   : > { %v2591_v49 = vadd.f32 %v2590_v57, %v2589_v46  ;;  %v2491_v63 = vadd.f32 %v2490_v6, %v2489_v33 }
 0x325   : > { %v2593_v38 = vadd.f32 %v2592_v32, %v2591_v49 }
 0x32a   : > { %v2851_v29 = vpop.f32.mrb[2].mxu1 }
 0x32b   : > { %2444 = vst.msk [vmem:[%s4605_s6 + $0x98] sm:$0xff] %vm236_vm0, %v2851_v29  ;;  %v2356_v39 = vpop.f32.mrb[3].mxu1  ;;  %v2546_v42 = vmul.f32 %v2851_v29, %v2851_v29  ;;  %v2494_v40 = vsel %vm236_vm0, %v2851_v29, 0.0 }
 0x32c   : > { %2443 = vst.msk [vmem:[%s4605_s6 + $0x90] sm:$0xff] %vm236_vm0, %v2356_v39  ;;  %v2492_v7 = vsel %vm236_vm0, %v2356_v39, 0.0  ;;  %v2545_v3 = vmul.f32 %v2356_v39, %v2356_v39 }
 0x32d   : > { %v2493_v15 = vadd.f32 %v2492_v7, %v2491_v63  ;;  %v2596_v1 = vsel %vm236_vm0, %v2546_v42, 0.0 }
 0x32e   : > { %v2594_v14 = vsel %vm236_vm0, %v2545_v3, 0.0 }
 0x32f   : > { %v2595_v60 = vadd.f32 %v2594_v14, %v2593_v38  ;;  %v2495_v8 = vadd.f32 %v2494_v40, %v2493_v15 }
 0x331   : > { %v2597_v17 = vadd.f32 %v2596_v1, %v2595_v60 }
 0x336   : > { %v2854_v37 = vpop.f32.mrb[4].mxu1 }
 0x337   : > { %2446 = vst.msk [vmem:[%s4605_s6 + $0xa8] sm:$0xff] %vm236_vm0, %v2854_v37  ;;  %v2366_v48 = vpop.f32.mrb[5].mxu1  ;;  %v2548_v51 = vmul.f32 %v2854_v37, %v2854_v37  ;;  %v2498_v55 = vsel %vm236_vm0, %v2854_v37, 0.0 }
 0x338   : > { %2445 = vst.msk [vmem:[%s4605_s6 + $0xa0] sm:$0xff] %vm236_vm0, %v2366_v48  ;;  %v2496_v58 = vsel %vm236_vm0, %v2366_v48, 0.0  ;;  %v2547_v41 = vmul.f32 %v2366_v48, %v2366_v48 }
 0x339   : > { %v2497_v22 = vadd.f32 %v2496_v58, %v2495_v8  ;;  %v2600_v0 = vsel %vm236_vm0, %v2548_v51, 0.0 }
 0x33a   : > { %v2598_v36 = vsel %vm236_vm0, %v2547_v41, 0.0 }
 0x33b   : > { %v2599_v2 = vadd.f32 %v2598_v36, %v2597_v17  ;;  %v2499_v26 = vadd.f32 %v2498_v55, %v2497_v22 }
 0x33d   : > { %v2601_v28 = vadd.f32 %v2600_v0, %v2599_v2 }
 0x342   : > { %v2857_v44 = vpop.f32.mrb[6].mxu1 }
 0x343   : > { %2448 = vst.msk [vmem:[%s4605_s6 + $0xb8] sm:$0xff] %vm236_vm0, %v2857_v44  ;;  %v2376_v11 = vpop.f32.mrb[7].mxu1  ;;  %v2550_v43 = vmul.f32 %v2857_v44, %v2857_v44  ;;  %v2502_v12 = vsel %vm236_vm0, %v2857_v44, 0.0 }
 0x344   : > { %2447 = vst.msk [vmem:[%s4605_s6 + $0xb0] sm:$0xff] %vm236_vm0, %v2376_v11  ;;  %v2500_v30 = vsel %vm236_vm0, %v2376_v11, 0.0  ;;  %v2549_v47 = vmul.f32 %v2376_v11, %v2376_v11 }
 0x345   : > { %v2501_v10 = vadd.f32 %v2500_v30, %v2499_v26  ;;  %v2604_v23 = vsel %vm236_vm0, %v2550_v43, 0.0 }
 0x346   : > { %v2602_v16 = vsel %vm236_vm0, %v2549_v47, 0.0 }
 0x347   : > { %v2603_v5 = vadd.f32 %v2602_v16, %v2601_v28  ;;  %v2503_v21 = vadd.f32 %v2502_v12, %v2501_v10 }
 0x349   : > { %v2605_v4 = vadd.f32 %v2604_v23, %v2603_v5 }
 0x34e   : > { %v2860_v31 = vpop.f32.mrb[8].mxu1 }
 0x34f   : > { %2450 = vst.msk [vmem:[%s4605_s6 + $0xc8] sm:$0xff] %vm236_vm0, %v2860_v31  ;;  %v2386_v45 = vpop.f32.mrb[9].mxu1  ;;  %v2552_v54 = vmul.f32 %v2860_v31, %v2860_v31  ;;  %v2506_v53 = vsel %vm236_vm0, %v2860_v31, 0.0 }
 0x350   : > { %2449 = vst.msk [vmem:[%s4605_s6 + $0xc0] sm:$0xff] %vm236_vm0, %v2386_v45  ;;  %v2504_v13 = vsel %vm236_vm0, %v2386_v45, 0.0  ;;  %v2551_v50 = vmul.f32 %v2386_v45, %v2386_v45 }
 0x351   : > { %v2505_v25 = vadd.f32 %v2504_v13, %v2503_v21  ;;  %v2608_v18 = vsel %vm236_vm0, %v2552_v54, 0.0 }
 0x352   : > { %v2606_v62 = vsel %vm236_vm0, %v2551_v50, 0.0 }
 0x353   : > { %v2607_v56 = vadd.f32 %v2606_v62, %v2605_v4  ;;  %v2507_v24 = vadd.f32 %v2506_v53, %v2505_v25 }
 0x355   : > { %v2609_v61 = vadd.f32 %v2608_v18, %v2607_v56 }
 0x35a   : > { %v2863_v27 = vpop.f32.mrb[10].mxu1 }
 0x35b   : > { %2452 = vst.msk [vmem:[%s4605_s6 + $0xd8] sm:$0xff] %vm236_vm0, %v2863_v27  ;;  %v2396_v34 = vpop.f32.mrb[11].mxu1  ;;  %v2554_v19 = vmul.f32 %v2863_v27, %v2863_v27  ;;  %v2510_v20 = vsel %vm236_vm0, %v2863_v27, 0.0 }
 0x35c   : > { %2451 = vst.msk [vmem:[%s4605_s6 + $0xd0] sm:$0xff] %vm236_vm0, %v2396_v34  ;;  %v2508_v46 = vsel %vm236_vm0, %v2396_v34, 0.0  ;;  %v2553_v59 = vmul.f32 %v2396_v34, %v2396_v34 }
 0x35d   : > { %v2509_v9 = vadd.f32 %v2508_v46, %v2507_v24  ;;  %v2612_v6 = vsel %vm236_vm0, %v2554_v19, 0.0 }
 0x35e   : > { %v2610_v35 = vsel %vm236_vm0, %v2553_v59, 0.0 }
 0x35f   : > { %v2611_v52 = vadd.f32 %v2610_v35, %v2609_v61  ;;  %v2511_v33 = vadd.f32 %v2510_v20, %v2509_v9 }
 0x361   : > { %v2613_v57 = vadd.f32 %v2612_v6, %v2611_v52 }
 0x366   : > { %v2866_v49 = vpop.f32.mrb[12].mxu1 }
 0x367   : > { %2454 = vst.msk [vmem:[%s4605_s6 + $0xe8] sm:$0xff] %vm236_vm0, %v2866_v49  ;;  %v2406_v63 = vpop.f32.mrb[13].mxu1  ;;  %v2556_v32 = vmul.f32 %v2866_v49, %v2866_v49  ;;  %v2514_v42 = vsel %vm236_vm0, %v2866_v49, 0.0 }
 0x368   : > { %2453 = vst.msk [vmem:[%s4605_s6 + $0xe0] sm:$0xff] %vm236_vm0, %v2406_v63  ;;  %v2512_v38 = vsel %vm236_vm0, %v2406_v63, 0.0  ;;  %v2555_v29 = vmul.f32 %v2406_v63, %v2406_v63 }
 0x369   : > { %v2513_v39 = vadd.f32 %v2512_v38, %v2511_v33  ;;  %v2616_v40 = vsel %vm236_vm0, %v2556_v32, 0.0 }
 0x36a   : > { %v2614_v7 = vsel %vm236_vm0, %v2555_v29, 0.0 }
 0x36b   : > { %v2615_v3 = vadd.f32 %v2614_v7, %v2613_v57  ;;  %v2515_v15 = vadd.f32 %v2514_v42, %v2513_v39 }
 0x36d   : > { %v2617_v14 = vadd.f32 %v2616_v40, %v2615_v3 }
 0x375   : > { %v2869_v60 = vpop.f32.mrb[14].mxu1 }
 0x376   : > { %2456 = vst.msk [vmem:[%s4605_s6 + $0xf8] sm:$0xff] %vm236_vm0, %v2869_v60  ;;  %v2416_v8 = vpop.f32.mrb[15].mxu1  ;;  %v2558_v1 = vmul.f32 %v2869_v60, %v2869_v60  ;;  %v2518_v51 = vsel %vm236_vm0, %v2869_v60, 0.0 }
 0x377   : > { %2455 = vst.msk [vmem:[%s4605_s6 + $0xf0] sm:$0xff] %vm236_vm0, %v2416_v8  ;;  %v2516_v17 = vsel %vm236_vm0, %v2416_v8, 0.0  ;;  %v2557_v37 = vmul.f32 %v2416_v8, %v2416_v8 }
 0x378   : > { %v2517_v48 = vadd.f32 %v2516_v17, %v2515_v15  ;;  %v2620_v55 = vsel %vm236_vm0, %v2558_v1, 0.0 }
 0x379   : > { %v2618_v58 = vsel %vm236_vm0, %v2557_v37, 0.0 }
 0x37a   : > { %v2519_v41 = vadd.f32 %v2518_v51, %v2517_v48  ;;  %v2619_v22 = vadd.f32 %v2618_v58, %v2617_v14 }
 0x37c   : > { %v2520_v36 = vrot.slane %v2519_v41, 4  ;;  %v2621_v2 = vadd.f32 %v2620_v55, %v2619_v22 }
 0x37e   : > { %v2521_v26 = vadd.f32 %v2520_v36, %v2519_v41  ;;  %v2622_v0 = vrot.slane %v2621_v2, 4 }
 0x380   : > { %v2522_v28 = vrot.slane %v2521_v26, 2  ;;  %v2623_v44 = vadd.f32 %v2622_v0, %v2621_v2 }
 0x382   : > { %v2523_v11 = vadd.f32 %v2522_v28, %v2521_v26  ;;  %v2624_v43 = vrot.slane %v2623_v44, 2 }
 0x384   : > { %v2524_v30 = vrot.slane %v2523_v11, 1  ;;  %v2625_v47 = vadd.f32 %v2624_v43, %v2623_v44 }
 0x386   : > { %v2525_v10 = vadd.f32 %v2524_v30, %v2523_v11  ;;  %v2626_v12 = vrot.slane %v2625_v47, 1 }
 0x388   : > { %2526 = vst.msk [vmem:[%s235_s9] sm:$0x1] %vm245_vm2, %v2525_v10  ;;  %v2627_v16 = vadd.f32 %v2626_v12, %v2625_v47 }
 0x38a   : > { %2628 = vst.msk [vmem:[%s235_s9 + $0x1] sm:$0x1] %vm245_vm2, %v2627_v16 }
 0x38b PF: > { %s16_s18 = sadd.s32 1, %s2915_s18  }
 0x38c   : > { %p13_p4 = scmp.ge.s32.totalorder %s16_s18, 4  }
 0x38e   :  { %15 = sbr.rel (!%p13_p4) target bundleno = 1 (0x1), region = 81 }

// kernel: basic_block_forward.2
= control target key start
LH: loop header
LB: loop body
LE: loop exit
PB: predicated region body
PF: predicated region fallthrough
CT: control target
= control target key end

     0   :  { %s3299_s18 = smov 0   ;;  %s5197_s0 = inlined_call_operand.vmem [shape: f32[2,18,18,4], index: 0, kind: input, shape index: {}]   ;;  %s5198_s1 = inlined_call_operand.vmem [shape: f32[36,16], index: 1, kind: input, shape index: {}]   ;;  %s5199_s2 = inlined_call_operand.vmem [shape: f32[2,256,8], index: 2, kind: output, shape index: {0}]   ;;  %s5200_s3 = inlined_call_operand.vmem [shape: f32[2,2,8], index: 3, kind: output, shape index: {1}]   ;;  %s5201_s4 = inlined_call_operand.vmem [shape: f32[2,256,8], index: 4, kind: output, shape index: {2}]   ;;  %s5202_s5 = inlined_call_operand.vmem [shape: f32[2,2,8], index: 5, kind: output, shape index: {3}]  }
   0x1 LB: > { %s2892_s19 = sadd.s32 4294967295, %s3262_s18   ;;  %p2896_p0 = scmp.ge.s32.totalorder %s3262_s18, 1  ;;  %s3262_s18 = sphi %s3299_s18, %s16_s18  }
   0x2   : > { %p194_p1 = scmp.lt.s32.totalorder %s3262_s18, 3 }
   0x4   : > { %p195_p2 = pnand %p2896_p0, %p194_p1 }
   0x6   : > { %198 = sbr.rel (%p195_p2) target bundleno = 1001 (0x3e9), region = 28 }
   0xd   : > { %p235_p3 = scmp.lt.s32.totalorder %s2892_s19, 1  ;;  %s3264_s24 = smov 4   ;;  %vm610_vm0 = vcmask 31744   ;;  %vm643_vm1 = vcmask 64512   ;;  %vm676_vm2 = vcmask 97280   ;;  %vm1999_vm3 = vcmask 1043456  }
   0xe   : > { %s3265_s25 = smov 8   ;;  %s3266_s30 = smov 12   ;;  %vm1254_vm4 = vcmask 195680   ;;  %vm1832_vm5 = vcmask 294080   ;;  %vm1902_vm6 = vcmask 293888   ;;  %vm2593_vm7 = vcmask 130112  }
   0xf   : > { %s5333_s19 = smov (!%p235_p3, %s2892_s19), 1  ;;  %s3267_s10 = smov 24   ;;  %vm2329_vm8 = vcmask 57344  }
  0x10   : > { %s3242_s20 = smul.u32 432, %s5333_s19  ;;  %s3131_s13 = sshll.u32 %s5333_s19, 8 }
  0x11   : > { %s4880_s16 = scalar_lea.vmem %s5199_s2, %s3131_s13  ;;  %s3268_s17 = smov 120  }
  0x12   : > { %s3313_s23 = scalar_lea.vmem %s5197_s0, %s3242_s20  ;;  %s5055_s22 = scalar_lea.vmem %s5201_s4, %s3131_s13 }
  0x13   : > { %v3316_v0 = vld [vmem:[%s3313_s23 + $0x19] sm:$0xff]  ;;  %v290_v1 = vld [vmem:[%s3313_s23 + $0x1] sm:$0xff]  ;;  %v291_v3 = vld [vmem:[%s3313_s23 + $0x9] sm:$0xff] }
  0x14   : > { %390 = vrot.lane.b32.xlu1 %v3316_v0, %s3264_s24  ;;  %386 = vrot.lane.b32.xlu0 %v290_v1, %s3264_s24  ;;  %v3323_v2 = vld [vmem:[%s3313_s23 + $0x21] sm:$0xff]  ;;  %v3330_v4 = vld [vmem:[%s3313_s23 + $0x39] sm:$0xff] }
  0x15   : > { %v3333_v5 = vld [vmem:[%s3313_s23 + $0x31] sm:$0xff]  ;;  %v3343_v7 = vld [vmem:[%s3313_s23 + $0x49] sm:$0xff]  ;;  %v3353_v9 = vld [vmem:[%s3313_s23 + $0x61] sm:$0xff] }
  0x16   : > { %v3340_v6 = vld [vmem:[%s3313_s23 + $0x51] sm:$0xff]  ;;  %v3350_v8 = vld [vmem:[%s3313_s23 + $0x69] sm:$0xff]  ;;  %v3360_v10 = vld [vmem:[%s3313_s23 + $0x81] sm:$0xff] }
  0x17   : > { %v3363_v11 = vld [vmem:[%s3313_s23 + $0x79] sm:$0xff]  ;;  %v3373_v13 = vld [vmem:[%s3313_s23 + $0x91] sm:$0xff]  ;;  %v3383_v15 = vld [vmem:[%s3313_s23 + $0xa9] sm:$0xff] }
  0x18   : > { %392 = vrot.lane.b32.xlu1 %v3323_v2, %s3264_s24  ;;  %388 = vrot.lane.b32.xlu0 %v291_v3, %s3264_s24  ;;  %v3370_v12 = vld [vmem:[%s3313_s23 + $0x99] sm:$0xff]  ;;  %v3380_v14 = vld [vmem:[%s3313_s23 + $0xb1] sm:$0xff] }
  0x19   : > { %v3390_v16 = vld [vmem:[%s3313_s23 + $0xc9] sm:$0xff]  ;;  %v3393_v17 = vld [vmem:[%s3313_s23 + $0xc1] sm:$0xff]  ;;  %v3403_v19 = vld [vmem:[%s3313_s23 + $0xd9] sm:$0xff] }
  0x1a   : > { %v3400_v18 = vld [vmem:[%s3313_s23 + $0xe1] sm:$0xff]  ;;  %v3410_v20 = vld [vmem:[%s3313_s23 + $0xf9] sm:$0xff]  ;;  %v3413_v21 = vld [vmem:[%s3313_s23 + $0xf1] sm:$0xff] }
  0x1b   : > { %v3420_v22 = vld [vmem:[%s3313_s23 + $0x111] sm:$0xff]  ;;  %v3423_v23 = vld [vmem:[%s3313_s23 + $0x109] sm:$0xff]  ;;  %v3433_v25 = vld [vmem:[%s3313_s23 + $0x121] sm:$0xff] }
  0x1c   : > { %396 = vrot.lane.b32.xlu1 %v3330_v4, %s3264_s24  ;;  %394 = vrot.lane.b32.xlu0 %v3333_v5, %s3264_s24  ;;  %v3430_v24 = vld [vmem:[%s3313_s23 + $0x129] sm:$0xff]  ;;  %v3440_v26 = vld [vmem:[%s3313_s23 + $0x141] sm:$0xff] }
  0x1d   : > { %v3443_v27 = vld [vmem:[%s3313_s23 + $0x139] sm:$0xff]  ;;  %v3451_v29 = vld [vmem:[%s3313_s23 + $0x151] sm:$0xff]  ;;  %v320_v31 = vld [vmem:[%s3313_s23 + $0x169] sm:$0xff] }
  0x1e   : > { %v319_v28 = vld [vmem:[%s3313_s23 + $0x159] sm:$0xff]  ;;  %v321_v30 = vld [vmem:[%s3313_s23 + $0x171] sm:$0xff]  ;;  %v322_v33 = vld [vmem:[%s3313_s23 + $0x2] sm:$0xff] }
  0x1f   : > { %v323_v32 = vld [vmem:[%s3313_s23 + $0xa] sm:$0xff]  ;;  %v325_v34 = vld [vmem:[%s3313_s23 + $0x22] sm:$0xff]  ;;  %v324_v35 = vld [vmem:[%s3313_s23 + $0x1a] sm:$0xff] }
  0x20   : > { %400 = vrot.lane.b32.xlu1 %v3340_v6, %s3264_s24  ;;  %398 = vrot.lane.b32.xlu0 %v3343_v7, %s3264_s24  ;;  %v327_v36 = vld [vmem:[%s3313_s23 + $0x3a] sm:$0xff]  ;;  %v326_v37 = vld [vmem:[%s3313_s23 + $0x32] sm:$0xff] }
  0x21   : > { %v329_v38 = vld [vmem:[%s3313_s23 + $0x52] sm:$0xff]  ;;  %v328_v39 = vld [vmem:[%s3313_s23 + $0x4a] sm:$0xff]  ;;  %v3480_v41 = vld [vmem:[%s3313_s23 + $0x62] sm:$0xff] }
  0x22   : > { %v3477_v40 = vld [vmem:[%s3313_s23 + $0x6a] sm:$0xff]  ;;  %v3487_v42 = vld [vmem:[%s3313_s23 + $0x82] sm:$0xff]  ;;  %v3490_v43 = vld [vmem:[%s3313_s23 + $0x7a] sm:$0xff] }
  0x23   : > { %v3497_v44 = vld [vmem:[%s3313_s23 + $0x9a] sm:$0xff]  ;;  %v3500_v45 = vld [vmem:[%s3313_s23 + $0x92] sm:$0xff]  ;;  %v3510_v47 = vld [vmem:[%s3313_s23 + $0xaa] sm:$0xff] }
  0x24   : > { %404 = vrot.lane.b32.xlu1 %v3350_v8, %s3264_s24  ;;  %402 = vrot.lane.b32.xlu0 %v3353_v9, %s3264_s24  ;;  %v3507_v46 = vld [vmem:[%s3313_s23 + $0xb2] sm:$0xff]  ;;  %v3517_v48 = vld [vmem:[%s3313_s23 + $0xca] sm:$0xff] }
  0x25   : > { %v3520_v49 = vld [vmem:[%s3313_s23 + $0xc2] sm:$0xff]  ;;  %v3527_v50 = vld [vmem:[%s3313_s23 + $0xda] sm:$0xff] }
  0x28   : > { %408 = vrot.lane.b32.xlu1 %v3360_v10, %s3264_s24  ;;  %406 = vrot.lane.b32.xlu0 %v3363_v11, %s3264_s24 }
  0x2c   : > { %412 = vrot.lane.b32.xlu1 %v3370_v12, %s3264_s24  ;;  %410 = vrot.lane.b32.xlu0 %v3373_v13, %s3264_s24 }
  0x30   : > { %416 = vrot.lane.b32.xlu1 %v3380_v14, %s3264_s24  ;;  %414 = vrot.lane.b32.xlu0 %v3383_v15, %s3264_s24 }
  0x34   : > { %420 = vrot.lane.b32.xlu1 %v3390_v16, %s3264_s24  ;;  %418 = vrot.lane.b32.xlu0 %v3393_v17, %s3264_s24 }
  0x38   : > { %424 = vrot.lane.b32.xlu1 %v3400_v18, %s3264_s24  ;;  %422 = vrot.lane.b32.xlu0 %v3403_v19, %s3264_s24 }
  0x3c   : > { %428 = vrot.lane.b32.xlu1 %v3410_v20, %s3264_s24  ;;  %426 = vrot.lane.b32.xlu0 %v3413_v21, %s3264_s24 }
  0x40   : > { %432 = vrot.lane.b32.xlu1 %v3420_v22, %s3264_s24  ;;  %430 = vrot.lane.b32.xlu0 %v3423_v23, %s3264_s24 }
  0x44   : > { %436 = vrot.lane.b32.xlu1 %v3430_v24, %s3264_s24  ;;  %434 = vrot.lane.b32.xlu0 %v3433_v25, %s3264_s24 }
  0x48   : > { %440 = vrot.lane.b32.xlu1 %v3440_v26, %s3264_s24  ;;  %438 = vrot.lane.b32.xlu0 %v3443_v27, %s3264_s24 }
  0x4c   : > { %444 = vrot.lane.b32.xlu1 %v319_v28, %s3264_s24  ;;  %442 = vrot.lane.b32.xlu0 %v3451_v29, %s3264_s24 }
  0x50   : > { %448 = vrot.lane.b32.xlu1 %v321_v30, %s3264_s24  ;;  %446 = vrot.lane.b32.xlu0 %v320_v31, %s3264_s24 }
  0x54   : > { %516 = vrot.lane.b32.xlu1 %v323_v32, %s3265_s25  ;;  %514 = vrot.lane.b32.xlu0 %v322_v33, %s3265_s25 }
  0x58   : > { %520 = vrot.lane.b32.xlu1 %v325_v34, %s3265_s25  ;;  %518 = vrot.lane.b32.xlu0 %v324_v35, %s3265_s25 }
  0x5c   : > { %524 = vrot.lane.b32.xlu1 %v327_v36, %s3265_s25  ;;  %522 = vrot.lane.b32.xlu0 %v326_v37, %s3265_s25 }
  0x60   : > { %528 = vrot.lane.b32.xlu1 %v329_v38, %s3265_s25  ;;  %526 = vrot.lane.b32.xlu0 %v328_v39, %s3265_s25 }
  0x64   : > { %532 = vrot.lane.b32.xlu1 %v3477_v40, %s3265_s25  ;;  %530 = vrot.lane.b32.xlu0 %v3480_v41, %s3265_s25 }
  0x68   : > { %536 = vrot.lane.b32.xlu1 %v3487_v42, %s3265_s25  ;;  %534 = vrot.lane.b32.xlu0 %v3490_v43, %s3265_s25 }
  0x6c   : > { %540 = vrot.lane.b32.xlu1 %v3497_v44, %s3265_s25  ;;  %538 = vrot.lane.b32.xlu0 %v3500_v45, %s3265_s25 }
  0x70   : > { %544 = vrot.lane.b32.xlu1 %v3507_v46, %s3265_s25  ;;  %542 = vrot.lane.b32.xlu0 %v3510_v47, %s3265_s25 }
  0x74   : > { %548 = vrot.lane.b32.xlu1 %v3517_v48, %s3265_s25  ;;  %546 = vrot.lane.b32.xlu0 %v3520_v49, %s3265_s25 }
  0x78   : > { %838 = vrot.lane.b32.xlu1 %v3316_v0, %s3264_s24  ;;  %550 = vrot.lane.b32.xlu0 %v3527_v50, %s3265_s25 }
  0x7c   : > { %966 = vrot.lane.b32.xlu1 %v324_v35, %s3265_s25  ;;  %840 = vrot.lane.b32.xlu0 %v3323_v2, %s3264_s24 }
  0x80   : > { %968 = vrot.lane.b32.xlu1 %v325_v34, %s3265_s25  ;;  %1416 = vrot.lane.b32.xlu0 %v3333_v5, %s3264_s24 }
  0x84   : > { %1544 = vrot.lane.b32.xlu1 %v326_v37, %s3265_s25  ;;  %1418 = vrot.lane.b32.xlu0 %v3330_v4, %s3264_s24 }
  0x86   : > { %v3542_v51 = vpop.permute.xlu1 %390  ;;  %v3544_v52 = vpop.permute.xlu0 %386 }
  0x88   : > { %842 = vrot.lane.b32.xlu1 %v3333_v5, %s3264_s24  ;;  %1546 = vrot.lane.b32.xlu0 %v327_v36, %s3265_s25 }
  0x8a   : > { %v3549_v53 = vpop.permute.xlu1 %392  ;;  %v3551_v54 = vpop.permute.xlu0 %388 }
  0x8c   : > { %970 = vrot.lane.b32.xlu1 %v326_v37, %s3265_s25  ;;  %844 = vrot.lane.b32.xlu0 %v3330_v4, %s3264_s24  ;;  %v258_v37 = vld [vmem:[%s3313_s23] sm:$0xff] }
  0x8e   : > { %v3556_v55 = vpop.permute.xlu1 %396  ;;  %v3558_v56 = vpop.permute.xlu0 %394 }
  0x90   : > { %972 = vrot.lane.b32.xlu1 %v327_v36, %s3265_s25  ;;  %1420 = vrot.lane.b32.xlu0 %v3343_v7, %s3264_s24 }
  0x92   : > { %v3563_v57 = vpop.permute.xlu1 %400  ;;  %v3565_v58 = vpop.permute.xlu0 %398 }
  0x94   : > { %1548 = vrot.lane.b32.xlu1 %v328_v39, %s3265_s25  ;;  %1422 = vrot.lane.b32.xlu0 %v3340_v6, %s3264_s24 }
  0x96   : > { %v3570_v59 = vpop.permute.xlu1 %404  ;;  %v3572_v60 = vpop.permute.xlu0 %402 }
  0x98   : > { %846 = vrot.lane.b32.xlu1 %v3343_v7, %s3264_s24  ;;  %1550 = vrot.lane.b32.xlu0 %v329_v38, %s3265_s25 }
  0x9a   : > { %v3577_v61 = vpop.permute.xlu1 %408  ;;  %v3579_v62 = vpop.permute.xlu0 %406 }
  0x9c   : > { %974 = vrot.lane.b32.xlu1 %v328_v39, %s3265_s25  ;;  %848 = vrot.lane.b32.xlu0 %v3340_v6, %s3264_s24 }
  0x9e   : > { %v3584_v63 = vpop.permute.xlu1 %412  ;;  %v3586_v0 = vpop.permute.xlu0 %410 }
  0xa0   : > { %976 = vrot.lane.b32.xlu1 %v329_v38, %s3265_s25  ;;  %1424 = vrot.lane.b32.xlu0 %v3353_v9, %s3264_s24  ;;  %v259_v38 = vld [vmem:[%s3313_s23 + $0x8] sm:$0xff] }
  0xa1   : > { %v612_v39 = vsel %vm610_vm0, %v259_v38, %v3551_v54  ;;  %v3690_v38 = vld [vmem:[%s3313_s23 + $0x38] sm:$0xff] }
  0xa2   : > { %v3591_v1 = vpop.permute.xlu1 %416  ;;  %v3593_v2 = vpop.permute.xlu0 %414 }
  0xa4   : > { %1552 = vrot.lane.b32.xlu1 %v3480_v41, %s3265_s25  ;;  %1426 = vrot.lane.b32.xlu0 %v3350_v8, %s3264_s24 }
  0xa6   : > { %v3599_v3 = vpop.permute.xlu1 %420  ;;  %v3601_v4 = vpop.permute.xlu0 %418 }
  0xa8   : > { %850 = vrot.lane.b32.xlu1 %v3353_v9, %s3264_s24  ;;  %1554 = vrot.lane.b32.xlu0 %v3477_v40, %s3265_s25 }
  0xaa   : > { %v3607_v5 = vpop.permute.xlu1 %424  ;;  %v3609_v6 = vpop.permute.xlu0 %422 }
  0xab   : > { %5226 = vst [vmem:[#allocation3_spill] sm:$0xff] %v3607_v5 }
  0xac   : > { %978 = vrot.lane.b32.xlu1 %v3480_v41, %s3265_s25  ;;  %852 = vrot.lane.b32.xlu0 %v3350_v8, %s3264_s24 }
  0xae   : > { %v3615_v7 = vpop.permute.xlu1 %428  ;;  %v3617_v28 = vpop.permute.xlu0 %426 }
  0xaf   : > { %5227 = vst [vmem:[#allocation4_spill] sm:$0xff] %v3615_v7  ;;  %5228 = vst [vmem:[#allocation5_spill] sm:$0xff] %v3617_v28 }
  0xb0   : > { %980 = vrot.lane.b32.xlu1 %v3477_v40, %s3265_s25  ;;  %1428 = vrot.lane.b32.xlu0 %v3363_v11, %s3264_s24 }
  0xb2   : > { %v3623_v9 = vpop.permute.xlu1 %432  ;;  %v3625_v30 = vpop.permute.xlu0 %430 }
  0xb3   : > { %5229 = vst [vmem:[#allocation6_spill] sm:$0xff] %v3623_v9  ;;  %5230 = vst [vmem:[#allocation7_spill] sm:$0xff] %v3625_v30 }
  0xb4   : > { %1556 = vrot.lane.b32.xlu1 %v3490_v43, %s3265_s25  ;;  %1430 = vrot.lane.b32.xlu0 %v3360_v10, %s3264_s24 }
  0xb6   : > { %v3631_v8 = vpop.permute.xlu1 %436  ;;  %v3633_v31 = vpop.permute.xlu0 %434 }
  0xb7   : > { %5231 = vst [vmem:[#allocation8_spill] sm:$0xff] %v3631_v8  ;;  %5232 = vst [vmem:[#allocation9_spill] sm:$0xff] %v3633_v31 }
  0xb8   : > { %854 = vrot.lane.b32.xlu1 %v3363_v11, %s3264_s24  ;;  %1558 = vrot.lane.b32.xlu0 %v3487_v42, %s3265_s25 }
  0xba   : > { %v3639_v32 = vpop.permute.xlu1 %440  ;;  %v3641_v33 = vpop.permute.xlu0 %438 }
  0xbb   : > { %5233 = vst [vmem:[#allocation10_spill] sm:$0xff] %v3639_v32  ;;  %5234 = vst [vmem:[#allocation11_spill] sm:$0xff] %v3641_v33 }
  0xbc   : > { %982 = vrot.lane.b32.xlu1 %v3490_v43, %s3265_s25  ;;  %856 = vrot.lane.b32.xlu0 %v3360_v10, %s3264_s24  ;;  %v611_v10 = vsel %vm610_vm0, %v258_v37, %v3544_v52  ;;  %v3673_v43 = vld [vmem:[%s3313_s23 + $0x20] sm:$0xff] }
  0xbd   : > { %v614_v54 = vsel %vm610_vm0, %v3673_v43, %v3549_v53 }
  0xbe   : > { %v3647_v34 = vpop.permute.xlu1 %444  ;;  %v3649_v35 = vpop.permute.xlu0 %442 }
  0xbf   : > { %5235 = vst [vmem:[#allocation12_spill] sm:$0xff] %v3647_v34  ;;  %5236 = vst [vmem:[#allocation13_spill] sm:$0xff] %v3649_v35 }
  0xc0   : > { %984 = vrot.lane.b32.xlu1 %v3487_v42, %s3265_s25  ;;  %1432 = vrot.lane.b32.xlu0 %v3373_v13, %s3264_s24  ;;  %v3670_v42 = vld [vmem:[%s3313_s23 + $0x18] sm:$0xff] }
  0xc1   : > { %v613_v52 = vsel %vm610_vm0, %v3670_v42, %v3542_v51  ;;  %v616_v51 = vsel %vm610_vm0, %v3690_v38, %v3556_v55 }
  0xc2   : > { %v3655_v11 = vpop.permute.xlu1 %448  ;;  %v3657_v36 = vpop.permute.xlu0 %446 }
  0xc3   : > { %5237 = vst [vmem:[#allocation14_spill] sm:$0xff] %v3655_v11  ;;  %5238 = vst [vmem:[#allocation15_spill] sm:$0xff] %v3657_v36 }
  0xc4   : > { %1560 = vrot.lane.b32.xlu1 %v3500_v45, %s3265_s25  ;;  %1434 = vrot.lane.b32.xlu0 %v3370_v12, %s3264_s24 }
  0xc6   : > { %v517_v40 = vpop.permute.xlu1 %516  ;;  %v515_v41 = vpop.permute.xlu0 %514 }
  0xc7   : > { %v645_v11 = vsel %vm643_vm1, %v612_v39, %v517_v40  ;;  %v644_v36 = vsel %vm643_vm1, %v611_v10, %v515_v41  ;;  %v3710_v41 = vld [vmem:[%s3313_s23 + $0x50] sm:$0xff] }
  0xc8   : > { %678 = vst.msk [vmem:[#allocation2 + $0x8] sm:$0xff] %vm676_vm2, %v645_v11  ;;  %677 = vst.msk [vmem:[#allocation2] sm:$0xff] %vm676_vm2, %v644_v36  ;;  %858 = vrot.lane.b32.xlu1 %v3373_v13, %s3264_s24  ;;  %1562 = vrot.lane.b32.xlu0 %v3497_v44, %s3265_s25  ;;  %v3693_v36 = vld [vmem:[%s3313_s23 + $0x30] sm:$0xff]  ;;  %v618_v55 = vsel %vm610_vm0, %v3710_v41, %v3563_v57 }
  0xc9   : > { %v615_v53 = vsel %vm610_vm0, %v3693_v36, %v3558_v56 }
  0xca   : > { %v521_v37 = vpop.permute.xlu1 %520  ;;  %v519_v11 = vpop.permute.xlu0 %518 }
  0xcb   : > { %v647_v13 = vsel %vm643_vm1, %v614_v54, %v521_v37  ;;  %v646_v10 = vsel %vm643_vm1, %v613_v52, %v519_v11  ;;  %v3713_v52 = vld [vmem:[%s3313_s23 + $0x48] sm:$0xff] }
  0xcc   : > { %680 = vst.msk [vmem:[#allocation2 + $0x18] sm:$0xff] %vm676_vm2, %v647_v13  ;;  %679 = vst.msk [vmem:[#allocation2 + $0x10] sm:$0xff] %vm676_vm2, %v646_v10  ;;  %986 = vrot.lane.b32.xlu1 %v3500_v45, %s3265_s25  ;;  %860 = vrot.lane.b32.xlu0 %v3370_v12, %s3264_s24  ;;  %v617_v56 = vsel %vm610_vm0, %v3713_v52, %v3565_v58  ;;  %v3730_v11 = vld [vmem:[%s3313_s23 + $0x68] sm:$0xff]  ;;  %v3733_v13 = vld [vmem:[%s3313_s23 + $0x60] sm:$0xff] }
  0xcd   : > { %v620_v57 = vsel %vm610_vm0, %v3730_v11, %v3570_v59  ;;  %v619_v58 = vsel %vm610_vm0, %v3733_v13, %v3572_v60 }
  0xce   : > { %v525_v39 = vpop.permute.xlu1 %524  ;;  %v523_v40 = vpop.permute.xlu0 %522 }
  0xcf   : > { %v649_v45 = vsel %vm643_vm1, %v616_v51, %v525_v39  ;;  %v648_v12 = vsel %vm643_vm1, %v615_v53, %v523_v40  ;;  %v3750_v39 = vld [vmem:[%s3313_s23 + $0x80] sm:$0xff]  ;;  %v3753_v40 = vld [vmem:[%s3313_s23 + $0x78] sm:$0xff] }
  0xd0   : > { %682 = vst.msk [vmem:[#allocation2 + $0x28] sm:$0xff] %vm676_vm2, %v649_v45  ;;  %681 = vst.msk [vmem:[#allocation2 + $0x20] sm:$0xff] %vm676_vm2, %v648_v12  ;;  %988 = vrot.lane.b32.xlu1 %v3497_v44, %s3265_s25  ;;  %1436 = vrot.lane.b32.xlu0 %v3383_v15, %s3264_s24  ;;  %v622_v59 = vsel %vm610_vm0, %v3750_v39, %v3577_v61  ;;  %v621_v60 = vsel %vm610_vm0, %v3753_v40, %v3579_v62 }
  0xd2   : > { %v529_v54 = vpop.permute.xlu1 %528  ;;  %v527_v37 = vpop.permute.xlu0 %526 }
  0xd3   : > { %v651_v44 = vsel %vm643_vm1, %v618_v55, %v529_v54  ;;  %v650_v10 = vsel %vm643_vm1, %v617_v56, %v527_v37  ;;  %v3770_v54 = vld [vmem:[%s3313_s23 + $0x98] sm:$0xff]  ;;  %v3773_v37 = vld [vmem:[%s3313_s23 + $0x90] sm:$0xff] }
  0xd4   : > { %684 = vst.msk [vmem:[#allocation2 + $0x38] sm:$0xff] %vm676_vm2, %v651_v44  ;;  %683 = vst.msk [vmem:[#allocation2 + $0x30] sm:$0xff] %vm676_vm2, %v650_v10  ;;  %1564 = vrot.lane.b32.xlu1 %v3510_v47, %s3265_s25  ;;  %1438 = vrot.lane.b32.xlu0 %v3380_v14, %s3264_s24  ;;  %v624_v61 = vsel %vm610_vm0, %v3770_v54, %v3584_v63  ;;  %v623_v62 = vsel %vm610_vm0, %v3773_v37, %v3586_v0 }
  0xd6   : > { %v533_v51 = vpop.permute.xlu1 %532  ;;  %v531_v53 = vpop.permute.xlu0 %530 }
  0xd7   : > { %v653_v45 = vsel %vm643_vm1, %v620_v57, %v533_v51  ;;  %v652_v12 = vsel %vm643_vm1, %v619_v58, %v531_v53  ;;  %v3790_v58 = vld [vmem:[%s3313_s23 + $0xb0] sm:$0xff]  ;;  %v3793_v51 = vld [vmem:[%s3313_s23 + $0xa8] sm:$0xff] }
  0xd8   : > { %686 = vst.msk [vmem:[#allocation2 + $0x48] sm:$0xff] %vm676_vm2, %v653_v45  ;;  %685 = vst.msk [vmem:[#allocation2 + $0x40] sm:$0xff] %vm676_vm2, %v652_v12  ;;  %862 = vrot.lane.b32.xlu1 %v3383_v15, %s3264_s24  ;;  %1566 = vrot.lane.b32.xlu0 %v3507_v46, %s3265_s25  ;;  %v626_v63 = vsel %vm610_vm0, %v3790_v58, %v3591_v1  ;;  %v625_v0 = vsel %vm610_vm0, %v3793_v51, %v3593_v2  ;;  %v3810_v12 = vld [vmem:[%s3313_s23 + $0xc8] sm:$0xff] }
  0xd9   : > { %5239 = vst [vmem:[#allocation16_spill] sm:$0xff] %v3790_v58  ;;  %5240 = vst [vmem:[#allocation17_spill] sm:$0xff] %v3793_v51  ;;  %v628_v1 = vsel %vm610_vm0, %v3810_v12, %v3599_v3 }
  0xda   : > { %v537_v55 = vpop.permute.xlu1 %536  ;;  %v535_v56 = vpop.permute.xlu0 %534  ;;  %5241 = vst [vmem:[#allocation18_spill] sm:$0xff] %v3810_v12  ;;  %v3057_v12 = vld [vmem:[%s3313_s23 + $0x159] sm:$0xff] }
  0xdb   : > { %v655_v15 = vsel %vm643_vm1, %v622_v59, %v537_v55  ;;  %v654_v44 = vsel %vm643_vm1, %v621_v60, %v535_v56  ;;  %v3813_v59 = vld [vmem:[%s3313_s23 + $0xc0] sm:$0xff] }
  0xdc   : > { %688 = vst.msk [vmem:[#allocation2 + $0x58] sm:$0xff] %vm676_vm2, %v655_v15  ;;  %687 = vst.msk [vmem:[#allocation2 + $0x50] sm:$0xff] %vm676_vm2, %v654_v44  ;;  %990 = vrot.lane.b32.xlu1 %v3510_v47, %s3265_s25  ;;  %864 = vrot.lane.b32.xlu0 %v3380_v14, %s3264_s24  ;;  %v627_v2 = vsel %vm610_vm0, %v3813_v59, %v3601_v4  ;;  %v3830_v15 = vld [vmem:[%s3313_s23 + $0xd8] sm:$0xff] }
  0xdd   : > { %5242 = vst [vmem:[#allocation19_spill] sm:$0xff] %v3813_v59  ;;  %5243 = vst [vmem:[#allocation20_spill] sm:$0xff] %v3830_v15  ;;  %v629_v3 = vsel %vm610_vm0, %v3830_v15, %v3609_v6 }
  0xde   : > { %v541_v10 = vpop.permute.xlu1 %540  ;;  %v539_v57 = vpop.permute.xlu0 %538 }
  0xdf   : > { %v657_v47 = vsel %vm643_vm1, %v624_v61, %v541_v10  ;;  %v656_v14 = vsel %vm643_vm1, %v623_v62, %v539_v57 }
  0xe0   : > { %690 = vst.msk [vmem:[#allocation2 + $0x68] sm:$0xff] %vm676_vm2, %v657_v47  ;;  %689 = vst.msk [vmem:[#allocation2 + $0x60] sm:$0xff] %vm676_vm2, %v656_v14  ;;  %992 = vrot.lane.b32.xlu1 %v3507_v46, %s3265_s25  ;;  %1440 = vrot.lane.b32.xlu0 %v3393_v17, %s3264_s24 }
  0xe2   : > { %v545_v53 = vpop.permute.xlu1 %544  ;;  %v543_v45 = vpop.permute.xlu0 %542 }
  0xe3   : > { %v659_v46 = vsel %vm643_vm1, %v626_v63, %v545_v53  ;;  %v658_v60 = vsel %vm643_vm1, %v625_v0, %v543_v45 }
  0xe4   : > { %692 = vst.msk [vmem:[#allocation2 + $0x78] sm:$0xff] %vm676_vm2, %v659_v46  ;;  %691 = vst.msk [vmem:[#allocation2 + $0x70] sm:$0xff] %vm676_vm2, %v658_v60  ;;  %1568 = vrot.lane.b32.xlu1 %v3520_v49, %s3265_s25  ;;  %1442 = vrot.lane.b32.xlu0 %v3390_v16, %s3264_s24 }
  0xe6   : > { %v549_v55 = vpop.permute.xlu1 %548  ;;  %v547_v56 = vpop.permute.xlu0 %546 }
  0xe7   : > { %v661_v44 = vsel %vm643_vm1, %v628_v1, %v549_v55  ;;  %v660_v61 = vsel %vm643_vm1, %v627_v2, %v547_v56 }
  0xe8   : > { %694 = vst.msk [vmem:[#allocation2 + $0x88] sm:$0xff] %vm676_vm2, %v661_v44  ;;  %693 = vst.msk [vmem:[#allocation2 + $0x80] sm:$0xff] %vm676_vm2, %v660_v61  ;;  %866 = vrot.lane.b32.xlu1 %v3393_v17, %s3264_s24  ;;  %1570 = vrot.lane.b32.xlu0 %v3517_v48, %s3265_s25 }
  0xea   : > { %v3843_v4 = vpop.permute.xlu1 %838  ;;  %v551_v62 = vpop.permute.xlu0 %550 }
  0xeb   : > { %v662_v10 = vsel %vm643_vm1, %v629_v3, %v551_v62 }
  0xec   : > { %695 = vst.msk [vmem:[#allocation2 + $0x90] sm:$0xff] %vm676_vm2, %v662_v10  ;;  %994 = vrot.lane.b32.xlu1 %v3520_v49, %s3265_s25  ;;  %868 = vrot.lane.b32.xlu0 %v3390_v16, %s3264_s24  ;;  %v3868_v16 = vld [vmem:[%s3313_s23 + $0xe2] sm:$0xff] }
  0xed   : > { %5244 = vst [vmem:[#allocation21_spill] sm:$0xff] %v3868_v16 }
  0xee   : > { %v3851_v17 = vpop.permute.xlu1 %966  ;;  %v3853_v57 = vpop.permute.xlu0 %840 }
  0xf0   : > { %996 = vrot.lane.b32.xlu1 %v3517_v48, %s3265_s25  ;;  %1444 = vrot.lane.b32.xlu0 %v3403_v19, %s3264_s24 }
  0xf2   : > { %v3859_v6 = vpop.permute.xlu1 %968  ;;  %v3861_v47 = vpop.permute.xlu0 %1416 }
  0xf4   : > { %1572 = vrot.lane.b32.xlu1 %v3527_v50, %s3265_s25  ;;  %1446 = vrot.lane.b32.xlu0 %v3400_v18, %s3264_s24 }
  0xf6   : > { %v3870_v49 = vpop.permute.xlu1 %1544  ;;  %v3872_v14 = vpop.permute.xlu0 %1418 }
  0xf8   : > { %870 = vrot.lane.b32.xlu1 %v3403_v19, %s3264_s24  ;;  %1574 = vrot.lane.b32.xlu0 %v3868_v16, %s3265_s25  ;;  %v3895_v19 = vld [vmem:[%s3313_s23 + $0xf2] sm:$0xff] }
  0xf9   : > { %5245 = vst [vmem:[#allocation22_spill] sm:$0xff] %v3895_v19 }
  0xfa   : > { %v3878_v48 = vpop.permute.xlu1 %842  ;;  %v3880_v63 = vpop.permute.xlu0 %1546 }
  0xfc   : > { %998 = vrot.lane.b32.xlu1 %v3527_v50, %s3265_s25  ;;  %872 = vrot.lane.b32.xlu0 %v3400_v18, %s3264_s24  ;;  %v3906_v18 = vld [vmem:[%s3313_s23 + $0xfa] sm:$0xff] }
  0xfd   : > { %5246 = vst [vmem:[#allocation23_spill] sm:$0xff] %v3906_v18 }
  0xfe   : > { %v3886_v0 = vpop.permute.xlu1 %970  ;;  %v3888_v53 = vpop.permute.xlu0 %844 }
 0x100   : > { %1000 = vrot.lane.b32.xlu1 %v3868_v16, %s3265_s25  ;;  %1448 = vrot.lane.b32.xlu0 %v3413_v21, %s3264_s24 }
 0x102   : > { %v3897_v45 = vpop.permute.xlu1 %972  ;;  %v3899_v46 = vpop.permute.xlu0 %1420 }
 0x104   : > { %1576 = vrot.lane.b32.xlu1 %v3895_v19, %s3265_s25  ;;  %1450 = vrot.lane.b32.xlu0 %v3410_v20, %s3264_s24 }
 0x106   : > { %v3908_v50 = vpop.permute.xlu1 %1548  ;;  %v3910_v60 = vpop.permute.xlu0 %1422 }
 0x108   : > { %874 = vrot.lane.b32.xlu1 %v3413_v21, %s3264_s24  ;;  %1578 = vrot.lane.b32.xlu0 %v3906_v18, %s3265_s25  ;;  %v3933_v21 = vld [vmem:[%s3313_s23 + $0x10a] sm:$0xff] }
 0x109   : > { %5247 = vst [vmem:[#allocation24_spill] sm:$0xff] %v3933_v21 }
 0x10a   : > { %v3916_v1 = vpop.permute.xlu1 %846  ;;  %v3918_v2 = vpop.permute.xlu0 %1550 }
 0x10c   : > { %1002 = vrot.lane.b32.xlu1 %v3895_v19, %s3265_s25  ;;  %876 = vrot.lane.b32.xlu0 %v3410_v20, %s3264_s24  ;;  %v3944_v20 = vld [vmem:[%s3313_s23 + $0x112] sm:$0xff] }
 0x10d   : > { %5248 = vst [vmem:[#allocation25_spill] sm:$0xff] %v3944_v20 }
 0x10e   : > { %v3924_v55 = vpop.permute.xlu1 %974  ;;  %v3926_v56 = vpop.permute.xlu0 %848 }
 0x110   : > { %1004 = vrot.lane.b32.xlu1 %v3906_v18, %s3265_s25  ;;  %1452 = vrot.lane.b32.xlu0 %v3423_v23, %s3264_s24 }
 0x112   : > { %v3935_v44 = vpop.permute.xlu1 %976  ;;  %v3937_v61 = vpop.permute.xlu0 %1424 }
 0x114   : > { %1580 = vrot.lane.b32.xlu1 %v3933_v21, %s3265_s25  ;;  %1454 = vrot.lane.b32.xlu0 %v3420_v22, %s3264_s24 }
 0x116   : > { %v3946_v3 = vpop.permute.xlu1 %1552  ;;  %v3948_v62 = vpop.permute.xlu0 %1426 }
 0x118   : > { %878 = vrot.lane.b32.xlu1 %v3423_v23, %s3264_s24  ;;  %1582 = vrot.lane.b32.xlu0 %v3944_v20, %s3265_s25  ;;  %v3971_v23 = vld [vmem:[%s3313_s23 + $0x122] sm:$0xff] }
 0x119   : > { %5249 = vst [vmem:[#allocation26_spill] sm:$0xff] %v3971_v23 }
 0x11a   : > { %v3954_v10 = vpop.permute.xlu1 %850  ;;  %v3956_v34 = vpop.permute.xlu0 %1554 }
 0x11c   : > { %1006 = vrot.lane.b32.xlu1 %v3933_v21, %s3265_s25  ;;  %880 = vrot.lane.b32.xlu0 %v3420_v22, %s3264_s24  ;;  %v3982_v22 = vld [vmem:[%s3313_s23 + $0x12a] sm:$0xff] }
 0x11d   : > { %5250 = vst [vmem:[#allocation27_spill] sm:$0xff] %v3982_v22 }
 0x11e   : > { %v3962_v35 = vpop.permute.xlu1 %978  ;;  %v3964_v32 = vpop.permute.xlu0 %852 }
 0x120   : > { %1008 = vrot.lane.b32.xlu1 %v3944_v20, %s3265_s25  ;;  %1456 = vrot.lane.b32.xlu0 %v3433_v25, %s3264_s24 }
 0x122   : > { %v3973_v33 = vpop.permute.xlu1 %980  ;;  %v3975_v8 = vpop.permute.xlu0 %1428 }
 0x124   : > { %1584 = vrot.lane.b32.xlu1 %v3971_v23, %s3265_s25  ;;  %1458 = vrot.lane.b32.xlu0 %v3430_v24, %s3264_s24 }
 0x126   : > { %v3984_v31 = vpop.permute.xlu1 %1556  ;;  %v3986_v9 = vpop.permute.xlu0 %1430 }
 0x128   : > { %882 = vrot.lane.b32.xlu1 %v3433_v25, %s3264_s24  ;;  %1586 = vrot.lane.b32.xlu0 %v3982_v22, %s3265_s25  ;;  %v4009_v25 = vld [vmem:[%s3313_s23 + $0x13a] sm:$0xff] }
 0x129   : > { %5251 = vst [vmem:[#allocation28_spill] sm:$0xff] %v4009_v25 }
 0x12a   : > { %v3992_v30 = vpop.permute.xlu1 %854  ;;  %v3994_v7 = vpop.permute.xlu0 %1558 }
 0x12c   : > { %1010 = vrot.lane.b32.xlu1 %v3971_v23, %s3265_s25  ;;  %884 = vrot.lane.b32.xlu0 %v3430_v24, %s3264_s24  ;;  %v4020_v24 = vld [vmem:[%s3313_s23 + $0x142] sm:$0xff] }
 0x12d   : > { %5252 = vst [vmem:[#allocation29_spill] sm:$0xff] %v4020_v24 }
 0x12e   : > { %v4000_v28 = vpop.permute.xlu1 %982  ;;  %v4002_v5 = vpop.permute.xlu0 %856 }
 0x130   : > { %1012 = vrot.lane.b32.xlu1 %v3982_v22, %s3265_s25  ;;  %1460 = vrot.lane.b32.xlu0 %v3443_v27, %s3264_s24 }
 0x132   : > { %v4011_v20 = vpop.permute.xlu1 %984  ;;  %v4013_v21 = vpop.permute.xlu0 %1432 }
 0x134   : > { %1588 = vrot.lane.b32.xlu1 %v4009_v25, %s3265_s25  ;;  %1462 = vrot.lane.b32.xlu0 %v3440_v26, %s3264_s24 }
 0x136   : > { %v4022_v22 = vpop.permute.xlu1 %1560  ;;  %v4024_v23 = vpop.permute.xlu0 %1434 }
 0x138   : > { %886 = vrot.lane.b32.xlu1 %v3443_v27, %s3264_s24  ;;  %1590 = vrot.lane.b32.xlu0 %v4020_v24, %s3265_s25  ;;  %v4047_v27 = vld [vmem:[%s3313_s23 + $0x152] sm:$0xff] }
 0x139   : > { %5254 = vst [vmem:[#allocation31_spill] sm:$0xff] %v4047_v27 }
 0x13a   : > { %v4030_v18 = vpop.permute.xlu1 %858  ;;  %v4032_v19 = vpop.permute.xlu0 %1562 }
 0x13c   : > { %1014 = vrot.lane.b32.xlu1 %v4009_v25, %s3265_s25  ;;  %888 = vrot.lane.b32.xlu0 %v3440_v26, %s3264_s24  ;;  %v2962_v26 = vld [vmem:[%s3313_s23 + $0x151] sm:$0xff] }
 0x13e   : > { %v4038_v16 = vpop.permute.xlu1 %986  ;;  %v4040_v15 = vpop.permute.xlu0 %860 }
 0x13f   : > { %5253 = vst [vmem:[#allocation30_spill] sm:$0xff] %v4040_v15 }
 0x140   : > { %1016 = vrot.lane.b32.xlu1 %v4020_v24, %s3265_s25  ;;  %1464 = vrot.lane.b32.xlu0 %v3451_v29, %s3264_s24  ;;  %v4059_v24 = vld [vmem:[%s3313_s23 + $0x15a] sm:$0xff] }
 0x141   : > { %5257 = vst [vmem:[#allocation34_spill] sm:$0xff] %v4059_v24 }
 0x142   : > { %v4050_v59 = vpop.permute.xlu1 %988  ;;  %v4052_v25 = vpop.permute.xlu0 %1436 }
 0x143   : > { %5255 = vst [vmem:[#allocation32_spill] sm:$0xff] %v4050_v59  ;;  %5256 = vst [vmem:[#allocation33_spill] sm:$0xff] %v4052_v25  ;;  %v3058_v25 = vld [vmem:[%s3313_s23 + $0x169] sm:$0xff] }
 0x144   : > { %1592 = vrot.lane.b32.xlu1 %v4047_v27, %s3265_s25  ;;  %1466 = vrot.lane.b32.xlu0 %v3057_v12, %s3264_s24 }
 0x146   : > { %v4061_v58 = vpop.permute.xlu1 %1564  ;;  %v4063_v29 = vpop.permute.xlu0 %1438 }
 0x147   : > { %5258 = vst [vmem:[#allocation35_spill] sm:$0xff] %v4061_v58  ;;  %5259 = vst [vmem:[#allocation36_spill] sm:$0xff] %v4063_v29 }
 0x148   : > { %890 = vrot.lane.b32.xlu1 %v2962_v26, %s3264_s24  ;;  %1594 = vrot.lane.b32.xlu0 %v4059_v24, %s3265_s25  ;;  %v4084_v26 = vld [vmem:[%s3313_s23 + $0x16a] sm:$0xff] }
 0x149   : > { %5264 = vst [vmem:[#allocation41_spill] sm:$0xff] %v4084_v26 }
 0x14a   : > { %v4068_v59 = vpop.permute.xlu1 %862  ;;  %v4070_v51 = vpop.permute.xlu0 %1566 }
 0x14b   : > { %5260 = vst [vmem:[#allocation37_spill] sm:$0xff] %v4068_v59  ;;  %5261 = vst [vmem:[#allocation38_spill] sm:$0xff] %v4070_v51  ;;  %v3059_v59 = vld [vmem:[%s3313_s23 + $0x171] sm:$0xff] }
 0x14c   : > { %1018 = vrot.lane.b32.xlu1 %v4047_v27, %s3265_s25  ;;  %892 = vrot.lane.b32.xlu0 %v3057_v12, %s3264_s24  ;;  %v4095_v12 = vld [vmem:[%s3313_s23 + $0x172] sm:$0xff] }
 0x14d   : > { %5267 = vst [vmem:[#allocation44_spill] sm:$0xff] %v4095_v12 }
 0x14e   : > { %v4076_v15 = vpop.permute.xlu1 %990  ;;  %v4078_v58 = vpop.permute.xlu0 %864 }
 0x14f   : > { %5262 = vst [vmem:[#allocation39_spill] sm:$0xff] %v4076_v15  ;;  %5263 = vst [vmem:[#allocation40_spill] sm:$0xff] %v4078_v58  ;;  %v3060_v58 = vld [vmem:[%s3313_s23 + $0x181] sm:$0xff] }
 0x150   : > { %1020 = vrot.lane.b32.xlu1 %v4059_v24, %s3265_s25  ;;  %1468 = vrot.lane.b32.xlu0 %v3058_v25, %s3264_s24 }
 0x152   : > { %v4087_v51 = vpop.permute.xlu1 %992  ;;  %v4089_v29 = vpop.permute.xlu0 %1440 }
 0x153   : > { %5265 = vst [vmem:[#allocation42_spill] sm:$0xff] %v4087_v51  ;;  %5266 = vst [vmem:[#allocation43_spill] sm:$0xff] %v4089_v29 }
 0x154   : > { %1596 = vrot.lane.b32.xlu1 %v4084_v26, %s3265_s25  ;;  %1470 = vrot.lane.b32.xlu0 %v3059_v59, %s3264_s24 }
 0x156   : > { %v4097_v24 = vpop.permute.xlu1 %1568  ;;  %v4099_v27 = vpop.permute.xlu0 %1442 }
 0x157   : > { %5268 = vst [vmem:[#allocation45_spill] sm:$0xff] %v4097_v24  ;;  %5269 = vst [vmem:[#allocation46_spill] sm:$0xff] %v4099_v27  ;;  %v3061_v27 = vld [vmem:[%s3313_s23 + $0x189] sm:$0xff] }
 0x158   : > { %894 = vrot.lane.b32.xlu1 %v3058_v25, %s3264_s24  ;;  %1598 = vrot.lane.b32.xlu0 %v4095_v12, %s3265_s25  ;;  %v3092_v25 = vld [vmem:[%s3313_s23 + $0x182] sm:$0xff] }
 0x15a   : > { %v4104_v51 = vpop.permute.xlu1 %866  ;;  %v4106_v29 = vpop.permute.xlu0 %1570 }
 0x15b   : > { %5270 = vst [vmem:[#allocation47_spill] sm:$0xff] %v4104_v51  ;;  %5271 = vst [vmem:[#allocation48_spill] sm:$0xff] %v4106_v29 }
 0x15c   : > { %1022 = vrot.lane.b32.xlu1 %v4084_v26, %s3265_s25  ;;  %896 = vrot.lane.b32.xlu0 %v3059_v59, %s3264_s24  ;;  %v3093_v59 = vld [vmem:[%s3313_s23 + $0x18a] sm:$0xff] }
 0x15e   : > { %v4112_v15 = vpop.permute.xlu1 %994  ;;  %v4114_v24 = vpop.permute.xlu0 %868 }
 0x15f   : > { %5272 = vst [vmem:[#allocation49_spill] sm:$0xff] %v4112_v15  ;;  %5273 = vst [vmem:[#allocation50_spill] sm:$0xff] %v4114_v24  ;;  %v1897_v24 = vld [vmem:[%s5198_s1] sm:$0xff] }
 0x160   : > { %1024 = vrot.lane.b32.xlu1 %v4095_v12, %s3265_s25  ;;  %1472 = vrot.lane.b32.xlu0 %v3060_v58, %s3264_s24  ;;  %v1062_v12 = vsel %vm610_vm0, %v3670_v42, %v3843_v4  ;;  %v1063_v42 = vsel %vm610_vm0, %v3673_v43, %v3853_v57  ;;  %v3062_v43 = vld [vmem:[%s3313_s23 + $0x199] sm:$0xff]  ;;  %v1640_v57 = vsel %vm610_vm0, %v3693_v36, %v3861_v47  ;;  %v3063_v47 = vld [vmem:[%s3313_s23 + $0x1a1] sm:$0xff] }
 0x162   : > { %v4121_v51 = vpop.permute.xlu1 %996  ;;  %v4123_v29 = vpop.permute.xlu0 %1444 }
 0x163   : > { %5274 = vst [vmem:[#allocation51_spill] sm:$0xff] %v4121_v51  ;;  %5275 = vst [vmem:[#allocation52_spill] sm:$0xff] %v4123_v29 }
 0x164   : > { %1600 = vrot.lane.b32.xlu1 %v3092_v25, %s3265_s25  ;;  %1474 = vrot.lane.b32.xlu0 %v3061_v27, %s3264_s24 }
 0x166   : > { %v4128_v26 = vpop.permute.xlu1 %1572  ;;  %v4130_v15 = vpop.permute.xlu0 %1446 }
 0x167   : > { %5276 = vst [vmem:[#allocation53_spill] sm:$0xff] %v4128_v26  ;;  %5277 = vst [vmem:[#allocation54_spill] sm:$0xff] %v4130_v15  ;;  %v1898_v15 = vld [vmem:[%s5198_s1 + $0x8] sm:$0xff] }
 0x168   : > { %898 = vrot.lane.b32.xlu1 %v3060_v58, %s3264_s24  ;;  %1602 = vrot.lane.b32.xlu0 %v3093_v59, %s3265_s25  ;;  %v1094_v58 = vsel %vm643_vm1, %v1062_v12, %v3851_v17  ;;  %v3228_v26 = vpack.c.bf16 %v1898_v15, %v1897_v24  ;;  %v1899_v15 = vld [vmem:[%s5198_s1 + $0x10] sm:$0xff]  ;;  %v1900_v17 = vld [vmem:[%s5198_s1 + $0x18] sm:$0xff]  ;;  %v1095_v24 = vsel %vm643_vm1, %v1063_v42, %v3859_v6 }
 0x169   : > { %v1672_v6 = vsel %vm643_vm1, %v1640_v57, %v3870_v49  ;;  %v3094_v49 = vld [vmem:[%s3313_s23 + $0x19a] sm:$0xff] }
 0x16a   : > { %v4137_v51 = vpop.permute.xlu1 %870  ;;  %v4139_v29 = vpop.permute.xlu0 %1574  ;;  %3229 = vmatprep.subr.bf16.mxu0 %v3228_v26  ;;  %3236 = vmatprep.subr.bf16.mxu1 %v3228_v26 }
 0x16b   : > { %5278 = vst [vmem:[#allocation55_spill] sm:$0xff] %v4139_v29  ;;  %3231 = vmatpush3.bf16.msra.mxu0 %v3228_v26  ;;  %3239 = vmatpush3.bf16.msra.mxu1 %v3228_v26  ;;  %v1901_v26 = vld [vmem:[%s5198_s1 + $0x20] sm:$0xf] }
 0x16c   : > { %900 = vrot.lane.b32.xlu1 %v3061_v27, %s3264_s24  ;;  %1158 = vrot.lane.b32.xlu0 %v1094_v58, %s3266_s30  ;;  %v3232_v27 = vpack.c.bf16 %v1900_v17, %v1899_v15  ;;  %v1641_v15 = vsel %vm610_vm0, %v3690_v38, %v3872_v14 }
 0x16e   : > { %v4154_v4 = vpop.permute.xlu1 %998  ;;  %v4156_v29 = vpop.permute.xlu0 %872  ;;  %3233 = vmatprep.subr.bf16.mxu0 %v3232_v27  ;;  %3237 = vmatprep.subr.bf16.mxu1 %v3232_v27 }
 0x16f   : > { %3235 = vmatpush3.bf16.msra.mxu0 %v3232_v27  ;;  %3240 = vmatpush3.bf16.msra.mxu1 %v3232_v27  ;;  %v1673_v27 = vsel %vm643_vm1, %v1641_v15, %v3880_v63  ;;  %v1065_v63 = vsel %vm610_vm0, %v3690_v38, %v3888_v53  ;;  %v1643_v38 = vsel %vm610_vm0, %v3710_v41, %v3910_v60 }
 0x170   : > { %1160 = vrot.lane.b32.xlu1 %v1095_v24, %s3266_s30  ;;  %1026 = vrot.lane.b32.xlu0 %v3092_v25, %s3265_s25  ;;  %v1066_v53 = vsel %vm610_vm0, %v3713_v52, %v3916_v1  ;;  %v1067_v60 = vsel %vm610_vm0, %v3710_v41, %v3926_v56  ;;  %v1645_v41 = vsel %vm610_vm0, %v3730_v11, %v3948_v62 }
 0x171   : > { %3178 = vmatprep.subr.msk.mxu0 %vm1999_vm3, %v1901_v26  ;;  %3238 = vmatprep.subr.msk.mxu1 %vm1999_vm3, %v1901_v26  ;;  %v1068_v56 = vsel %vm610_vm0, %v3733_v13, %v3954_v10  ;;  %v1069_v62 = vsel %vm610_vm0, %v3730_v11, %v3964_v32  ;;  %v1647_v32 = vsel %vm610_vm0, %v3750_v39, %v3986_v9 }
 0x172   : > { %v4172_v12 = vpop.permute.xlu1 %1000  ;;  %v4174_v58 = vpop.permute.xlu0 %1448  ;;  %v1071_v9 = vsel %vm610_vm0, %v3750_v39, %v4002_v5  ;;  %v1649_v5 = vsel %vm610_vm0, %v3770_v54, %v4024_v23  ;;  %v1072_v39 = vsel %vm610_vm0, %v3773_v37, %v4030_v18 }
 0x173   : > { %3179 = vmatpush3.msk.msra.mxu0 %vm1999_vm3, %v1901_v26  ;;  %3241 = vmatpush3.msk.msra.mxu1 %vm1999_vm3, %v1901_v26  ;;  %v1642_v26 = vsel %vm610_vm0, %v3713_v52, %v3899_v46  ;;  %v1644_v52 = vsel %vm610_vm0, %v3733_v13, %v3937_v61  ;;  %v1646_v13 = vsel %vm610_vm0, %v3753_v40, %v3975_v8 }
 0x174   : > { %1736 = vrot.lane.b32.xlu1 %v1672_v6, %s3267_s10  ;;  %1476 = vrot.lane.b32.xlu0 %v3062_v43, %s3264_s24  ;;  %v3095_v43 = vld [vmem:[%s3313_s23 + $0x1a2] sm:$0xff]  ;;  %v1070_v8 = vsel %vm610_vm0, %v3753_v40, %v3992_v30  ;;  %v1648_v30 = vsel %vm610_vm0, %v3773_v37, %v4013_v21  ;;  %v5281_v37 = vld [vmem:[#allocation17_spill] sm:$0xff] }
 0x176   : > { %v4184_v25 = vpop.permute.xlu1 %1576  ;;  %v4186_v42 = vpop.permute.xlu0 %1450 }
 0x178   : > { %1478 = vrot.lane.b32.xlu1 %v3063_v47, %s3264_s24  ;;  %1028 = vrot.lane.b32.xlu0 %v3093_v59, %s3265_s25  ;;  %v1064_v59 = vsel %vm610_vm0, %v3693_v36, %v3878_v48  ;;  %v1097_v47 = vsel %vm643_vm1, %v1065_v63, %v3897_v45  ;;  %v1675_v45 = vsel %vm643_vm1, %v1643_v38, %v3918_v2 }
 0x179   : > { %v1096_v14 = vsel %vm643_vm1, %v1064_v59, %v3886_v0  ;;  %v1674_v0 = vsel %vm643_vm1, %v1642_v26, %v3908_v50  ;;  %v1098_v50 = vsel %vm643_vm1, %v1066_v53, %v3924_v55  ;;  %v1099_v2 = vsel %vm643_vm1, %v1067_v60, %v3935_v44  ;;  %v5279_v26 = vld [vmem:[#allocation30_spill] sm:$0xff] }
 0x17a   : > { %v4194_v17 = vpop.permute.xlu1 %874  ;;  %v4196_v24 = vpop.permute.xlu0 %1578  ;;  %v1676_v55 = vsel %vm643_vm1, %v1644_v52, %v3946_v3  ;;  %v1677_v44 = vsel %vm643_vm1, %v1645_v41, %v3956_v34  ;;  %v1100_v3 = vsel %vm643_vm1, %v1068_v56, %v3962_v35  ;;  %v1101_v34 = vsel %vm643_vm1, %v1069_v62, %v3973_v33  ;;  %v5286_v52 = vld [vmem:[#allocation37_spill] sm:$0xff]  ;;  %v5287_v56 = vld [vmem:[#allocation38_spill] sm:$0xff] }
 0x17b   : > { %v1678_v35 = vsel %vm643_vm1, %v1646_v13, %v3984_v31  ;;  %v1679_v33 = vsel %vm643_vm1, %v1647_v32, %v3994_v7  ;;  %v1102_v31 = vsel %vm643_vm1, %v1070_v8, %v4000_v28  ;;  %v1103_v7 = vsel %vm643_vm1, %v1071_v9, %v4011_v20  ;;  %v5289_v13 = vld [vmem:[#allocation40_spill] sm:$0xff]  ;;  %v5291_v32 = vld [vmem:[#allocation19_spill] sm:$0xff]  ;;  %v5292_v9 = vld [vmem:[#allocation42_spill] sm:$0xff] }
 0x17c   : > { %1738 = vrot.lane.b32.xlu1 %v1673_v27, %s3267_s10  ;;  %1604 = vrot.lane.b32.xlu0 %v3094_v49, %s3265_s25  ;;  %v1680_v28 = vsel %vm643_vm1, %v1648_v30, %v4022_v22  ;;  %v1681_v20 = vsel %vm643_vm1, %v1649_v5, %v4032_v19  ;;  %v1104_v22 = vsel %vm643_vm1, %v1072_v39, %v4038_v16  ;;  %v5282_v19 = vld [vmem:[#allocation32_spill] sm:$0xff]  ;;  %v5283_v16 = vld [vmem:[#allocation35_spill] sm:$0xff]  ;;  %v5294_v5 = vld [vmem:[#allocation46_spill] sm:$0xff] }
 0x17d   : > { %v1073_v23 = vsel %vm610_vm0, %v3770_v54, %v5279_v26  ;;  %v5285_v54 = vld [vmem:[#allocation16_spill] sm:$0xff]  ;;  %v5295_v39 = vld [vmem:[#allocation18_spill] sm:$0xff] }
 0x17e   : > { %v4206_v57 = vpop.permute.xlu1 %1002  ;;  %v4208_v6 = vpop.permute.xlu0 %876  ;;  %v1105_v53 = vsel %vm643_vm1, %v1073_v23, %v5282_v19  ;;  %v5298_v19 = vld [vmem:[#allocation49_spill] sm:$0xff] }
 0x180   : > { %1162 = vrot.lane.b32.xlu1 %v1096_v14, %s3266_s30  ;;  %1606 = vrot.lane.b32.xlu0 %v3095_v43, %s3265_s25 }
 0x182   : > { %v4220_v36 = vpop.permute.xlu1 %1004  ;;  %v4222_v48 = vpop.permute.xlu0 %1452 }
 0x184   : > { %1740 = vrot.lane.b32.xlu1 %v1674_v0, %s3267_s10  ;;  %1164 = vrot.lane.b32.xlu0 %v1097_v47, %s3266_s30  ;;  %v5280_v47 = vld [vmem:[#allocation33_spill] sm:$0xff] }
 0x185   : > { %v1650_v18 = vsel %vm610_vm0, %v5281_v37, %v5280_v47 }
 0x186   : > { %v4236_v46 = vpop.permute.xlu1 %1580  ;;  %v4238_v49 = vpop.permute.xlu0 %1454 }
 0x188   : > { %1166 = vrot.lane.b32.xlu1 %v1098_v50, %s3266_s30  ;;  %1742 = vrot.lane.b32.xlu0 %v1675_v45, %s3267_s10  ;;  %v1682_v45 = vsel %vm643_vm1, %v1650_v18, %v5283_v16  ;;  %v5284_v50 = vld [vmem:[#allocation36_spill] sm:$0xff]  ;;  %v5299_v16 = vld [vmem:[#allocation50_spill] sm:$0xff] }
 0x189   : > { %v1651_v60 = vsel %vm610_vm0, %v5285_v54, %v5284_v50  ;;  %v5300_v50 = vld [vmem:[#allocation52_spill] sm:$0xff] }
 0x18a   : > { %v4252_v1 = vpop.permute.xlu1 %878  ;;  %v4254_v15 = vpop.permute.xlu0 %1582 }
 0x18c   : > { %1744 = vrot.lane.b32.xlu1 %v1676_v55, %s3267_s10  ;;  %1168 = vrot.lane.b32.xlu0 %v1099_v2, %s3266_s30  ;;  %v1074_v2 = vsel %vm610_vm0, %v5281_v37, %v5286_v52  ;;  %v5297_v37 = vld [vmem:[#allocation48_spill] sm:$0xff] }
 0x18e   : > { %v4268_v61 = vpop.permute.xlu1 %1006  ;;  %v4270_v27 = vpop.permute.xlu0 %880 }
 0x190   : > { %1170 = vrot.lane.b32.xlu1 %v1100_v3, %s3266_s30  ;;  %1746 = vrot.lane.b32.xlu0 %v1677_v44, %s3267_s10  ;;  %v1683_v44 = vsel %vm643_vm1, %v1651_v60, %v5287_v56  ;;  %v5288_v3 = vld [vmem:[#allocation39_spill] sm:$0xff] }
 0x191   : > { %v1106_v62 = vsel %vm643_vm1, %v1074_v2, %v5288_v3  ;;  %v5302_v56 = vld [vmem:[#allocation51_spill] sm:$0xff]  ;;  %v5303_v3 = vld [vmem:[#allocation53_spill] sm:$0xff] }
 0x192   : > { %v4284_v10 = vpop.permute.xlu1 %1008  ;;  %v4286_v43 = vpop.permute.xlu0 %1456 }
 0x194   : > { %1748 = vrot.lane.b32.xlu1 %v1678_v35, %s3267_s10  ;;  %1172 = vrot.lane.b32.xlu0 %v1101_v34, %s3266_s30  ;;  %v1075_v34 = vsel %vm610_vm0, %v5285_v54, %v5289_v13  ;;  %v5290_v35 = vld [vmem:[#allocation43_spill] sm:$0xff]  ;;  %v5301_v54 = vld [vmem:[#allocation20_spill] sm:$0xff] }
 0x195   : > { %v1652_v8 = vsel %vm610_vm0, %v5291_v32, %v5290_v35  ;;  %v1107_v30 = vsel %vm643_vm1, %v1075_v34, %v5292_v9  ;;  %v1654_v60 = vsel %vm610_vm0, %v5301_v54, %v5300_v50  ;;  %v4423_v13 = vld [vmem:[%s3313_s23 + $0xe0] sm:$0xff]  ;;  %v5304_v34 = vld [vmem:[#allocation54_spill] sm:$0xff]  ;;  %v4492_v50 = vld [vmem:[%s3313_s23 + $0x108] sm:$0xff] }
 0x196   : > { %v4300_v11 = vpop.permute.xlu1 %1584  ;;  %v4302_v59 = vpop.permute.xlu0 %1458  ;;  %v1655_v35 = vsel %vm610_vm0, %v4423_v13, %v5304_v34 }
 0x198   : > { %1174 = vrot.lane.b32.xlu1 %v1102_v31, %s3266_s30  ;;  %1750 = vrot.lane.b32.xlu0 %v1679_v33, %s3267_s10 }
 0x19a   : > { %v4316_v40 = vpop.permute.xlu1 %882  ;;  %v4318_v14 = vpop.permute.xlu0 %1586 }
 0x19c   : > { %1752 = vrot.lane.b32.xlu1 %v1680_v28, %s3267_s10  ;;  %1176 = vrot.lane.b32.xlu0 %v1103_v7, %s3266_s30  ;;  %v5293_v7 = vld [vmem:[#allocation45_spill] sm:$0xff] }
 0x19d   : > { %v1684_v28 = vsel %vm643_vm1, %v1652_v8, %v5293_v7 }
 0x19e   : > { %v4332_v21 = vpop.permute.xlu1 %1010  ;;  %v4334_v63 = vpop.permute.xlu0 %884 }
 0x1a0   : > { %1178 = vrot.lane.b32.xlu1 %v1104_v22, %s3266_s30  ;;  %1754 = vrot.lane.b32.xlu0 %v1681_v20, %s3267_s10  ;;  %v1653_v20 = vsel %vm610_vm0, %v5295_v39, %v5294_v5  ;;  %v5296_v22 = vld [vmem:[#allocation47_spill] sm:$0xff]  ;;  %v4442_v5 = vld [vmem:[%s3313_s23 + $0xf0] sm:$0xff] }
 0x1a1   : > { %v1076_v26 = vsel %vm610_vm0, %v5291_v32, %v5296_v22  ;;  %v1685_v18 = vsel %vm643_vm1, %v1653_v20, %v5297_v37  ;;  %v1078_v32 = vsel %vm610_vm0, %v5301_v54, %v4137_v51  ;;  %v1079_v51 = vsel %vm610_vm0, %v4423_v13, %v4156_v29  ;;  %v4461_v29 = vld [vmem:[%s3313_s23 + $0xf8] sm:$0xff] }
 0x1a2   : > { %v4348_v0 = vpop.permute.xlu1 %1012  ;;  %v4350_v38 = vpop.permute.xlu0 %1460 }
 0x1a4   : > { %1756 = vrot.lane.b32.xlu1 %v1682_v45, %s3267_s10  ;;  %1180 = vrot.lane.b32.xlu0 %v1105_v53, %s3266_s30  ;;  %v1108_v53 = vsel %vm643_vm1, %v1076_v26, %v5298_v19  ;;  %v1077_v45 = vsel %vm610_vm0, %v5295_v39, %v5299_v16  ;;  %v1656_v39 = vsel %vm610_vm0, %v4442_v5, %v4174_v58 }
 0x1a5   : > { %v1688_v26 = vsel %vm643_vm1, %v1656_v39, %v4184_v25  ;;  %v1657_v58 = vsel %vm610_vm0, %v4461_v29, %v4186_v42  ;;  %v5306_v25 = vld [vmem:[#allocation21_spill] sm:$0xff]  ;;  %v1080_v19 = vsel %vm610_vm0, %v4442_v5, %v4194_v17  ;;  %v1081_v42 = vsel %vm610_vm0, %v4461_v29, %v4208_v6 }
 0x1a6   : > { %v4364_v55 = vpop.permute.xlu1 %1588  ;;  %v4366_v41 = vpop.permute.xlu0 %1462  ;;  %v1658_v17 = vsel %vm610_vm0, %v4492_v50, %v4222_v48 }
 0x1a8   : > { %1182 = vrot.lane.b32.xlu1 %v1106_v62, %s3266_s30  ;;  %1758 = vrot.lane.b32.xlu0 %v1683_v44, %s3267_s10  ;;  %v1109_v44 = vsel %vm643_vm1, %v1077_v45, %v5302_v56  ;;  %v1686_v62 = vsel %vm643_vm1, %v1654_v60, %v5303_v3  ;;  %v1113_v45 = vsel %vm643_vm1, %v1081_v42, %v4220_v36  ;;  %v5307_v60 = vld [vmem:[#allocation22_spill] sm:$0xff]  ;;  %v4507_v36 = vld [vmem:[%s3313_s23 + $0x110] sm:$0xff] }
 0x1a9   : > { %v1659_v56 = vsel %vm610_vm0, %v4507_v36, %v4238_v49  ;;  %v1083_v49 = vsel %vm610_vm0, %v4507_v36, %v4270_v27  ;;  %v3022_v42 = vld [vmem:[%s3313_s23 + $0x138] sm:$0xff] }
 0x1aa   : > { %v4380_v33 = vpop.permute.xlu1 %886  ;;  %v4382_v31 = vpop.permute.xlu0 %1590  ;;  %v1691_v3 = vsel %vm643_vm1, %v1659_v56, %v4254_v15 }
 0x1ab   : > { %v1086_v56 = vsel %vm610_vm0, %v3022_v42, %v4380_v33 }
 0x1ac   : > { %1760 = vrot.lane.b32.xlu1 %v1684_v28, %s3267_s10  ;;  %1184 = vrot.lane.b32.xlu0 %v1107_v30, %s3266_s30  ;;  %v5305_v30 = vld [vmem:[#allocation55_spill] sm:$0xff]  ;;  %v1110_v28 = vsel %vm643_vm1, %v1078_v32, %v4154_v4  ;;  %v1111_v4 = vsel %vm643_vm1, %v1079_v51, %v4172_v12  ;;  %v1689_v12 = vsel %vm643_vm1, %v1657_v58, %v4196_v24 }
 0x1ad   : > { %v1687_v7 = vsel %vm643_vm1, %v1655_v35, %v5305_v30  ;;  %v1112_v24 = vsel %vm643_vm1, %v1080_v19, %v4206_v57  ;;  %v1690_v57 = vsel %vm643_vm1, %v1658_v17, %v4236_v46  ;;  %v5308_v46 = vld [vmem:[#allocation23_spill] sm:$0xff]  ;;  %v1115_v32 = vsel %vm643_vm1, %v1083_v49, %v4284_v10  ;;  %v4553_v10 = vld [vmem:[%s3313_s23 + $0x128] sm:$0xff]  ;;  %v3024_v49 = vld [vmem:[%s3313_s23 + $0x150] sm:$0xff] }
 0x1ae   : > { %v4396_v23 = vpop.permute.xlu1 %1014  ;;  %v4398_v47 = vpop.permute.xlu0 %888  ;;  %v1661_v51 = vsel %vm610_vm0, %v4553_v10, %v4302_v59  ;;  %v3023_v17 = vld [vmem:[%s3313_s23 + $0x140] sm:$0xff] }
 0x1b0   : > { %1186 = vrot.lane.b32.xlu1 %v1108_v53, %s3266_s30  ;;  %1762 = vrot.lane.b32.xlu0 %v1685_v18, %s3267_s10 }
 0x1b2   : > { %v4412_v52 = vpop.permute.xlu1 %1016  ;;  %v4414_v2 = vpop.permute.xlu0 %1464 }
 0x1b3   : > { %v1664_v33 = vsel %vm610_vm0, %v3024_v49, %v4414_v2 }
 0x1b4   : > { %1764 = vrot.lane.b32.xlu1 %v1686_v62, %s3267_s10  ;;  %1188 = vrot.lane.b32.xlu0 %v1109_v44, %s3266_s30  ;;  %v1082_v62 = vsel %vm610_vm0, %v4492_v50, %v4252_v1  ;;  %v4538_v1 = vld [vmem:[%s3313_s23 + $0x120] sm:$0xff] }
 0x1b5   : > { %v1114_v15 = vsel %vm643_vm1, %v1082_v62, %v4268_v61  ;;  %v1660_v27 = vsel %vm610_vm0, %v4538_v1, %v4286_v43  ;;  %v1084_v58 = vsel %vm610_vm0, %v4538_v1, %v4316_v40  ;;  %v1662_v40 = vsel %vm610_vm0, %v3022_v42, %v4350_v38 }
 0x1b6   : > { %v4431_v8 = vpop.permute.xlu1 %1592  ;;  %v4433_v9 = vpop.permute.xlu0 %1466  ;;  %v1692_v61 = vsel %vm643_vm1, %v1660_v27, %v4300_v11  ;;  %v2927_v11 = vld [vmem:[%s3313_s23 + $0x128] sm:$0xff] }
 0x1b7   : > { %v1085_v59 = vsel %vm610_vm0, %v2927_v11, %v4334_v63 }
 0x1b8   : > { %1190 = vrot.lane.b32.xlu1 %v1110_v28, %s3266_s30  ;;  %1766 = vrot.lane.b32.xlu0 %v1687_v7, %s3267_s10  ;;  %v5309_v28 = vld [vmem:[#allocation24_spill] sm:$0xff]  ;;  %v1117_v19 = vsel %vm643_vm1, %v1085_v59, %v4348_v0  ;;  %v1663_v0 = vsel %vm610_vm0, %v3023_v17, %v4366_v41  ;;  %v1087_v41 = vsel %vm610_vm0, %v3023_v17, %v4398_v47 }
 0x1b9   : > { %v1119_v62 = vsel %vm643_vm1, %v1087_v41, %v4412_v52  ;;  %v5313_v52 = vld [vmem:[#allocation28_spill] sm:$0xff] }
 0x1ba   : > { %v4450_v20 = vpop.permute.xlu1 %890  ;;  %v4452_v22 = vpop.permute.xlu0 %1594  ;;  %v3026_v59 = vld [vmem:[%s3313_s23 + $0x168] sm:$0xff] }
 0x1bb   : > { %v3029_v41 = vld [vmem:[%s3313_s23 + $0x188] sm:$0xff] }
 0x1bc   : > { %1192 = vrot.lane.b32.xlu0 %v1111_v4, %s3266_s30  ;;  %1768 = vrot.lane.b32.xlu1 %v1688_v26, %s3267_s10  ;;  %v1693_v4 = vsel %vm643_vm1, %v1661_v51, %v4318_v14  ;;  %v5310_v26 = vld [vmem:[#allocation25_spill] sm:$0xff]  ;;  %v1116_v14 = vsel %vm643_vm1, %v1084_v58, %v4332_v21  ;;  %v5311_v21 = vld [vmem:[#allocation26_spill] sm:$0xff] }
 0x1be   : > { %v4466_v37 = vpop.permute.xlu1 %1018  ;;  %v4468_v18 = vpop.permute.xlu0 %892 }
 0x1c0   : > { %552 = vrot.lane.b32.xlu1 %v5306_v25, %s3265_s25  ;;  %1770 = vrot.lane.b32.xlu0 %v1689_v12, %s3267_s10 }
 0x1c2   : > { %v4481_v53 = vpop.permute.xlu1 %1020  ;;  %v4483_v16 = vpop.permute.xlu0 %1468 }
 0x1c4   : > { %1194 = vrot.lane.b32.xlu0 %v1112_v24, %s3266_s30  ;;  %1196 = vrot.lane.b32.xlu1 %v1113_v45, %s3266_s30  ;;  %v1694_v45 = vsel %vm643_vm1, %v1662_v40, %v4364_v55  ;;  %v5312_v55 = vld [vmem:[#allocation27_spill] sm:$0xff] }
 0x1c6   : > { %v4497_v6 = vpop.permute.xlu1 %1596  ;;  %v4499_v54 = vpop.permute.xlu0 %1470 }
 0x1c8   : > { %554 = vrot.lane.b32.xlu1 %v5307_v60, %s3265_s25  ;;  %1772 = vrot.lane.b32.xlu0 %v1690_v57, %s3267_s10  ;;  %v1695_v60 = vsel %vm643_vm1, %v1663_v0, %v4382_v31  ;;  %v1118_v31 = vsel %vm643_vm1, %v1086_v56, %v4396_v23  ;;  %v1696_v23 = vsel %vm643_vm1, %v1664_v33, %v4431_v8  ;;  %v5314_v8 = vld [vmem:[#allocation29_spill] sm:$0xff]  ;;  %v5318_v33 = vld [vmem:[#allocation44_spill] sm:$0xff] }
 0x1ca   : > { %v4512_v48 = vpop.permute.xlu1 %894  ;;  %v4514_v44 = vpop.permute.xlu0 %1598 }
 0x1cb   : > { %v1090_v17 = vsel %vm610_vm0, %v3026_v59, %v4512_v48 }
 0x1cc   : > { %556 = vrot.lane.b32.xlu1 %v5308_v46, %s3265_s25  ;;  %1774 = vrot.lane.b32.xlu0 %v1691_v3, %s3267_s10 }
 0x1ce   : > { %v4527_v34 = vpop.permute.xlu1 %1022  ;;  %v4529_v35 = vpop.permute.xlu0 %896 }
 0x1d0   : > { %1198 = vrot.lane.b32.xlu0 %v1114_v15, %s3266_s30  ;;  %1200 = vrot.lane.b32.xlu1 %v1115_v32, %s3266_s30  ;;  %v3025_v32 = vld [vmem:[%s3313_s23 + $0x158] sm:$0xff] }
 0x1d1   : > { %v1665_v27 = vsel %vm610_vm0, %v3025_v32, %v4433_v9  ;;  %v1088_v9 = vsel %vm610_vm0, %v3024_v49, %v4450_v20  ;;  %v1666_v20 = vsel %vm610_vm0, %v3026_v59, %v4483_v16 }
 0x1d2   : > { %v4543_v30 = vpop.permute.xlu1 %1024  ;;  %v4545_v7 = vpop.permute.xlu0 %1472  ;;  %v1697_v51 = vsel %vm643_vm1, %v1665_v27, %v4452_v22  ;;  %v1120_v22 = vsel %vm643_vm1, %v1088_v9, %v4466_v37  ;;  %v1698_v42 = vsel %vm643_vm1, %v1666_v20, %v4497_v6  ;;  %v3027_v37 = vld [vmem:[%s3313_s23 + $0x170] sm:$0xff] }
 0x1d3   : > { %v1667_v16 = vsel %vm610_vm0, %v3027_v37, %v4499_v54  ;;  %v1091_v54 = vsel %vm610_vm0, %v3027_v37, %v4529_v35 }
 0x1d4   : > { %558 = vrot.lane.b32.xlu1 %v5309_v28, %s3265_s25  ;;  %1776 = vrot.lane.b32.xlu0 %v1692_v61, %s3267_s10  ;;  %v1699_v6 = vsel %vm643_vm1, %v1667_v16, %v4514_v44  ;;  %v1122_v44 = vsel %vm643_vm1, %v1090_v17, %v4527_v34 }
 0x1d6   : > { %v4558_v43 = vpop.permute.xlu1 %1600  ;;  %v4560_v39 = vpop.permute.xlu0 %1474 }
 0x1d8   : > { %560 = vrot.lane.b32.xlu1 %v5310_v26, %s3265_s25  ;;  %1778 = vrot.lane.b32.xlu0 %v1693_v4, %s3267_s10  ;;  %v1089_v4 = vsel %vm610_vm0, %v3025_v32, %v4468_v18 }
 0x1d9   : > { %v1121_v58 = vsel %vm643_vm1, %v1089_v4, %v4481_v53  ;;  %v5315_v53 = vld [vmem:[#allocation31_spill] sm:$0xff] }
 0x1da   : > { %v4573_v12 = vpop.permute.xlu1 %898  ;;  %v4575_v25 = vpop.permute.xlu0 %1602 }
 0x1dc   : > { %1202 = vrot.lane.b32.xlu0 %v1116_v14, %s3266_s30  ;;  %1204 = vrot.lane.b32.xlu1 %v1117_v19, %s3266_s30 }
 0x1de   : > { %v4586_v63 = vpop.permute.xlu1 %900  ;;  %v1159_v24 = vpop.permute.xlu0 %1158 }
 0x1df   : > { %1255 = vst.msk [vmem:[#allocation2] sm:$0xff] %vm1254_vm4, %v1159_v24 }
 0x1e0   : > { %562 = vrot.lane.b32.xlu1 %v5311_v21, %s3265_s25  ;;  %1780 = vrot.lane.b32.xlu0 %v1694_v45, %s3267_s10  ;;  %v5316_v45 = vld [vmem:[#allocation34_spill] sm:$0xff] }
 0x1e2   : > { %v1161_v57 = vpop.permute.xlu1 %1160  ;;  %v4597_v38 = vpop.permute.xlu0 %1026 }
 0x1e3   : > { %1256 = vst.msk [vmem:[#allocation2 + $0x8] sm:$0xff] %vm1254_vm4, %v1161_v57 }
 0x1e4   : > { %564 = vrot.lane.b32.xlu1 %v5312_v55, %s3265_s25  ;;  %1782 = vrot.lane.b32.xlu0 %v1695_v60, %s3267_s10  ;;  %v1123_v60 = vsel %vm643_vm1, %v1091_v54, %v4543_v30  ;;  %v3028_v55 = vld [vmem:[%s3313_s23 + $0x180] sm:$0xff] }
 0x1e5   : > { %v1668_v48 = vsel %vm610_vm0, %v3028_v55, %v4545_v7  ;;  %v1669_v7 = vsel %vm610_vm0, %v3029_v41, %v4560_v39  ;;  %v1092_v39 = vsel %vm610_vm0, %v3028_v55, %v4573_v12 }
 0x1e6   : > { %v1737_v3 = vpop.permute.xlu1 %1736  ;;  %v4609_v46 = vpop.permute.xlu0 %1476  ;;  %v1700_v30 = vsel %vm643_vm1, %v1668_v48, %v4558_v43  ;;  %v1701_v49 = vsel %vm643_vm1, %v1669_v7, %v4575_v25  ;;  %v1124_v27 = vsel %vm643_vm1, %v1092_v39, %v4597_v38 }
 0x1e7   : > { %1833 = vst.msk [vmem:[#allocation2] sm:$0xff] %vm1832_vm5, %v1737_v3  ;;  %v5317_v3 = vld [vmem:[#allocation41_spill] sm:$0xff] }
 0x1e8   : > { %1206 = vrot.lane.b32.xlu0 %v1118_v31, %s3266_s30  ;;  %1208 = vrot.lane.b32.xlu1 %v1119_v62, %s3266_s30 }
 0x1ea   : > { %v4621_v47 = vpop.permute.xlu1 %1478  ;;  %v4623_v15 = vpop.permute.xlu0 %1028 }
 0x1ec   : > { %566 = vrot.lane.b32.xlu1 %v5313_v52, %s3265_s25  ;;  %1784 = vrot.lane.b32.xlu0 %v1696_v23, %s3267_s10  ;;  %v1093_v23 = vsel %vm610_vm0, %v3029_v41, %v4586_v63 }
 0x1ee   : > { %v1739_v61 = vpop.permute.xlu1 %1738  ;;  %v4633_v2 = vpop.permute.xlu0 %1604  ;;  %v1865_v28 = vld [vmem:[#allocation2] sm:$0xff] }
 0x1ef   : > { %1834 = vst.msk [vmem:[#allocation2 + $0x8] sm:$0xff] %vm1832_vm5, %v1739_v61  ;;  %3180 = vmatprep.mubr.msk.f32.mxu0 %vm1902_vm6, %v1865_v28  ;;  %v3030_v61 = vld [vmem:[%s3313_s23 + $0x198] sm:$0xff]  ;;  %v3031_v28 = vld [vmem:[%s3313_s23 + $0x1a0] sm:$0xff] }
 0x1f0   : > { %568 = vrot.lane.b32.xlu1 %v5314_v8, %s3265_s25  ;;  %1786 = vrot.lane.b32.xlu0 %v1697_v51, %s3267_s10  ;;  %v1125_v51 = vsel %vm643_vm1, %v1093_v23, %v4623_v15  ;;  %v1670_v12 = vsel %vm610_vm0, %v3030_v61, %v4609_v46  ;;  %v1671_v63 = vsel %vm610_vm0, %v3031_v28, %v4621_v47 }
 0x1f1   : > { %v1702_v15 = vsel %vm643_vm1, %v1670_v12, %v4633_v2  ;;  %v5323_v12 = vld [vmem:[#allocation6_spill] sm:$0xff] }
 0x1f2   : > { %v1163_v11 = vpop.permute.xlu1 %1162  ;;  %v4646_v26 = vpop.permute.xlu0 %1606 }
 0x1f3   : > { %1257 = vst.msk [vmem:[#allocation2 + $0x10] sm:$0xff] %vm1254_vm4, %v1163_v11  ;;  %v1703_v4 = vsel %vm643_vm1, %v1671_v63, %v4646_v26  ;;  %v634_v63 = vsel %vm610_vm0, %v4507_v36, %v5323_v12 }
 0x1f4   : > { %1210 = vrot.lane.b32.xlu0 %v1120_v22, %s3266_s30  ;;  %1212 = vrot.lane.b32.xlu1 %v1121_v58, %s3266_s30 }
 0x1f6   : > { %v1741_v18 = vpop.permute.xlu1 %1740  ;;  %v1165_v14 = vpop.permute.xlu0 %1164  ;;  %v1866_v19 = vld [vmem:[#allocation2 + $0x8] sm:$0xff] }
 0x1f7   : > { %1835 = vst.msk [vmem:[#allocation2 + $0x10] sm:$0xff] %vm1832_vm5, %v1741_v18  ;;  %3181 = vmatmul.mubr.msk.f32.vlgmr.msra.gmra.mrb[0].mxu0 %vm1902_vm6, %v1866_v19 }
 0x1f8   : > { %1258 = vst.msk [vmem:[#allocation2 + $0x18] sm:$0xff] %vm1254_vm4, %v1165_v14  ;;  %570 = vrot.lane.b32.xlu1 %v5315_v53, %s3265_s25  ;;  %1788 = vrot.lane.b32.xlu0 %v1698_v42, %s3267_s10 }
 0x1fa   : > { %v1167_v40 = vpop.permute.xlu1 %1166  ;;  %v1743_v24 = vpop.permute.xlu0 %1742 }
 0x1fb   : > { %1259 = vst.msk [vmem:[#allocation2 + $0x20] sm:$0xff] %vm1254_vm4, %v1167_v40 }
 0x1fc   : > { %1836 = vst.msk [vmem:[#allocation2 + $0x18] sm:$0xff] %vm1832_vm5, %v1743_v24  ;;  %572 = vrot.lane.b32.xlu1 %v5316_v45, %s3265_s25  ;;  %1790 = vrot.lane.b32.xlu0 %v1699_v6, %s3267_s10 }
 0x1fe   : > { %v1745_v21 = vpop.permute.xlu1 %1744  ;;  %v1169_v0 = vpop.permute.xlu0 %1168  ;;  %v1867_v57 = vld [vmem:[#allocation2 + $0x10] sm:$0xff] }
 0x1ff   : > { %1837 = vst.msk [vmem:[#allocation2 + $0x20] sm:$0xff] %vm1832_vm5, %v1745_v21  ;;  %3183 = vmatprep.mubr.msk.f32.mxu0 %vm1902_vm6, %v1867_v57  ;;  %v5319_v57 = vld [vmem:[#allocation3_spill] sm:$0xff] }
 0x200   : > { %1260 = vst.msk [vmem:[#allocation2 + $0x28] sm:$0xff] %vm1254_vm4, %v1169_v0  ;;  %1214 = vrot.lane.b32.xlu0 %v1122_v44, %s3266_s30  ;;  %1216 = vrot.lane.b32.xlu1 %v1123_v60, %s3266_s30  ;;  %v630_v44 = vsel %vm610_vm0, %v4423_v13, %v5319_v57  ;;  %v5320_v13 = vld [vmem:[#allocation5_spill] sm:$0xff] }
 0x201   : > { %v631_v41 = vsel %vm610_vm0, %v4442_v5, %v5320_v13  ;;  %v287_v13 = vld [vmem:[%s3313_s23 + $0x158] sm:$0xff] }
 0x202   : > { %v1171_v35 = vpop.permute.xlu1 %1170  ;;  %v1747_v56 = vpop.permute.xlu0 %1746 }
 0x203   : > { %v1868_v34 = vld [vmem:[#allocation2 + $0x18] sm:$0xff]  ;;  %1261 = vst.msk [vmem:[#allocation2 + $0x30] sm:$0xff] %vm1254_vm4, %v1171_v35 }
 0x204   : > { %1838 = vst.msk [vmem:[#allocation2 + $0x28] sm:$0xff] %vm1832_vm5, %v1747_v56  ;;  %3184 = vmatmul.mubr.msk.f32.gmra.mrb[2].mxu0 %vm1902_vm6, %v1868_v34  ;;  %574 = vrot.lane.b32.xlu1 %v5317_v3, %s3265_s25 }
 0x205   : > { %1792 = vrot.lane.b32.xlu0 %v1700_v30, %s3267_s10 }
 0x206   : > { %v1749_v31 = vpop.permute.xlu1 %1748  ;;  %v1173_v62 = vpop.permute.xlu0 %1172  ;;  %v1869_v43 = vld [vmem:[#allocation2 + $0x20] sm:$0xff] }
 0x207   : > { %1839 = vst.msk [vmem:[#allocation2 + $0x30] sm:$0xff] %vm1832_vm5, %v1749_v31  ;;  %3186 = vmatprep.mubr.msk.f32.mxu0 %vm1902_vm6, %v1869_v43  ;;  %v5321_v43 = vld [vmem:[#allocation4_spill] sm:$0xff] }
 0x208   : > { %1262 = vst.msk [vmem:[#allocation2 + $0x38] sm:$0xff] %vm1254_vm4, %v1173_v62  ;;  %576 = vrot.lane.b32.xlu1 %v5318_v33, %s3265_s25 }
 0x209   : > { %1794 = vrot.lane.b32.xlu0 %v1701_v49, %s3267_s10  ;;  %v632_v49 = vsel %vm610_vm0, %v4461_v29, %v5321_v43 }
 0x20a   : > { %v1175_v32 = vpop.permute.xlu1 %1174  ;;  %v1751_v52 = vpop.permute.xlu0 %1750 }
 0x20b   : > { %v1870_v25 = vld [vmem:[#allocation2 + $0x28] sm:$0xff]  ;;  %1263 = vst.msk [vmem:[#allocation2 + $0x40] sm:$0xff] %vm1254_vm4, %v1175_v32 }
 0x20c   : > { %1840 = vst.msk [vmem:[#allocation2 + $0x38] sm:$0xff] %vm1832_vm5, %v1751_v52  ;;  %3187 = vmatmul.mubr.msk.f32.gmra.mrb[4].mxu0 %vm1902_vm6, %v1870_v25  ;;  %1220 = vrot.lane.b32.xlu1 %v1125_v51, %s3266_s30  ;;  %v5322_v25 = vld [vmem:[#allocation7_spill] sm:$0xff] }
 0x20d   : > { %1218 = vrot.lane.b32.xlu0 %v1124_v27, %s3266_s30  ;;  %v633_v29 = vsel %vm610_vm0, %v4492_v50, %v5322_v25 }
 0x20e   : > { %v1753_v38 = vpop.permute.xlu1 %1752  ;;  %v1177_v8 = vpop.permute.xlu0 %1176  ;;  %v1871_v9 = vld [vmem:[#allocation2 + $0x30] sm:$0xff] }
 0x20f   : > { %1841 = vst.msk [vmem:[#allocation2 + $0x40] sm:$0xff] %vm1832_vm5, %v1753_v38  ;;  %3189 = vmatprep.mubr.msk.f32.mxu0 %vm1902_vm6, %v1871_v9 }
 0x210   : > { %1264 = vst.msk [vmem:[#allocation2 + $0x48] sm:$0xff] %vm1254_vm4, %v1177_v8  ;;  %1798 = vrot.lane.b32.xlu1 %v1703_v4, %s3267_s10 }
 0x211   : > { %1796 = vrot.lane.b32.xlu0 %v1702_v15, %s3267_s10 }
 0x212   : > { %v1179_v46 = vpop.permute.xlu1 %1178  ;;  %v1755_v47 = vpop.permute.xlu0 %1754 }
 0x213   : > { %v1872_v11 = vld [vmem:[#allocation2 + $0x38] sm:$0xff]  ;;  %1265 = vst.msk [vmem:[#allocation2 + $0x50] sm:$0xff] %vm1254_vm4, %v1179_v46  ;;  %v5324_v46 = vld [vmem:[#allocation9_spill] sm:$0xff] }
 0x214   : > { %1842 = vst.msk [vmem:[#allocation2 + $0x48] sm:$0xff] %vm1832_vm5, %v1755_v47  ;;  %3190 = vmatmul.mubr.msk.f32.gmra.mrb[6].mxu0 %vm1902_vm6, %v1872_v11  ;;  %v635_v36 = vsel %vm610_vm0, %v4538_v1, %v5324_v46 }
 0x216   : > { %v1757_v2 = vpop.permute.xlu1 %1756  ;;  %v1181_v26 = vpop.permute.xlu0 %1180  ;;  %v1873_v22 = vld [vmem:[#allocation2 + $0x40] sm:$0xff] }
 0x217   : > { %1843 = vst.msk [vmem:[#allocation2 + $0x50] sm:$0xff] %vm1832_vm5, %v1757_v2  ;;  %3192 = vmatprep.mubr.msk.f32.mxu0 %vm1902_vm6, %v1873_v22  ;;  %v5325_v22 = vld [vmem:[#allocation8_spill] sm:$0xff] }
 0x218   : > { %1266 = vst.msk [vmem:[#allocation2 + $0x58] sm:$0xff] %vm1254_vm4, %v1181_v26 }
 0x21a   : > { %v1183_v58 = vpop.permute.xlu1 %1182  ;;  %v1759_v59 = vpop.permute.xlu0 %1758 }
 0x21b   : > { %v1874_v20 = vld [vmem:[#allocation2 + $0x48] sm:$0xff]  ;;  %1267 = vst.msk [vmem:[#allocation2 + $0x60] sm:$0xff] %vm1254_vm4, %v1183_v58  ;;  %v636_v58 = vsel %vm610_vm0, %v4553_v10, %v5325_v22  ;;  %v5326_v10 = vld [vmem:[#allocation11_spill] sm:$0xff] }
 0x21c   : > { %1844 = vst.msk [vmem:[#allocation2 + $0x58] sm:$0xff] %vm1832_vm5, %v1759_v59  ;;  %3193 = vmatmul.mubr.msk.f32.gmra.mrb[8].mxu0 %vm1902_vm6, %v1874_v20 }
 0x21e   : > { %v1761_v18 = vpop.permute.xlu1 %1760  ;;  %v1185_v14 = vpop.permute.xlu0 %1184  ;;  %v1875_v19 = vld [vmem:[#allocation2 + $0x50] sm:$0xff] }
 0x21f   : > { %1845 = vst.msk [vmem:[#allocation2 + $0x60] sm:$0xff] %vm1832_vm5, %v1761_v18  ;;  %3195 = vmatprep.mubr.msk.f32.mxu0 %vm1902_vm6, %v1875_v19 }
 0x220   : > { %1268 = vst.msk [vmem:[#allocation2 + $0x68] sm:$0xff] %vm1254_vm4, %v1185_v14 }
 0x222   : > { %v1187_v42 = vpop.permute.xlu1 %1186  ;;  %v1763_v37 = vpop.permute.xlu0 %1762 }
 0x223   : > { %v1876_v53 = vld [vmem:[#allocation2 + $0x58] sm:$0xff]  ;;  %1269 = vst.msk [vmem:[#allocation2 + $0x70] sm:$0xff] %vm1254_vm4, %v1187_v42 }
 0x224   : > { %1846 = vst.msk [vmem:[#allocation2 + $0x68] sm:$0xff] %vm1832_vm5, %v1763_v37  ;;  %3196 = vmatmul.mubr.msk.f32.gmra.mrb[10].mxu0 %vm1902_vm6, %v1876_v53  ;;  %v284_v42 = vld [vmem:[%s3313_s23 + $0x138] sm:$0xff] }
 0x225   : > { %v637_v37 = vsel %vm610_vm0, %v284_v42, %v5326_v10 }
 0x226   : > { %v1765_v16 = vpop.permute.xlu1 %1764  ;;  %v1189_v40 = vpop.permute.xlu0 %1188  ;;  %v1877_v24 = vld [vmem:[#allocation2 + $0x60] sm:$0xff] }
 0x227   : > { %1847 = vst.msk [vmem:[#allocation2 + $0x70] sm:$0xff] %vm1832_vm5, %v1765_v16  ;;  %3198 = vmatprep.mubr.msk.f32.mxu0 %vm1902_vm6, %v1877_v24  ;;  %v285_v24 = vld [vmem:[%s3313_s23 + $0x140] sm:$0xff] }
 0x228   : > { %1270 = vst.msk [vmem:[#allocation2 + $0x78] sm:$0xff] %vm1254_vm4, %v1189_v40 }
 0x22a   : > { %v1191_v6 = vpop.permute.xlu1 %1190  ;;  %v1767_v45 = vpop.permute.xlu0 %1766 }
 0x22b   : > { %v1878_v17 = vld [vmem:[#allocation2 + $0x68] sm:$0xff]  ;;  %1271 = vst.msk [vmem:[#allocation2 + $0x80] sm:$0xff] %vm1254_vm4, %v1191_v6 }
 0x22c   : > { %1848 = vst.msk [vmem:[#allocation2 + $0x78] sm:$0xff] %vm1832_vm5, %v1767_v45  ;;  %3199 = vmatmul.mubr.msk.f32.gmra.mrb[12].mxu0 %vm1902_vm6, %v1878_v17  ;;  %v5327_v45 = vld [vmem:[#allocation10_spill] sm:$0xff] }
 0x22d   : > { %v638_v17 = vsel %vm610_vm0, %v285_v24, %v5327_v45 }
 0x22e   : > { %v1769_v54 = vpop.permute.xlu1 %1768  ;;  %v1193_v21 = vpop.permute.xlu0 %1192  ;;  %v1879_v0 = vld [vmem:[#allocation2 + $0x70] sm:$0xff] }
 0x22f   : > { %1849 = vst.msk [vmem:[#allocation2 + $0x80] sm:$0xff] %vm1832_vm5, %v1769_v54  ;;  %3201 = vmatprep.mubr.msk.f32.mxu0 %vm1902_vm6, %v1879_v0 }
 0x230   : > { %1272 = vst.msk [vmem:[#allocation2 + $0x88] sm:$0xff] %vm1254_vm4, %v1193_v21 }
 0x232   : > { %v553_v60 = vpop.permute.xlu1 %552  ;;  %v1771_v55 = vpop.permute.xlu0 %1770 }
 0x233   : > { %v1880_v48 = vld [vmem:[#allocation2 + $0x78] sm:$0xff]  ;;  %v663_v35 = vsel %vm643_vm1, %v630_v44, %v553_v60  ;;  %1850 = vst.msk [vmem:[#allocation2 + $0x88] sm:$0xff] %vm1832_vm5, %v1771_v55  ;;  %v286_v55 = vld [vmem:[%s3313_s23 + $0x150] sm:$0xff] }
 0x234   : > { %3202 = vmatmul.mubr.msk.f32.gmra.mrb[14].mxu0 %vm1902_vm6, %v1880_v48  ;;  %696 = vst.msk [vmem:[#allocation2 + $0x98] sm:$0xff] %vm676_vm2, %v663_v35  ;;  %v5328_v48 = vld [vmem:[#allocation13_spill] sm:$0xff] }
 0x235   : > { %v639_v35 = vsel %vm610_vm0, %v286_v55, %v5328_v48 }
 0x236   : > { %v1197_v56 = vpop.permute.xlu1 %1196  ;;  %v1195_v34 = vpop.permute.xlu0 %1194  ;;  %v1881_v30 = vld [vmem:[#allocation2 + $0x80] sm:$0xff] }
 0x237   : > { %1274 = vst.msk [vmem:[#allocation2 + $0x98] sm:$0xff] %vm1254_vm4, %v1197_v56  ;;  %1273 = vst.msk [vmem:[#allocation2 + $0x90] sm:$0xff] %vm1254_vm4, %v1195_v34  ;;  %3204 = vmatprep.mubr.msk.f32.mxu1 %vm1902_vm6, %v1881_v30 }
 0x23a   : > { %v555_v3 = vpop.permute.xlu1 %554  ;;  %v1773_v7 = vpop.permute.xlu0 %1772  ;;  %v1882_v31 = vld [vmem:[#allocation2 + $0x88] sm:$0xff] }
 0x23b   : > { %v664_v62 = vsel %vm643_vm1, %v631_v41, %v555_v3  ;;  %1851 = vst.msk [vmem:[#allocation2 + $0x90] sm:$0xff] %vm1832_vm5, %v1773_v7  ;;  %3205 = vmatmul.mubr.msk.f32.vlgmr.msra.gmra.mrb[0].mxu1 %vm1902_vm6, %v1882_v31  ;;  %v5329_v3 = vld [vmem:[#allocation12_spill] sm:$0xff] }
 0x23c   : > { %697 = vst.msk [vmem:[#allocation2 + $0xa0] sm:$0xff] %vm676_vm2, %v664_v62  ;;  %v640_v7 = vsel %vm610_vm0, %v287_v13, %v5329_v3 }
 0x23e   : > { %v557_v33 = vpop.permute.xlu1 %556  ;;  %v1775_v39 = vpop.permute.xlu0 %1774 }
 0x23f   : > { %v665_v23 = vsel %vm643_vm1, %v632_v49, %v557_v33  ;;  %1852 = vst.msk [vmem:[#allocation2 + $0x98] sm:$0xff] %vm1832_vm5, %v1775_v39 }
 0x240   : > { %698 = vst.msk [vmem:[#allocation2 + $0xa8] sm:$0xff] %vm676_vm2, %v665_v23  ;;  %v288_v23 = vld [vmem:[%s3313_s23 + $0x168] sm:$0xff] }
 0x242   : > { %v1201_v5 = vpop.permute.xlu1 %1200  ;;  %v1199_v32 = vpop.permute.xlu0 %1198  ;;  %v1883_v52 = vld [vmem:[#allocation2 + $0x90] sm:$0xff] }
 0x243   : > { %1276 = vst.msk [vmem:[#allocation2 + $0xa8] sm:$0xff] %vm1254_vm4, %v1201_v5  ;;  %1275 = vst.msk [vmem:[#allocation2 + $0xa0] sm:$0xff] %vm1254_vm4, %v1199_v32  ;;  %3207 = vmatprep.mubr.msk.f32.mxu1 %vm1902_vm6, %v1883_v52  ;;  %v5330_v5 = vld [vmem:[#allocation15_spill] sm:$0xff] }
 0x244   : > { %v641_v32 = vsel %vm610_vm0, %v288_v23, %v5330_v5 }
 0x246   : > { %v559_v27 = vpop.permute.xlu1 %558  ;;  %v1777_v61 = vpop.permute.xlu0 %1776  ;;  %v1884_v28 = vld [vmem:[#allocation2 + $0x98] sm:$0xff] }
 0x247   : > { %v666_v51 = vsel %vm643_vm1, %v633_v29, %v559_v27  ;;  %1853 = vst.msk [vmem:[#allocation2 + $0xa0] sm:$0xff] %vm1832_vm5, %v1777_v61  ;;  %3208 = vmatmul.mubr.msk.f32.gmra.mrb[2].mxu1 %vm1902_vm6, %v1884_v28  ;;  %v289_v27 = vld [vmem:[%s3313_s23 + $0x170] sm:$0xff]  ;;  %v5331_v28 = vld [vmem:[#allocation14_spill] sm:$0xff]  ;;  %s2900_s23 = sshll.u32 %s5333_s19, 1 }
 0x248   : > { %699 = vst.msk [vmem:[#allocation2 + $0xb0] sm:$0xff] %vm676_vm2, %v666_v51  ;;  %v642_v51 = vsel %vm610_vm0, %v289_v27, %v5331_v28  ;;  %s248_s26 = scalar_lea.vmem %s5200_s3, %s2900_s23  ;;  %s257_s29 = scalar_lea.vmem %s5202_s5, %s2900_s23 }
 0x24a   : > { %v561_v38 = vpop.permute.xlu1 %560  ;;  %v1779_v8 = vpop.permute.xlu0 %1778 }
 0x24b   : > { %v667_v9 = vsel %vm643_vm1, %v634_v63, %v561_v38  ;;  %1854 = vst.msk [vmem:[#allocation2 + $0xa8] sm:$0xff] %vm1832_vm5, %v1779_v8 }
 0x24c   : > { %700 = vst.msk [vmem:[#allocation2 + $0xb8] sm:$0xff] %vm676_vm2, %v667_v9 }
 0x24e   : > { %v1205_v50 = vpop.permute.xlu1 %1204  ;;  %v1203_v15 = vpop.permute.xlu0 %1202  ;;  %v1885_v4 = vld [vmem:[#allocation2 + $0xa0] sm:$0xff] }
 0x24f   : > { %1278 = vst.msk [vmem:[#allocation2 + $0xb8] sm:$0xff] %vm1254_vm4, %v1205_v50  ;;  %1277 = vst.msk [vmem:[#allocation2 + $0xb0] sm:$0xff] %vm1254_vm4, %v1203_v15  ;;  %3210 = vmatprep.mubr.msk.f32.mxu1 %vm1902_vm6, %v1885_v4 }
 0x252   : > { %v563_v47 = vpop.permute.xlu1 %562  ;;  %v1781_v11 = vpop.permute.xlu0 %1780  ;;  %v1886_v2 = vld [vmem:[#allocation2 + $0xa8] sm:$0xff] }
 0x253   : > { %v668_v26 = vsel %vm643_vm1, %v635_v36, %v563_v47  ;;  %1855 = vst.msk [vmem:[#allocation2 + $0xb0] sm:$0xff] %vm1832_vm5, %v1781_v11  ;;  %3211 = vmatmul.mubr.msk.f32.gmra.mrb[4].mxu1 %vm1902_vm6, %v1886_v2 }
 0x254   : > { %701 = vst.msk [vmem:[#allocation2 + $0xc0] sm:$0xff] %vm676_vm2, %v668_v26 }
 0x256   : > { %v565_v59 = vpop.permute.xlu1 %564  ;;  %v1783_v20 = vpop.permute.xlu0 %1782 }
 0x257   : > { %v669_v1 = vsel %vm643_vm1, %v636_v58, %v565_v59  ;;  %1856 = vst.msk [vmem:[#allocation2 + $0xb8] sm:$0xff] %vm1832_vm5, %v1783_v20 }
 0x258   : > { %702 = vst.msk [vmem:[#allocation2 + $0xc8] sm:$0xff] %vm676_vm2, %v669_v1 }
 0x25a   : > { %v1209_v18 = vpop.permute.xlu1 %1208  ;;  %v1207_v14 = vpop.permute.xlu0 %1206  ;;  %v1887_v19 = vld [vmem:[#allocation2 + $0xb0] sm:$0xff] }
 0x25b   : > { %1280 = vst.msk [vmem:[#allocation2 + $0xc8] sm:$0xff] %vm1254_vm4, %v1209_v18  ;;  %1279 = vst.msk [vmem:[#allocation2 + $0xc0] sm:$0xff] %vm1254_vm4, %v1207_v14  ;;  %3213 = vmatprep.mubr.msk.f32.mxu1 %vm1902_vm6, %v1887_v19 }
 0x25e   : > { %v567_v53 = vpop.permute.xlu1 %566  ;;  %v1785_v16 = vpop.permute.xlu0 %1784  ;;  %v1888_v40 = vld [vmem:[#allocation2 + $0xb8] sm:$0xff] }
 0x25f   : > { %v670_v6 = vsel %vm643_vm1, %v637_v37, %v567_v53  ;;  %1857 = vst.msk [vmem:[#allocation2 + $0xc0] sm:$0xff] %vm1832_vm5, %v1785_v16  ;;  %3214 = vmatmul.mubr.msk.f32.gmra.mrb[6].mxu1 %vm1902_vm6, %v1888_v40 }
 0x260   : > { %703 = vst.msk [vmem:[#allocation2 + $0xd0] sm:$0xff] %vm676_vm2, %v670_v6 }
 0x262   : > { %v569_v54 = vpop.permute.xlu1 %568  ;;  %v1787_v21 = vpop.permute.xlu0 %1786 }
 0x263   : > { %v671_v0 = vsel %vm643_vm1, %v638_v17, %v569_v54  ;;  %1858 = vst.msk [vmem:[#allocation2 + $0xc8] sm:$0xff] %vm1832_vm5, %v1787_v21 }
 0x264   : > { %704 = vst.msk [vmem:[#allocation2 + $0xd8] sm:$0xff] %vm676_vm2, %v671_v0 }
 0x266   : > { %v1213_v57 = vpop.permute.xlu1 %1212  ;;  %v1211_v44 = vpop.permute.xlu0 %1210  ;;  %v1889_v60 = vld [vmem:[#allocation2 + $0xc0] sm:$0xff] }
 0x267   : > { %1282 = vst.msk [vmem:[#allocation2 + $0xd8] sm:$0xff] %vm1254_vm4, %v1213_v57  ;;  %1281 = vst.msk [vmem:[#allocation2 + $0xd0] sm:$0xff] %vm1254_vm4, %v1211_v44  ;;  %3216 = vmatprep.mubr.msk.f32.mxu1 %vm1902_vm6, %v1889_v60 }
 0x26a   : > { %v571_v56 = vpop.permute.xlu1 %570  ;;  %v1789_v34 = vpop.permute.xlu0 %1788  ;;  %v1890_v30 = vld [vmem:[#allocation2 + $0xc8] sm:$0xff] }
 0x26b   : > { %v672_v41 = vsel %vm643_vm1, %v639_v35, %v571_v56  ;;  %1859 = vst.msk [vmem:[#allocation2 + $0xd0] sm:$0xff] %vm1832_vm5, %v1789_v34  ;;  %3217 = vmatmul.mubr.msk.f32.gmra.mrb[8].mxu1 %vm1902_vm6, %v1890_v30 }
 0x26c   : > { %705 = vst.msk [vmem:[#allocation2 + $0xe0] sm:$0xff] %vm676_vm2, %v672_v41 }
 0x26e   : > { %v573_v31 = vpop.permute.xlu1 %572  ;;  %v1791_v62 = vpop.permute.xlu0 %1790 }
 0x26f   : > { %v673_v43 = vsel %vm643_vm1, %v640_v7, %v573_v31  ;;  %1860 = vst.msk [vmem:[#allocation2 + $0xd8] sm:$0xff] %vm1832_vm5, %v1791_v62 }
 0x270   : > { %706 = vst.msk [vmem:[#allocation2 + $0xe8] sm:$0xff] %vm676_vm2, %v673_v43 }
 0x272   : > { %v1217_v49 = vpop.permute.xlu1 %1216  ;;  %v1215_v33 = vpop.permute.xlu0 %1214  ;;  %v1891_v39 = vld [vmem:[#allocation2 + $0xd0] sm:$0xff] }
 0x273   : > { %1284 = vst.msk [vmem:[#allocation2 + $0xe8] sm:$0xff] %vm1254_vm4, %v1217_v49  ;;  %1283 = vst.msk [vmem:[#allocation2 + $0xe0] sm:$0xff] %vm1254_vm4, %v1215_v33  ;;  %3219 = vmatprep.mubr.msk.f32.mxu1 %vm1902_vm6, %v1891_v39 }
 0x276   : > { %v575_v52 = vpop.permute.xlu1 %574  ;;  %v1892_v29 = vld [vmem:[#allocation2 + $0xd8] sm:$0xff] }
 0x277   : > { %v1793_v25 = vpop.permute.xlu0 %1792  ;;  %v674_v61 = vsel %vm643_vm1, %v641_v32, %v575_v52  ;;  %3220 = vmatmul.mubr.msk.f32.gmra.mrb[10].mxu1 %vm1902_vm6, %v1892_v29 }
 0x278   : > { %1861 = vst.msk [vmem:[#allocation2 + $0xe0] sm:$0xff] %vm1832_vm5, %v1793_v25 }
 0x279   : > { %707 = vst.msk [vmem:[#allocation2 + $0xf0] sm:$0xff] %vm676_vm2, %v674_v61 }
 0x27a   : > { %v577_v12 = vpop.permute.xlu1 %576 }
 0x27b   : > { %v1795_v63 = vpop.permute.xlu0 %1794  ;;  %v675_v38 = vsel %vm643_vm1, %v642_v51, %v577_v12 }
 0x27c   : > { %1862 = vst.msk [vmem:[#allocation2 + $0xe8] sm:$0xff] %vm1832_vm5, %v1795_v63 }
 0x27d   : > { %708 = vst.msk [vmem:[#allocation2 + $0xf8] sm:$0xff] %vm676_vm2, %v675_v38 }
 0x27e   : > { %v1221_v8 = vpop.permute.xlu1 %1220 }
 0x27f   : > { %v1219_v9 = vpop.permute.xlu0 %1218  ;;  %v1893_v50 = vld [vmem:[#allocation2 + $0xe0] sm:$0xff]  ;;  %1286 = vst.msk [vmem:[#allocation2 + $0xf8] sm:$0xff] %vm1254_vm4, %v1221_v8 }
 0x280   : > { %1285 = vst.msk [vmem:[#allocation2 + $0xf0] sm:$0xff] %vm1254_vm4, %v1219_v9  ;;  %3222 = vmatprep.mubr.msk.f32.mxu1 %vm1902_vm6, %v1893_v50 }
 0x282   : > { %v1799_v15 = vpop.permute.xlu1 %1798 }
 0x283   : > { %v1797_v4 = vpop.permute.xlu0 %1796  ;;  %v1894_v46 = vld [vmem:[#allocation2 + $0xe8] sm:$0xff]  ;;  %1864 = vst.msk [vmem:[#allocation2 + $0xf8] sm:$0xff] %vm1832_vm5, %v1799_v15 }
 0x284   : > { %1863 = vst.msk [vmem:[#allocation2 + $0xf0] sm:$0xff] %vm1832_vm5, %v1797_v4  ;;  %3223 = vmatmul.mubr.msk.f32.gmra.mrb[12].mxu1 %vm1902_vm6, %v1894_v46 }
 0x28a   : > { %v1896_v47 = vld [vmem:[#allocation2 + $0xf8] sm:$0xff] }
 0x28b   : > { %v1895_v36 = vld [vmem:[#allocation2 + $0xf0] sm:$0xff] }
 0x28c   : > { %3225 = vmatprep.mubr.msk.f32.mxu1 %vm1902_vm6, %v1895_v36 }
 0x28d   : > { %3226 = vmatmul.mubr.msk.f32.gmra.mrb[14].mxu1 %vm1902_vm6, %v1896_v47 }
 0x2ca   : > { %v3182_v11 = vpop.f32.mrb[0].mxu0 }
 0x2cb   : > { %2229 = vst.msk [vmem:[%s4880_s16 + $0x8] sm:$0xff] %vm643_vm1, %v3182_v11  ;;  %v2261_v2 = vsel %vm643_vm1, %v3182_v11, 0.0  ;;  %v2332_v26 = vmul.f32 %v3182_v11, %v3182_v11  ;;  %v2595_v22 = vsel %vm2593_vm7, %v3182_v11, 0.0  ;;  %2467 = vrot.lane.b32.xlu1 %v3182_v11, %s3268_s17  ;;  %v2069_v58 = vpop.f32.mrb[1].mxu0 }
 0x2cc   : > { %2228 = vst.msk [vmem:[%s4880_s16] sm:$0xff] %vm643_vm1, %v2069_v58  ;;  %v2260_v59 = vsel %vm643_vm1, %v2069_v58, 0.0  ;;  %v2331_v20 = vmul.f32 %v2069_v58, %v2069_v58  ;;  %v2594_v1 = vsel %vm2593_vm7, %v2069_v58, 0.0  ;;  %2465 = vrot.lane.b32.xlu0 %v2069_v58, %s3268_s17 }
 0x2cd   : > { %v2364_v18 = vsel %vm643_vm1, %v2332_v26, 0.0  ;;  %v2669_v14 = vsel %vm2593_vm7, %v2332_v26, 0.0  ;;  %v2262_v19 = vadd.f32 %v2261_v2, %v2260_v59  ;;  %v2596_v42 = vadd.f32 %v2595_v22, %v2594_v1 }
 0x2ce   : > { %v2363_v10 = vsel %vm643_vm1, %v2331_v20, 0.0  ;;  %v2668_v37 = vsel %vm2593_vm7, %v2331_v20, 0.0 }
 0x2cf   : > { %v2365_v53 = vadd.f32 %v2364_v18, %v2363_v10  ;;  %v2670_v16 = vadd.f32 %v2669_v14, %v2668_v37 }
 0x2d7   : > { %v3185_v40 = vpop.f32.mrb[2].mxu0 }
 0x2d8   : > { %2231 = vst.msk [vmem:[%s4880_s16 + $0x18] sm:$0xff] %vm643_vm1, %v3185_v40  ;;  %2471 = vrot.lane.b32.xlu1 %v3185_v40, %s3268_s17  ;;  %v2079_v24 = vpop.f32.mrb[3].mxu0  ;;  %v2334_v6 = vmul.f32 %v3185_v40, %v3185_v40  ;;  %v2265_v57 = vsel %vm643_vm1, %v3185_v40, 0.0  ;;  %v2599_v44 = vsel %vm2593_vm7, %v3185_v40, 0.0 }
 0x2d9   : > { %2230 = vst.msk [vmem:[%s4880_s16 + $0x10] sm:$0xff] %vm643_vm1, %v2079_v24  ;;  %v2263_v45 = vsel %vm643_vm1, %v2079_v24, 0.0  ;;  %v2333_v17 = vmul.f32 %v2079_v24, %v2079_v24  ;;  %v2597_v54 = vsel %vm2593_vm7, %v2079_v24, 0.0  ;;  %2469 = vrot.lane.b32.xlu0 %v2079_v24, %s3268_s17 }
 0x2da   : > { %v2264_v21 = vadd.f32 %v2263_v45, %v2262_v19  ;;  %v2598_v0 = vadd.f32 %v2597_v54, %v2596_v42  ;;  %v2368_v30 = vsel %vm643_vm1, %v2334_v6, 0.0  ;;  %v2673_v13 = vsel %vm2593_vm7, %v2334_v6, 0.0 }
 0x2db   : > { %v2366_v60 = vsel %vm643_vm1, %v2333_v17, 0.0  ;;  %v2671_v55 = vsel %vm2593_vm7, %v2333_v17, 0.0 }
 0x2dc   : > { %v2367_v48 = vadd.f32 %v2366_v60, %v2365_v53  ;;  %v2672_v35 = vadd.f32 %v2671_v55, %v2670_v16  ;;  %v2266_v56 = vadd.f32 %v2265_v57, %v2264_v21  ;;  %v2600_v34 = vadd.f32 %v2599_v44, %v2598_v0 }
 0x2de   : > { %v2369_v41 = vadd.f32 %v2368_v30, %v2367_v48  ;;  %v2674_v3 = vadd.f32 %v2673_v13, %v2672_v35 }
 0x2df   : > { %v3188_v7 = vpop.f32.mrb[4].mxu0 }
 0x2e0   : > { %2233 = vst.msk [vmem:[%s4880_s16 + $0x28] sm:$0xff] %vm643_vm1, %v3188_v7  ;;  %2475 = vrot.lane.b32.xlu1 %v3188_v7, %s3268_s17  ;;  %v2089_v31 = vpop.f32.mrb[5].mxu0  ;;  %v2336_v62 = vmul.f32 %v3188_v7, %v3188_v7  ;;  %v2269_v5 = vsel %vm643_vm1, %v3188_v7, 0.0  ;;  %v2603_v32 = vsel %vm2593_vm7, %v3188_v7, 0.0 }
 0x2e1   : > { %2232 = vst.msk [vmem:[%s4880_s16 + $0x20] sm:$0xff] %vm643_vm1, %v2089_v31  ;;  %v2267_v43 = vsel %vm643_vm1, %v2089_v31, 0.0  ;;  %v2335_v49 = vmul.f32 %v2089_v31, %v2089_v31  ;;  %v2601_v33 = vsel %vm2593_vm7, %v2089_v31, 0.0  ;;  %2473 = vrot.lane.b32.xlu0 %v2089_v31, %s3268_s17 }
 0x2e2   : > { %v2268_v39 = vadd.f32 %v2267_v43, %v2266_v56  ;;  %v2602_v23 = vadd.f32 %v2601_v33, %v2600_v34  ;;  %v2372_v51 = vsel %vm643_vm1, %v2336_v62, 0.0  ;;  %v2677_v12 = vsel %vm2593_vm7, %v2336_v62, 0.0 }
 0x2e3   : > { %v2370_v52 = vsel %vm643_vm1, %v2335_v49, 0.0  ;;  %v2675_v25 = vsel %vm2593_vm7, %v2335_v49, 0.0 }
 0x2e4   : > { %v2371_v29 = vadd.f32 %v2370_v52, %v2369_v41  ;;  %v2676_v27 = vadd.f32 %v2675_v25, %v2674_v3  ;;  %v2270_v61 = vadd.f32 %v2269_v5, %v2268_v39  ;;  %v2604_v28 = vadd.f32 %v2603_v32, %v2602_v23 }
 0x2e6   : > { %v2373_v63 = vadd.f32 %v2372_v51, %v2371_v29  ;;  %v2678_v38 = vadd.f32 %v2677_v12, %v2676_v27 }
 0x2e7   : > { %v3191_v8 = vpop.f32.mrb[6].mxu0 }
 0x2e8   : > { %2235 = vst.msk [vmem:[%s4880_s16 + $0x38] sm:$0xff] %vm643_vm1, %v3191_v8  ;;  %2479 = vrot.lane.b32.xlu1 %v3191_v8, %s3268_s17  ;;  %v2099_v9 = vpop.f32.mrb[7].mxu0  ;;  %v2338_v50 = vmul.f32 %v3191_v8, %v3191_v8  ;;  %v2273_v11 = vsel %vm643_vm1, %v3191_v8, 0.0  ;;  %v2607_v2 = vsel %vm2593_vm7, %v3191_v8, 0.0 }
 0x2e9   : > { %2234 = vst.msk [vmem:[%s4880_s16 + $0x30] sm:$0xff] %vm643_vm1, %v2099_v9  ;;  %v2271_v15 = vsel %vm643_vm1, %v2099_v9, 0.0  ;;  %v2337_v4 = vmul.f32 %v2099_v9, %v2099_v9  ;;  %v2605_v46 = vsel %vm2593_vm7, %v2099_v9, 0.0  ;;  %2477 = vrot.lane.b32.xlu0 %v2099_v9, %s3268_s17 }
 0x2ea   : > { %v2272_v36 = vadd.f32 %v2271_v15, %v2270_v61  ;;  %v2606_v47 = vadd.f32 %v2605_v46, %v2604_v28  ;;  %v2376_v18 = vsel %vm643_vm1, %v2338_v50, 0.0  ;;  %v2681_v14 = vsel %vm2593_vm7, %v2338_v50, 0.0 }
 0x2eb   : > { %v2374_v26 = vsel %vm643_vm1, %v2337_v4, 0.0  ;;  %v2679_v22 = vsel %vm2593_vm7, %v2337_v4, 0.0 }
 0x2ec   : > { %v2375_v58 = vadd.f32 %v2374_v26, %v2373_v63  ;;  %v2680_v59 = vadd.f32 %v2679_v22, %v2678_v38  ;;  %v2274_v20 = vadd.f32 %v2273_v11, %v2272_v36  ;;  %v2608_v1 = vadd.f32 %v2607_v2, %v2606_v47 }
 0x2ee   : > { %v2377_v19 = vadd.f32 %v2376_v18, %v2375_v58  ;;  %v2682_v42 = vadd.f32 %v2681_v14, %v2680_v59 }
 0x2ef   : > { %v3194_v10 = vpop.f32.mrb[8].mxu0 }
 0x2f0   : > { %2237 = vst.msk [vmem:[%s4880_s16 + $0x48] sm:$0xff] %vm643_vm1, %v3194_v10  ;;  %2483 = vrot.lane.b32.xlu1 %v3194_v10, %s3268_s17  ;;  %v2109_v37 = vpop.f32.mrb[9].mxu0  ;;  %v2340_v53 = vmul.f32 %v3194_v10, %v3194_v10  ;;  %v2277_v17 = vsel %vm643_vm1, %v3194_v10, 0.0  ;;  %v2611_v54 = vsel %vm2593_vm7, %v3194_v10, 0.0 }
 0x2f1   : > { %2236 = vst.msk [vmem:[%s4880_s16 + $0x40] sm:$0xff] %vm643_vm1, %v2109_v37  ;;  %v2275_v16 = vsel %vm643_vm1, %v2109_v37, 0.0  ;;  %v2339_v40 = vmul.f32 %v2109_v37, %v2109_v37  ;;  %v2609_v24 = vsel %vm2593_vm7, %v2109_v37, 0.0  ;;  %2481 = vrot.lane.b32.xlu0 %v2109_v37, %s3268_s17 }
 0x2f2   : > { %v2276_v6 = vadd.f32 %v2275_v16, %v2274_v20  ;;  %v2610_v45 = vadd.f32 %v2609_v24, %v2608_v1  ;;  %v2380_v48 = vsel %vm643_vm1, %v2340_v53, 0.0  ;;  %v2685_v35 = vsel %vm2593_vm7, %v2340_v53, 0.0 }
 0x2f3   : > { %v2378_v21 = vsel %vm643_vm1, %v2339_v40, 0.0  ;;  %v2683_v0 = vsel %vm2593_vm7, %v2339_v40, 0.0 }
 0x2f4   : > { %v2379_v57 = vadd.f32 %v2378_v21, %v2377_v19  ;;  %v2684_v44 = vadd.f32 %v2683_v0, %v2682_v42  ;;  %v2278_v60 = vadd.f32 %v2277_v17, %v2276_v6  ;;  %v2612_v55 = vadd.f32 %v2611_v54, %v2610_v45 }
 0x2f6   : > { %v2381_v56 = vadd.f32 %v2380_v48, %v2379_v57  ;;  %v2686_v34 = vadd.f32 %v2685_v35, %v2684_v44 }
 0x2f7   : > { %v3197_v30 = vpop.f32.mrb[10].mxu0 }
 0x2f8   : > { %2239 = vst.msk [vmem:[%s4880_s16 + $0x58] sm:$0xff] %vm643_vm1, %v3197_v30  ;;  %2487 = vrot.lane.b32.xlu1 %v3197_v30, %s3268_s17  ;;  %v2119_v13 = vpop.f32.mrb[11].mxu0  ;;  %v2342_v41 = vmul.f32 %v3197_v30, %v3197_v30  ;;  %v2281_v49 = vsel %vm643_vm1, %v3197_v30, 0.0  ;;  %v2615_v33 = vsel %vm2593_vm7, %v3197_v30, 0.0 }
 0x2f9   : > { %2238 = vst.msk [vmem:[%s4880_s16 + $0x50] sm:$0xff] %vm643_vm1, %v2119_v13  ;;  %v2279_v3 = vsel %vm643_vm1, %v2119_v13, 0.0  ;;  %v2341_v7 = vmul.f32 %v2119_v13, %v2119_v13  ;;  %v2613_v31 = vsel %vm2593_vm7, %v2119_v13, 0.0  ;;  %2485 = vrot.lane.b32.xlu0 %v2119_v13, %s3268_s17 }
 0x2fa   : > { %v2280_v62 = vadd.f32 %v2279_v3, %v2278_v60  ;;  %v2614_v43 = vadd.f32 %v2613_v31, %v2612_v55  ;;  %v2384_v29 = vsel %vm643_vm1, %v2342_v41, 0.0  ;;  %v2689_v27 = vsel %vm2593_vm7, %v2342_v41, 0.0 }
 0x2fb   : > { %v2382_v39 = vsel %vm643_vm1, %v2341_v7, 0.0  ;;  %v2687_v23 = vsel %vm2593_vm7, %v2341_v7, 0.0 }
 0x2fc   : > { %v2383_v5 = vadd.f32 %v2382_v39, %v2381_v56  ;;  %v2688_v32 = vadd.f32 %v2687_v23, %v2686_v34  ;;  %v2282_v52 = vadd.f32 %v2281_v49, %v2280_v62  ;;  %v2616_v25 = vadd.f32 %v2615_v33, %v2614_v43 }
 0x2fe   : > { %v2385_v61 = vadd.f32 %v2384_v29, %v2383_v5  ;;  %v2690_v28 = vadd.f32 %v2689_v27, %v2688_v32 }
 0x2ff   : > { %v3200_v51 = vpop.f32.mrb[12].mxu0 }
 0x300   : > { %2241 = vst.msk [vmem:[%s4880_s16 + $0x68] sm:$0xff] %vm643_vm1, %v3200_v51  ;;  %2491 = vrot.lane.b32.xlu1 %v3200_v51, %s3268_s17  ;;  %v2129_v12 = vpop.f32.mrb[13].mxu0  ;;  %v2344_v63 = vmul.f32 %v3200_v51, %v3200_v51  ;;  %v2285_v4 = vsel %vm643_vm1, %v3200_v51, 0.0  ;;  %v2619_v46 = vsel %vm2593_vm7, %v3200_v51, 0.0 }
 0x301   : > { %2240 = vst.msk [vmem:[%s4880_s16 + $0x60] sm:$0xff] %vm643_vm1, %v2129_v12  ;;  %v2283_v38 = vsel %vm643_vm1, %v2129_v12, 0.0  ;;  %v2343_v8 = vmul.f32 %v2129_v12, %v2129_v12  ;;  %v2617_v9 = vsel %vm2593_vm7, %v2129_v12, 0.0  ;;  %2489 = vrot.lane.b32.xlu0 %v2129_v12, %s3268_s17 }
 0x302   : > { %v2284_v50 = vadd.f32 %v2283_v38, %v2282_v52  ;;  %v2618_v15 = vadd.f32 %v2617_v9, %v2616_v25  ;;  %v2388_v58 = vsel %vm643_vm1, %v2344_v63, 0.0  ;;  %v2693_v59 = vsel %vm2593_vm7, %v2344_v63, 0.0 }
 0x303   : > { %v2386_v36 = vsel %vm643_vm1, %v2343_v8, 0.0  ;;  %v2691_v47 = vsel %vm2593_vm7, %v2343_v8, 0.0 }
 0x304   : > { %v2387_v11 = vadd.f32 %v2386_v36, %v2385_v61  ;;  %v2692_v2 = vadd.f32 %v2691_v47, %v2690_v28  ;;  %v2286_v26 = vadd.f32 %v2285_v4, %v2284_v50  ;;  %v2620_v22 = vadd.f32 %v2619_v46, %v2618_v15 }
 0x306   : > { %v2389_v20 = vadd.f32 %v2388_v58, %v2387_v11  ;;  %v2694_v1 = vadd.f32 %v2693_v59, %v2692_v2 }
 0x307   : > { %v3203_v18 = vpop.f32.mrb[14].mxu0 }
 0x308   : > { %2243 = vst.msk [vmem:[%s4880_s16 + $0x78] sm:$0xff] %vm643_vm1, %v3203_v18  ;;  %2495 = vrot.lane.b32.xlu1 %v3203_v18, %s3268_s17  ;;  %v2139_v14 = vpop.f32.mrb[15].mxu0  ;;  %v2346_v19 = vmul.f32 %v3203_v18, %v3203_v18  ;;  %v2289_v40 = vsel %vm643_vm1, %v3203_v18, 0.0  ;;  %v2623_v24 = vsel %vm2593_vm7, %v3203_v18, 0.0 }
 0x309   : > { %2242 = vst.msk [vmem:[%s4880_s16 + $0x70] sm:$0xff] %vm643_vm1, %v2139_v14  ;;  %v2287_v42 = vsel %vm643_vm1, %v2139_v14, 0.0  ;;  %v2345_v10 = vmul.f32 %v2139_v14, %v2139_v14  ;;  %v2621_v37 = vsel %vm2593_vm7, %v2139_v14, 0.0  ;;  %2493 = vrot.lane.b32.xlu0 %v2139_v14, %s3268_s17 }
 0x30a   : > { %v2288_v53 = vadd.f32 %v2287_v42, %v2286_v26  ;;  %v2622_v16 = vadd.f32 %v2621_v37, %v2620_v22  ;;  %v2392_v57 = vsel %vm643_vm1, %v2346_v19, 0.0  ;;  %v2697_v44 = vsel %vm2593_vm7, %v2346_v19, 0.0 }
 0x30b   : > { %v2390_v6 = vsel %vm643_vm1, %v2345_v10, 0.0  ;;  %v2695_v45 = vsel %vm2593_vm7, %v2345_v10, 0.0 }
 0x30c   : > { %v2290_v17 = vadd.f32 %v2289_v40, %v2288_v53  ;;  %v2391_v54 = vadd.f32 %v2390_v6, %v2389_v20  ;;  %v2624_v21 = vadd.f32 %v2623_v24, %v2622_v16  ;;  %v2696_v0 = vadd.f32 %v2695_v45, %v2694_v1 }
 0x30e   : > { %v2393_v60 = vadd.f32 %v2392_v57, %v2391_v54  ;;  %v2698_v55 = vadd.f32 %v2697_v44, %v2696_v0  ;;  %v3206_v48 = vpop.f32.mrb[0].mxu1 }
 0x30f   : > { %2245 = vst.msk [vmem:[%s4880_s16 + $0x88] sm:$0xff] %vm643_vm1, %v3206_v48  ;;  %v2149_v35 = vpop.f32.mrb[1].mxu1  ;;  %2499 = vrot.lane.b32.xlu1 %v3206_v48, %s3268_s17  ;;  %v2348_v56 = vmul.f32 %v3206_v48, %v3206_v48  ;;  %v2293_v7 = vsel %vm643_vm1, %v3206_v48, 0.0  ;;  %v2627_v31 = vsel %vm2593_vm7, %v3206_v48, 0.0 }
 0x310   : > { %2244 = vst.msk [vmem:[%s4880_s16 + $0x80] sm:$0xff] %vm643_vm1, %v2149_v35  ;;  %v2291_v34 = vsel %vm643_vm1, %v2149_v35, 0.0  ;;  %v2347_v30 = vmul.f32 %v2149_v35, %v2149_v35  ;;  %v2625_v13 = vsel %vm2593_vm7, %v2149_v35, 0.0  ;;  %2497 = vrot.lane.b32.xlu0 %v2149_v35, %s3268_s17 }
 0x311   : > { %v2292_v41 = vadd.f32 %v2291_v34, %v2290_v17  ;;  %v2626_v3 = vadd.f32 %v2625_v13, %v2624_v21  ;;  %v2396_v5 = vsel %vm643_vm1, %v2348_v56, 0.0  ;;  %v2701_v32 = vsel %vm2593_vm7, %v2348_v56, 0.0 }
 0x312   : > { %v2394_v62 = vsel %vm643_vm1, %v2347_v30, 0.0  ;;  %v2699_v43 = vsel %vm2593_vm7, %v2347_v30, 0.0 }
 0x313   : > { %v2395_v49 = vadd.f32 %v2394_v62, %v2393_v60  ;;  %v2700_v33 = vadd.f32 %v2699_v43, %v2698_v55  ;;  %v2294_v39 = vadd.f32 %v2293_v7, %v2292_v41  ;;  %v2628_v23 = vadd.f32 %v2627_v31, %v2626_v3 }
 0x315   : > { %v2397_v52 = vadd.f32 %v2396_v5, %v2395_v49  ;;  %v2702_v25 = vadd.f32 %v2701_v32, %v2700_v33 }
 0x31a   : > { %v3209_v29 = vpop.f32.mrb[2].mxu1 }
 0x31b   : > { %2247 = vst.msk [vmem:[%s4880_s16 + $0x98] sm:$0xff] %vm643_vm1, %v3209_v29  ;;  %v2159_v27 = vpop.f32.mrb[3].mxu1  ;;  %2503 = vrot.lane.b32.xlu1 %v3209_v29, %s3268_s17  ;;  %v2350_v61 = vmul.f32 %v3209_v29, %v3209_v29  ;;  %v2297_v8 = vsel %vm643_vm1, %v3209_v29, 0.0  ;;  %v2631_v9 = vsel %vm2593_vm7, %v3209_v29, 0.0 }
 0x31c   : > { %2246 = vst.msk [vmem:[%s4880_s16 + $0x90] sm:$0xff] %vm643_vm1, %v2159_v27  ;;  %v2295_v28 = vsel %vm643_vm1, %v2159_v27, 0.0  ;;  %v2349_v51 = vmul.f32 %v2159_v27, %v2159_v27  ;;  %v2629_v12 = vsel %vm2593_vm7, %v2159_v27, 0.0  ;;  %2501 = vrot.lane.b32.xlu0 %v2159_v27, %s3268_s17 }
 0x31d   : > { %v2296_v63 = vadd.f32 %v2295_v28, %v2294_v39  ;;  %v2630_v38 = vadd.f32 %v2629_v12, %v2628_v23  ;;  %v2400_v11 = vsel %vm643_vm1, %v2350_v61, 0.0  ;;  %v2705_v2 = vsel %vm2593_vm7, %v2350_v61, 0.0 }
 0x31e   : > { %v2398_v50 = vsel %vm643_vm1, %v2349_v51, 0.0  ;;  %v2703_v15 = vsel %vm2593_vm7, %v2349_v51, 0.0 }
 0x31f   : > { %v2399_v4 = vadd.f32 %v2398_v50, %v2397_v52  ;;  %v2704_v46 = vadd.f32 %v2703_v15, %v2702_v25  ;;  %v2298_v36 = vadd.f32 %v2297_v8, %v2296_v63  ;;  %v2632_v47 = vadd.f32 %v2631_v9, %v2630_v38 }
 0x321   : > { %v2401_v26 = vadd.f32 %v2400_v11, %v2399_v4  ;;  %v2706_v22 = vadd.f32 %v2705_v2, %v2704_v46 }
 0x326   : > { %v3212_v58 = vpop.f32.mrb[4].mxu1 }
 0x327   : > { %2249 = vst.msk [vmem:[%s4880_s16 + $0xa8] sm:$0xff] %vm643_vm1, %v3212_v58  ;;  %v2169_v59 = vpop.f32.mrb[5].mxu1  ;;  %2507 = vrot.lane.b32.xlu1 %v3212_v58, %s3268_s17  ;;  %v2352_v20 = vmul.f32 %v3212_v58, %v3212_v58  ;;  %v2301_v10 = vsel %vm643_vm1, %v3212_v58, 0.0  ;;  %v2635_v37 = vsel %vm2593_vm7, %v3212_v58, 0.0 }
 0x328   : > { %2248 = vst.msk [vmem:[%s4880_s16 + $0xa0] sm:$0xff] %vm643_vm1, %v2169_v59  ;;  %v2299_v1 = vsel %vm643_vm1, %v2169_v59, 0.0  ;;  %v2351_v18 = vmul.f32 %v2169_v59, %v2169_v59  ;;  %v2633_v14 = vsel %vm2593_vm7, %v2169_v59, 0.0  ;;  %2505 = vrot.lane.b32.xlu0 %v2169_v59, %s3268_s17 }
 0x329   : > { %v2300_v19 = vadd.f32 %v2299_v1, %v2298_v36  ;;  %v2634_v42 = vadd.f32 %v2633_v14, %v2632_v47  ;;  %v2404_v17 = vsel %vm643_vm1, %v2352_v20, 0.0  ;;  %v2709_v54 = vsel %vm2593_vm7, %v2352_v20, 0.0 }
 0x32a   : > { %v2402_v53 = vsel %vm643_vm1, %v2351_v18, 0.0  ;;  %v2707_v16 = vsel %vm2593_vm7, %v2351_v18, 0.0 }
 0x32b   : > { %v2403_v40 = vadd.f32 %v2402_v53, %v2401_v26  ;;  %v2708_v24 = vadd.f32 %v2707_v16, %v2706_v22  ;;  %v2302_v6 = vadd.f32 %v2301_v10, %v2300_v19  ;;  %v2636_v45 = vadd.f32 %v2635_v37, %v2634_v42 }
 0x32d   : > { %v2405_v21 = vadd.f32 %v2404_v17, %v2403_v40  ;;  %v2710_v0 = vadd.f32 %v2709_v54, %v2708_v24 }
 0x332   : > { %v3215_v57 = vpop.f32.mrb[6].mxu1 }
 0x333   : > { %2251 = vst.msk [vmem:[%s4880_s16 + $0xb8] sm:$0xff] %vm643_vm1, %v3215_v57  ;;  %v2179_v44 = vpop.f32.mrb[7].mxu1  ;;  %2511 = vrot.lane.b32.xlu1 %v3215_v57, %s3268_s17  ;;  %v2354_v60 = vmul.f32 %v3215_v57, %v3215_v57  ;;  %v2305_v30 = vsel %vm643_vm1, %v3215_v57, 0.0  ;;  %v2639_v13 = vsel %vm2593_vm7, %v3215_v57, 0.0 }
 0x334   : > { %2250 = vst.msk [vmem:[%s4880_s16 + $0xb0] sm:$0xff] %vm643_vm1, %v2179_v44  ;;  %v2303_v55 = vsel %vm643_vm1, %v2179_v44, 0.0  ;;  %v2353_v48 = vmul.f32 %v2179_v44, %v2179_v44  ;;  %v2637_v35 = vsel %vm2593_vm7, %v2179_v44, 0.0  ;;  %2509 = vrot.lane.b32.xlu0 %v2179_v44, %s3268_s17 }
 0x335   : > { %v2304_v56 = vadd.f32 %v2303_v55, %v2302_v6  ;;  %v2638_v34 = vadd.f32 %v2637_v35, %v2636_v45  ;;  %v2408_v49 = vsel %vm643_vm1, %v2354_v60, 0.0  ;;  %v2713_v33 = vsel %vm2593_vm7, %v2354_v60, 0.0 }
 0x336   : > { %v2406_v41 = vsel %vm643_vm1, %v2353_v48, 0.0  ;;  %v2711_v3 = vsel %vm2593_vm7, %v2353_v48, 0.0 }
 0x337   : > { %v2407_v7 = vadd.f32 %v2406_v41, %v2405_v21  ;;  %v2712_v31 = vadd.f32 %v2711_v3, %v2710_v0  ;;  %v2306_v62 = vadd.f32 %v2305_v30, %v2304_v56  ;;  %v2640_v43 = vadd.f32 %v2639_v13, %v2638_v34 }
 0x339   : > { %v2409_v39 = vadd.f32 %v2408_v49, %v2407_v7  ;;  %v2714_v23 = vadd.f32 %v2713_v33, %v2712_v31 }
 0x33d   : > { %v2468_v5 = vpop.permute.xlu1 %2467 }
 0x33e   : > { %2562 = vst.msk [vmem:[%s5055_s22 + $0x8] sm:$0xff] %vm643_vm1, %v2468_v5  ;;  %v3218_v32 = vpop.f32.mrb[8].mxu1  ;;  %v2466_v52 = vpop.permute.xlu0 %2465 }
 0x33f   : > { %2253 = vst.msk [vmem:[%s4880_s16 + $0xc8] sm:$0xff] %vm643_vm1, %v3218_v32  ;;  %2561 = vst.msk [vmem:[%s5055_s22] sm:$0xff] %vm643_vm1, %v2466_v52  ;;  %v2189_v25 = vpop.f32.mrb[9].mxu1  ;;  %2515 = vrot.lane.b32.xlu1 %v3218_v32, %s3268_s17  ;;  %v2356_v29 = vmul.f32 %v3218_v32, %v3218_v32  ;;  %v2309_v63 = vsel %vm643_vm1, %v3218_v32, 0.0  ;;  %v2643_v38 = vsel %vm2593_vm7, %v3218_v32, 0.0 }
 0x340   : > { %2252 = vst.msk [vmem:[%s4880_s16 + $0xc0] sm:$0xff] %vm643_vm1, %v2189_v25  ;;  %v2307_v27 = vsel %vm643_vm1, %v2189_v25, 0.0  ;;  %v2355_v61 = vmul.f32 %v2189_v25, %v2189_v25  ;;  %v2641_v28 = vsel %vm2593_vm7, %v2189_v25, 0.0  ;;  %2513 = vrot.lane.b32.xlu0 %v2189_v25, %s3268_s17 }
 0x341   : > { %v2308_v51 = vadd.f32 %v2307_v27, %v2306_v62  ;;  %v2642_v12 = vadd.f32 %v2641_v28, %v2640_v43  ;;  %v2412_v36 = vsel %vm643_vm1, %v2356_v29, 0.0  ;;  %v2717_v47 = vsel %vm2593_vm7, %v2356_v29, 0.0 }
 0x342   : > { %v2410_v8 = vsel %vm643_vm1, %v2355_v61, 0.0  ;;  %v2715_v9 = vsel %vm2593_vm7, %v2355_v61, 0.0 }
 0x343   : > { %v2411_v50 = vadd.f32 %v2410_v8, %v2409_v39  ;;  %v2716_v15 = vadd.f32 %v2715_v9, %v2714_v23  ;;  %v2310_v4 = vadd.f32 %v2309_v63, %v2308_v51  ;;  %v2644_v46 = vadd.f32 %v2643_v38, %v2642_v12 }
 0x345   : > { %v2413_v11 = vadd.f32 %v2412_v36, %v2411_v50  ;;  %v2718_v2 = vadd.f32 %v2717_v47, %v2716_v15 }
 0x34a   : > { %v2472_v26 = vpop.permute.xlu1 %2471  ;;  %v3221_v22 = vpop.f32.mrb[10].mxu1 }
 0x34b   : > { %2564 = vst.msk [vmem:[%s5055_s22 + $0x18] sm:$0xff] %vm643_vm1, %v2472_v26  ;;  %v2470_v58 = vpop.permute.xlu0 %2469  ;;  %2255 = vst.msk [vmem:[%s4880_s16 + $0xd8] sm:$0xff] %vm643_vm1, %v3221_v22  ;;  %v2199_v59 = vpop.f32.mrb[11].mxu1  ;;  %2519 = vrot.lane.b32.xlu1 %v3221_v22, %s3268_s17  ;;  %v2358_v20 = vmul.f32 %v3221_v22, %v3221_v22  ;;  %v2313_v10 = vsel %vm643_vm1, %v3221_v22, 0.0  ;;  %v2647_v37 = vsel %vm2593_vm7, %v3221_v22, 0.0 }
 0x34c   : > { %2563 = vst.msk [vmem:[%s5055_s22 + $0x10] sm:$0xff] %vm643_vm1, %v2470_v58  ;;  %2254 = vst.msk [vmem:[%s4880_s16 + $0xd0] sm:$0xff] %vm643_vm1, %v2199_v59  ;;  %v2311_v1 = vsel %vm643_vm1, %v2199_v59, 0.0  ;;  %v2357_v18 = vmul.f32 %v2199_v59, %v2199_v59  ;;  %v2645_v14 = vsel %vm2593_vm7, %v2199_v59, 0.0  ;;  %2517 = vrot.lane.b32.xlu0 %v2199_v59, %s3268_s17 }
 0x34d   : > { %v2312_v19 = vadd.f32 %v2311_v1, %v2310_v4  ;;  %v2646_v42 = vadd.f32 %v2645_v14, %v2644_v46  ;;  %v2416_v17 = vsel %vm643_vm1, %v2358_v20, 0.0  ;;  %v2721_v54 = vsel %vm2593_vm7, %v2358_v20, 0.0 }
 0x34e   : > { %v2414_v53 = vsel %vm643_vm1, %v2357_v18, 0.0  ;;  %v2719_v16 = vsel %vm2593_vm7, %v2357_v18, 0.0 }
 0x34f   : > { %v2415_v40 = vadd.f32 %v2414_v53, %v2413_v11  ;;  %v2720_v24 = vadd.f32 %v2719_v16, %v2718_v2  ;;  %v2314_v6 = vadd.f32 %v2313_v10, %v2312_v19  ;;  %v2648_v45 = vadd.f32 %v2647_v37, %v2646_v42 }
 0x351   : > { %v2417_v0 = vadd.f32 %v2416_v17, %v2415_v40  ;;  %v2722_v57 = vadd.f32 %v2721_v54, %v2720_v24 }
 0x352   : > { %v2476_v21 = vpop.permute.xlu1 %2475 }
 0x353   : > { %2566 = vst.msk [vmem:[%s5055_s22 + $0x28] sm:$0xff] %vm643_vm1, %v2476_v21  ;;  %v2474_v44 = vpop.permute.xlu0 %2473 }
 0x354   : > { %2565 = vst.msk [vmem:[%s5055_s22 + $0x20] sm:$0xff] %vm643_vm1, %v2474_v44 }
 0x357   : > { %v3224_v60 = vpop.f32.mrb[12].mxu1 }
 0x358   : > { %2257 = vst.msk [vmem:[%s4880_s16 + $0xe8] sm:$0xff] %vm643_vm1, %v3224_v60  ;;  %v2209_v55 = vpop.f32.mrb[13].mxu1  ;;  %2523 = vrot.lane.b32.xlu1 %v3224_v60, %s3268_s17  ;;  %v2360_v48 = vmul.f32 %v3224_v60, %v3224_v60  ;;  %v2317_v3 = vsel %vm643_vm1, %v3224_v60, 0.0  ;;  %v2651_v7 = vsel %vm2593_vm7, %v3224_v60, 0.0 }
 0x359   : > { %2256 = vst.msk [vmem:[%s4880_s16 + $0xe0] sm:$0xff] %vm643_vm1, %v2209_v55  ;;  %v2315_v35 = vsel %vm643_vm1, %v2209_v55, 0.0  ;;  %v2359_v56 = vmul.f32 %v2209_v55, %v2209_v55  ;;  %v2649_v34 = vsel %vm2593_vm7, %v2209_v55, 0.0  ;;  %2521 = vrot.lane.b32.xlu0 %v2209_v55, %s3268_s17 }
 0x35a   : > { %v2316_v30 = vadd.f32 %v2315_v35, %v2314_v6  ;;  %v2650_v13 = vadd.f32 %v2649_v34, %v2648_v45  ;;  %v2480_v41 = vpop.permute.xlu1 %2479  ;;  %v2420_v5 = vsel %vm643_vm1, %v2360_v48, 0.0  ;;  %v2725_v32 = vsel %vm2593_vm7, %v2360_v48, 0.0 }
 0x35b   : > { %v2418_v31 = vsel %vm643_vm1, %v2359_v56, 0.0  ;;  %v2723_v62 = vsel %vm2593_vm7, %v2359_v56, 0.0  ;;  %2568 = vst.msk [vmem:[%s5055_s22 + $0x38] sm:$0xff] %vm643_vm1, %v2480_v41  ;;  %v2478_v43 = vpop.permute.xlu0 %2477 }
 0x35c   : > { %v2419_v49 = vadd.f32 %v2418_v31, %v2417_v0  ;;  %v2724_v33 = vadd.f32 %v2723_v62, %v2722_v57  ;;  %2567 = vst.msk [vmem:[%s5055_s22 + $0x30] sm:$0xff] %vm643_vm1, %v2478_v43  ;;  %v2318_v39 = vadd.f32 %v2317_v3, %v2316_v30  ;;  %v2652_v23 = vadd.f32 %v2651_v7, %v2650_v13 }
 0x35e   : > { %v2421_v52 = vadd.f32 %v2420_v5, %v2419_v49  ;;  %v2726_v25 = vadd.f32 %v2725_v32, %v2724_v33 }
 0x360   : > { %v3227_v29 = vpop.f32.mrb[14].mxu1 }
 0x361   : > { %2259 = vst.msk [vmem:[%s4880_s16 + $0xf8] sm:$0xff] %vm643_vm1, %v3227_v29  ;;  %v2219_v27 = vpop.f32.mrb[15].mxu1  ;;  %2527 = vrot.lane.b32.xlu1 %v3227_v29, %s3268_s17  ;;  %v2362_v61 = vmul.f32 %v3227_v29, %v3227_v29  ;;  %v2321_v50 = vsel %vm643_vm1, %v3227_v29, 0.0  ;;  %v2655_v15 = vsel %vm2593_vm7, %v3227_v29, 0.0 }
 0x362   : > { %2258 = vst.msk [vmem:[%s4880_s16 + $0xf0] sm:$0xff] %vm643_vm1, %v2219_v27  ;;  %v2319_v28 = vsel %vm643_vm1, %v2219_v27, 0.0  ;;  %v2361_v51 = vmul.f32 %v2219_v27, %v2219_v27  ;;  %v2653_v12 = vsel %vm2593_vm7, %v2219_v27, 0.0  ;;  %v2484_v63 = vpop.permute.xlu1 %2483  ;;  %2525 = vrot.lane.b32.xlu0 %v2219_v27, %s3268_s17 }
 0x363   : > { %v2320_v38 = vadd.f32 %v2319_v28, %v2318_v39  ;;  %v2654_v8 = vadd.f32 %v2653_v12, %v2652_v23  ;;  %2570 = vst.msk [vmem:[%s5055_s22 + $0x48] sm:$0xff] %vm643_vm1, %v2484_v63  ;;  %v2482_v9 = vpop.permute.xlu0 %2481  ;;  %v2424_v26 = vsel %vm643_vm1, %v2362_v61, 0.0  ;;  %v2729_v22 = vsel %vm2593_vm7, %v2362_v61, 0.0 }
 0x364   : > { %v2422_v4 = vsel %vm643_vm1, %v2361_v51, 0.0  ;;  %v2727_v46 = vsel %vm2593_vm7, %v2361_v51, 0.0  ;;  %2569 = vst.msk [vmem:[%s5055_s22 + $0x40] sm:$0xff] %vm643_vm1, %v2482_v9 }
 0x365   : > { %v2322_v36 = vadd.f32 %v2321_v50, %v2320_v38  ;;  %v2423_v47 = vadd.f32 %v2422_v4, %v2421_v52  ;;  %v2656_v11 = vadd.f32 %v2655_v15, %v2654_v8  ;;  %v2728_v2 = vadd.f32 %v2727_v46, %v2726_v25 }
 0x367   : > { %v2323_v58 = vrot.slane %v2322_v36, 4  ;;  %v2425_v59 = vadd.f32 %v2424_v26, %v2423_v47  ;;  %v2657_v20 = vrot.slane %v2656_v11, 4  ;;  %v2730_v1 = vadd.f32 %v2729_v22, %v2728_v2 }
 0x369   : > { %v2324_v18 = vadd.f32 %v2323_v58, %v2322_v36  ;;  %v2426_v14 = vrot.slane %v2425_v59, 4  ;;  %v2658_v19 = vadd.f32 %v2657_v20, %v2656_v11  ;;  %v2731_v42 = vrot.slane %v2730_v1, 4 }
 0x36a   : > { %v2488_v10 = vpop.permute.xlu1 %2487 }
 0x36b   : > { %v2325_v37 = vrot.slane %v2324_v18, 2  ;;  %v2427_v53 = vadd.f32 %v2426_v14, %v2425_v59  ;;  %2572 = vst.msk [vmem:[%s5055_s22 + $0x58] sm:$0xff] %vm643_vm1, %v2488_v10  ;;  %v2486_v16 = vpop.permute.xlu0 %2485  ;;  %v2659_v40 = vrot.slane %v2658_v19, 2  ;;  %v2732_v24 = vadd.f32 %v2731_v42, %v2730_v1 }
 0x36c   : > { %2571 = vst.msk [vmem:[%s5055_s22 + $0x50] sm:$0xff] %vm643_vm1, %v2486_v16 }
 0x36d   : > { %v2326_v6 = vadd.f32 %v2325_v37, %v2324_v18  ;;  %v2428_v45 = vrot.slane %v2427_v53, 2  ;;  %v2660_v17 = vadd.f32 %v2659_v40, %v2658_v19  ;;  %v2733_v54 = vrot.slane %v2732_v24, 2 }
 0x36f   : > { %v2661_v21 = vrot.slane %v2660_v17, 1  ;;  %v2734_v0 = vadd.f32 %v2733_v54, %v2732_v24  ;;  %v2327_v57 = vrot.slane %v2326_v6, 1  ;;  %v2429_v44 = vadd.f32 %v2428_v45, %v2427_v53 }
 0x371   : > { %v2662_v60 = vadd.f32 %v2661_v21, %v2660_v17  ;;  %v2735_v55 = vrot.slane %v2734_v0, 1  ;;  %v2328_v48 = vadd.f32 %v2327_v57, %v2326_v6  ;;  %v2430_v35 = vrot.slane %v2429_v44, 1 }
 0x372   : > { %v2492_v56 = vpop.permute.xlu1 %2491 }
 0x373   : > { %2574 = vst.msk [vmem:[%s5055_s22 + $0x68] sm:$0xff] %vm643_vm1, %v2492_v56  ;;  %v2490_v34 = vpop.permute.xlu0 %2489  ;;  %2664 = vrot.lane.b32.xlu0 %v2662_v60, %s3268_s17  ;;  %v2736_v30 = vadd.f32 %v2735_v55, %v2734_v0  ;;  %v2431_v13 = vadd.f32 %v2430_v35, %v2429_v44 }
 0x374   : > { %2330 = vst.msk [vmem:[%s248_s26] sm:$0x1] %vm2329_vm8, %v2328_v48 }
 0x375   : > { %2573 = vst.msk [vmem:[%s5055_s22 + $0x60] sm:$0xff] %vm643_vm1, %v2490_v34  ;;  %2738 = vrot.lane.b32.xlu1 %v2736_v30, %s3268_s17 }
 0x376   : > { %2432 = vst.msk [vmem:[%s248_s26 + $0x1] sm:$0x1] %vm2329_vm8, %v2431_v13 }
 0x37a   : > { %v2496_v41 = vpop.permute.xlu1 %2495 }
 0x37b   : > { %2576 = vst.msk [vmem:[%s5055_s22 + $0x78] sm:$0xff] %vm643_vm1, %v2496_v41  ;;  %v2494_v3 = vpop.permute.xlu0 %2493 }
 0x37c   : > { %2575 = vst.msk [vmem:[%s5055_s22 + $0x70] sm:$0xff] %vm643_vm1, %v2494_v3 }
 0x381   : > { %v2500_v7 = vpop.permute.xlu1 %2499 }
 0x382   : > { %2578 = vst.msk [vmem:[%s5055_s22 + $0x88] sm:$0xff] %vm643_vm1, %v2500_v7  ;;  %v2498_v31 = vpop.permute.xlu0 %2497 }
 0x383   : > { %2577 = vst.msk [vmem:[%s5055_s22 + $0x80] sm:$0xff] %vm643_vm1, %v2498_v31 }
 0x38d   : > { %v2504_v62 = vpop.permute.xlu1 %2503 }
 0x38e   : > { %2580 = vst.msk [vmem:[%s5055_s22 + $0x98] sm:$0xff] %vm643_vm1, %v2504_v62  ;;  %v2502_v43 = vpop.permute.xlu0 %2501 }
 0x38f   : > { %2579 = vst.msk [vmem:[%s5055_s22 + $0x90] sm:$0xff] %vm643_vm1, %v2502_v43 }
 0x399   : > { %v2508_v49 = vpop.permute.xlu1 %2507 }
 0x39a   : > { %2582 = vst.msk [vmem:[%s5055_s22 + $0xa8] sm:$0xff] %vm643_vm1, %v2508_v49  ;;  %v2506_v33 = vpop.permute.xlu0 %2505 }
 0x39b   : > { %2581 = vst.msk [vmem:[%s5055_s22 + $0xa0] sm:$0xff] %vm643_vm1, %v2506_v33 }
 0x3a5   : > { %v2512_v39 = vpop.permute.xlu1 %2511 }
 0x3a6   : > { %2584 = vst.msk [vmem:[%s5055_s22 + $0xb8] sm:$0xff] %vm643_vm1, %v2512_v39  ;;  %v2510_v23 = vpop.permute.xlu0 %2509 }
 0x3a7   : > { %2583 = vst.msk [vmem:[%s5055_s22 + $0xb0] sm:$0xff] %vm643_vm1, %v2510_v23 }
 0x3b1   : > { %v2516_v5 = vpop.permute.xlu1 %2515 }
 0x3b2   : > { %2586 = vst.msk [vmem:[%s5055_s22 + $0xc8] sm:$0xff] %vm643_vm1, %v2516_v5  ;;  %v2514_v32 = vpop.permute.xlu0 %2513 }
 0x3b3   : > { %2585 = vst.msk [vmem:[%s5055_s22 + $0xc0] sm:$0xff] %vm643_vm1, %v2514_v32 }
 0x3bd   : > { %v2520_v52 = vpop.permute.xlu1 %2519 }
 0x3be   : > { %2588 = vst.msk [vmem:[%s5055_s22 + $0xd8] sm:$0xff] %vm643_vm1, %v2520_v52  ;;  %v2518_v25 = vpop.permute.xlu0 %2517 }
 0x3bf   : > { %2587 = vst.msk [vmem:[%s5055_s22 + $0xd0] sm:$0xff] %vm643_vm1, %v2518_v25 }
 0x3ca   : > { %v2524_v29 = vpop.permute.xlu1 %2523 }
 0x3cb   : > { %2590 = vst.msk [vmem:[%s5055_s22 + $0xe8] sm:$0xff] %vm643_vm1, %v2524_v29  ;;  %v2522_v27 = vpop.permute.xlu0 %2521 }
 0x3cc   : > { %2589 = vst.msk [vmem:[%s5055_s22 + $0xe0] sm:$0xff] %vm643_vm1, %v2522_v27 }
 0x3d3   : > { %v2528_v61 = vpop.permute.xlu1 %2527 }
 0x3d4   : > { %2592 = vst.msk [vmem:[%s5055_s22 + $0xf8] sm:$0xff] %vm643_vm1, %v2528_v61  ;;  %v2526_v28 = vpop.permute.xlu0 %2525 }
 0x3d5   : > { %2591 = vst.msk [vmem:[%s5055_s22 + $0xf0] sm:$0xff] %vm643_vm1, %v2526_v28 }
 0x3e5   : > { %v2665_v51 = vpop.permute.xlu0 %2664 }
 0x3e6   : > { %2667 = vst.msk [vmem:[%s257_s29] sm:$0x1] %vm2329_vm8, %v2665_v51 }
 0x3e7   : > { %v2739_v12 = vpop.permute.xlu1 %2738 }
 0x3e8   : > { %2741 = vst.msk [vmem:[%s257_s29 + $0x1] sm:$0x1] %vm2329_vm8, %v2739_v12 }
 0x3e9 PF: > { %s16_s18 = sadd.s32 1, %s3262_s18  }
 0x3ea   : > { %p13_p4 = scmp.ge.s32.totalorder %s16_s18, 4  }
 0x3ec   :  { %15 = sbr.rel (!%p13_p4) target bundleno = 1 (0x1), region = 96 }

</bundles_post_ra>
